<compile_context>
chip_gen: v5e
topology: v5e:2x2
jax: 0.10.0
libtpu: 0.0.40
codegen_flags: <defaults>
</compile_context>

<pallas_src>
import jax
import jax.numpy as jnp
from jax.experimental import pallas as pl
from jax.experimental.pallas import tpu as pltpu  # noqa: F401  (kept for TPU-specific extensions)


# ----------------------------- fused kernel -----------------------------
def _make_fused_kernel(T, B, H, L, C):
    """Kernel closure over static sizes.  Ref order:
       xf, xb, (wx_l, b_l) * L, wh_all, waff, baff, out."""
    H2 = 2 * H

    def kernel(*refs):
        xf_ref, xb_ref = refs[0], refs[1]
        wh_ref = refs[2 + 2 * L]     # (4L, 2H, 2H) per-gate block-diag recurrent weights
        waff_ref = refs[3 + 2 * L]   # (2H, C)
        baff_ref = refs[4 + 2 * L]   # (1, C)
        out_ref = refs[5 + 2 * L]    # (B, C)

        inp_f = xf_ref[...]          # (T*B, D)  rows in natural time order (row = t*B + b)
        inp_b = xb_ref[...]          # (T*B, D)  rows in reversed time order

        lo = None
        for l in range(L):
            wx_ref = refs[2 + 2 * l]   # (2, D_l, 4H)  [fwd, bwd] input weights (transposed)
            b_ref = refs[3 + 2 * l]    # (2, 1, 4H)    combined biases

            # ---- hoisted input projection: one GEMM per direction for all T steps ----
            pf = jnp.dot(inp_f, wx_ref[0], preferred_element_type=jnp.float32) + b_ref[0]
            pb = jnp.dot(inp_b, wx_ref[1], preferred_element_type=jnp.float32) + b_ref[1]
            # per-gate [fwd | bwd] precomputed gate inputs, each (T*B, 2H)
            P = [jnp.concatenate([pf[:, k * H:(k + 1) * H],
                                  pb[:, k * H:(k + 1) * H]], axis=1) for k in range(4)]

            # ---- fused bidirectional recurrence (fully unrolled, T is static) ----
            h_cat = jnp.zeros((B, H2), jnp.float32)    # [h_fwd | h_bwd]
            c_cat = jnp.zeros((B, H2), jnp.float32)
            step_h = []
            for s in range(T):
                r0, r1 = s * B, (s + 1) * B
                g_i = jax.nn.sigmoid(P[0][r0:r1] + jnp.dot(
                    h_cat, wh_ref[4 * l + 0], preferred_element_type=jnp.float32))
                g_f = jax.nn.sigmoid(P[1][r0:r1] + jnp.dot(
                    h_cat, wh_ref[4 * l + 1], preferred_element_type=jnp.float32))
                g_g = jnp.tanh(P[2][r0:r1] + jnp.dot(
                    h_cat, wh_ref[4 * l + 2], preferred_element_type=jnp.float32))
                g_o = jax.nn.sigmoid(P[3][r0:r1] + jnp.dot(
                    h_cat, wh_ref[4 * l + 3], preferred_element_type=jnp.float32))
                c_cat = g_f * c_cat + g_i * g_g
                h_cat = g_o * jnp.tanh(c_cat)
                step_h.append(h_cat)

            # reassemble time-ordered bidirectional outputs:
            #   fwd half of step s -> output at time s; bwd half of step s -> time T-1-s.
            rows = [jnp.concatenate([step_h[t][:, :H], step_h[T - 1 - t][:, H:]], axis=1)
                    for t in range(T)]                               # rows[t]: (B, 2H)
            if l + 1 < L:
                inp_f = jnp.concatenate(rows, axis=0)                # natural time order
                inp_b = jnp.concatenate(rows[::-1], axis=0)          # reversed time order
            else:
                lo = jnp.stack(rows, axis=1)                         # (B, T, 2H)

        # ---- attention (dot each timestep against the last) + affine head ----
        last = lo[:, T - 1:T, :]                                     # (B, 1, 2H)
        scores = jnp.einsum('btd,bsd->bts', lo, last,
                            preferred_element_type=jnp.float32)[:, :, 0]    # (B, T)
        m = jnp.max(scores, axis=1, keepdims=True)
        e = jnp.exp(scores - m)
        w = e / jnp.sum(e, axis=1, keepdims=True)                    # softmax over time
        ctx = jnp.einsum('bst,btd->bsd', w[:, None, :], lo,
                         preferred_element_type=jnp.float32)[:, 0, :]        # (B, 2H)
        out_ref[...] = (jnp.dot(ctx, waff_ref[...], preferred_element_type=jnp.float32)
                        + baff_ref[...]).astype(out_ref.dtype)

    return kernel


# ----------------------------- wrapper -----------------------------
def lstm_attention_forward(x_btd, params):
    """x_btd: (B, T, D_in) — the PyTorch module's `input` before its internal permute."""
    B, T, D = x_btd.shape
    L = len(params["lstm"])
    H = params["lstm"][0][0][1].shape[1]          # whh: (4H, H)
    C = params["affine_w"].shape[0]

    x_tbd = jnp.transpose(x_btd, (1, 0, 2))       # (T, B, D) time-major
    xf = x_tbd.reshape(T * B, D)                  # natural time order, row = t*B + b
    xb = x_tbd[::-1].reshape(T * B, D)            # reversed time order

    args = [xf, xb]
    wh_blocks = []
    for (fwd, bwd) in params["lstm"]:
        wih_f, whh_f, bih_f, bhh_f = fwd
        wih_b, whh_b, bih_b, bhh_b = bwd
        args.append(jnp.stack([wih_f.T, wih_b.T], axis=0))                       # (2, D_l, 4H)
        args.append(jnp.stack([(bih_f + bhh_f)[None, :],
                               (bih_b + bhh_b)[None, :]], axis=0))               # (2, 1, 4H)
        whf_t, whb_t = whh_f.T, whh_b.T                                          # (H, 4H)
        for k in range(4):            # per-gate block-diag [[fwd, 0], [0, bwd]] (2H, 2H)
            blk = jnp.zeros((2 * H, 2 * H), jnp.float32)
            blk = blk.at[:H, :H].set(whf_t[:, k * H:(k + 1) * H])
            blk = blk.at[H:, H:].set(whb_t[:, k * H:(k + 1) * H])
            wh_blocks.append(blk)
    args.append(jnp.stack(wh_blocks, axis=0))                                    # (4L, 2H, 2H)
    args.append(jnp.transpose(params["affine_w"]))                               # (2H, C)
    args.append(params["affine_b"].reshape(1, C))                                # (1, C)

    kernel = _make_fused_kernel(T, B, H, L, C)
    return pl.pallas_call(
        kernel,
        out_shape=jax.ShapeDtypeStruct((B, C), jnp.float32),
    )(*args)


# ----------------------------- deterministic parameter init -----------------------------
def init_params(key, input_dim, hidden_dim, num_layers, num_classes):
    params = {"lstm": []}
    k = 1.0 / float(hidden_dim) ** 0.5
    keys = jax.random.split(key, num_layers * 8 + 2)
    idx = 0
    for layer in range(num_layers):
        d_in = input_dim if layer == 0 else 2 * hidden_dim
        dirs = []
        for _ in range(2):                            # forward, backward
            wih = jax.random.uniform(keys[idx], (4 * hidden_dim, d_in), minval=-k, maxval=k); idx += 1
            whh = jax.random.uniform(keys[idx], (4 * hidden_dim, hidden_dim), minval=-k, maxval=k); idx += 1
            bih = jax.random.uniform(keys[idx], (4 * hidden_dim,), minval=-k, maxval=k); idx += 1
            bhh = jax.random.uniform(keys[idx], (4 * hidden_dim,), minval=-k, maxval=k); idx += 1
            dirs.append((wih, whh, bih, bhh))
        params["lstm"].append(tuple(dirs))
    kk = 1.0 / float(2 * hidden_dim) ** 0.5
    params["affine_w"] = jax.random.uniform(keys[idx], (num_classes, 2 * hidden_dim), minval=-kk, maxval=kk); idx += 1
    params["affine_b"] = jax.random.uniform(keys[idx], (num_classes,), minval=-kk, maxval=kk)
    return params


# ----------------------------- pure-JAX reference for correctness -----------------------------
def _ref_lstm_dir(x, wih, whh, bih, bhh):
    T, B, _ = x.shape
    H = whh.shape[1]

    def step(carry, x_t):
        h, c = carry
        gates = x_t @ wih.T + h @ whh.T + bih + bhh
        i, f, g, o = jnp.split(gates, 4, axis=-1)
        i, f, o = jax.nn.sigmoid(i), jax.nn.sigmoid(f), jax.nn.sigmoid(o)
        g = jnp.tanh(g)
        c = f * c + i * g
        h = o * jnp.tanh(c)
        return (h, c), h

    _, hs = jax.lax.scan(step, (jnp.zeros((B, H)), jnp.zeros((B, H))), x)
    return hs


def reference_forward(x_btd, params):
    x = jnp.transpose(x_btd, (1, 0, 2))
    layer_in = x
    for (fwd, bwd) in params["lstm"]:
        h_f = _ref_lstm_dir(layer_in, *fwd)
        h_b = _ref_lstm_dir(layer_in[::-1], *bwd)[::-1]
        layer_in = jnp.concatenate([h_f, h_b], axis=-1)
    lo = jnp.transpose(layer_in, (1, 0, 2))
    scores = jnp.sum(lo * lo[:, -1:, :], axis=-1)
    sw = jax.nn.softmax(scores, axis=1)
    ctx = jnp.sum(lo * sw[:, :, None], axis=1)
    return ctx @ params["affine_w"].T + params["affine_b"]


if __name__ == "__main__":
    B, T, D_IN = 2, 8, 16
    HIDDEN, LAYERS, CLASSES = 32, 2, 5

    key = jax.random.PRNGKey(0)
    pkey, xkey = jax.random.split(key)
    params = init_params(pkey, D_IN, HIDDEN, LAYERS, CLASSES)
    x = jax.random.normal(xkey, (B, T, D_IN), dtype=jnp.float32)

    fwd_fn = jax.jit(lstm_attention_forward)
    logits = jax.block_until_ready(fwd_fn(x, params))

    ref = reference_forward(x, params)
    assert logits.shape == (B, CLASSES)
    assert jnp.allclose(logits, ref, atol=1e-4, rtol=1e-4), (logits, ref)
    print("KERNEL_OK")
</pallas_src>

<mosaic_0001>
module attributes {stable_mosaic.version = 11 : i64} {
  func.func @kernel(%arg0: memref<16x16xf32, #tpu.memory_space<vmem>>, %arg1: memref<16x16xf32, #tpu.memory_space<vmem>>, %arg2: memref<2x16x128xf32, #tpu.memory_space<vmem>>, %arg3: memref<2x1x128xf32, #tpu.memory_space<vmem>>, %arg4: memref<2x64x128xf32, #tpu.memory_space<vmem>>, %arg5: memref<2x1x128xf32, #tpu.memory_space<vmem>>, %arg6: memref<8x64x64xf32, #tpu.memory_space<vmem>>, %arg7: memref<64x5xf32, #tpu.memory_space<vmem>>, %arg8: memref<1x5xf32, #tpu.memory_space<vmem>>, %arg9: memref<2x5xf32, #tpu.memory_space<vmem>>) attributes {dimension_semantics = [], scalar_prefetch = 0 : i64, scratch_operands = 0 : i64, tpu.core_type = #tpu.core_type<tc>} {
    %c0 = arith.constant 0 : index
    %c0_0 = arith.constant 0 : index
    %0 = vector.load %arg0[%c0, %c0_0] : memref<16x16xf32, #tpu.memory_space<vmem>>, vector<16x16xf32>
    %c0_1 = arith.constant 0 : index
    %c0_2 = arith.constant 0 : index
    %1 = vector.load %arg1[%c0_1, %c0_2] : memref<16x16xf32, #tpu.memory_space<vmem>>, vector<16x16xf32>
    %c0_3 = arith.constant 0 : index
    %c0_4 = arith.constant 0 : index
    %c0_5 = arith.constant 0 : index
    %2 = vector.load %arg2[%c0_3, %c0_4, %c0_5] : memref<2x16x128xf32, #tpu.memory_space<vmem>>, vector<1x16x128xf32>
    %3 = vector.shape_cast %2 : vector<1x16x128xf32> to vector<16x128xf32>
    %cst = arith.constant dense<0.000000e+00> : vector<16x128xf32>
    %4 = tpu.matmul %0, %3, %cst {dimension_numbers = #tpu.dot_dimension_numbers<[1], [0], [0], [1], [0, 0, 1, 1], [], []>} : vector<16x16xf32>, vector<16x128xf32>, vector<16x128xf32> -> vector<16x128xf32>
    %c0_6 = arith.constant 0 : index
    %c0_7 = arith.constant 0 : index
    %c0_8 = arith.constant 0 : index
    %5 = vector.load %arg3[%c0_6, %c0_7, %c0_8] : memref<2x1x128xf32, #tpu.memory_space<vmem>>, vector<1x1x128xf32>
    %6 = vector.shape_cast %5 : vector<1x1x128xf32> to vector<1x128xf32>
    %7 = vector.broadcast %6 : vector<1x128xf32> to vector<16x128xf32>
    %8 = arith.addf %4, %7 : vector<16x128xf32>
    %c1 = arith.constant 1 : index
    %c0_9 = arith.constant 0 : index
    %c0_10 = arith.constant 0 : index
    %9 = vector.load %arg2[%c1, %c0_9, %c0_10] : memref<2x16x128xf32, #tpu.memory_space<vmem>>, vector<1x16x128xf32>
    %10 = vector.shape_cast %9 : vector<1x16x128xf32> to vector<16x128xf32>
    %cst_11 = arith.constant dense<0.000000e+00> : vector<16x128xf32>
    %11 = tpu.matmul %1, %10, %cst_11 {dimension_numbers = #tpu.dot_dimension_numbers<[1], [0], [0], [1], [0, 0, 1, 1], [], []>} : vector<16x16xf32>, vector<16x128xf32>, vector<16x128xf32> -> vector<16x128xf32>
    %c1_12 = arith.constant 1 : index
    %c0_13 = arith.constant 0 : index
    %c0_14 = arith.constant 0 : index
    %12 = vector.load %arg3[%c1_12, %c0_13, %c0_14] : memref<2x1x128xf32, #tpu.memory_space<vmem>>, vector<1x1x128xf32>
    %13 = vector.shape_cast %12 : vector<1x1x128xf32> to vector<1x128xf32>
    %14 = vector.broadcast %13 : vector<1x128xf32> to vector<16x128xf32>
    %15 = arith.addf %11, %14 : vector<16x128xf32>
    %16 = vector.extract_strided_slice %8 {offsets = [0, 0], sizes = [16, 32], strides = [1, 1]} : vector<16x128xf32> to vector<16x32xf32>
    %17 = vector.extract_strided_slice %15 {offsets = [0, 0], sizes = [16, 32], strides = [1, 1]} : vector<16x128xf32> to vector<16x32xf32>
    %18 = tpu.concatenate %16, %17 in 1 : vector<16x32xf32>, vector<16x32xf32> -> vector<16x64xf32>
    %19 = vector.extract_strided_slice %8 {offsets = [0, 32], sizes = [16, 32], strides = [1, 1]} : vector<16x128xf32> to vector<16x32xf32>
    %20 = vector.extract_strided_slice %15 {offsets = [0, 32], sizes = [16, 32], strides = [1, 1]} : vector<16x128xf32> to vector<16x32xf32>
    %21 = tpu.concatenate %19, %20 in 1 : vector<16x32xf32>, vector<16x32xf32> -> vector<16x64xf32>
    %22 = vector.extract_strided_slice %8 {offsets = [0, 64], sizes = [16, 32], strides = [1, 1]} : vector<16x128xf32> to vector<16x32xf32>
    %23 = vector.extract_strided_slice %15 {offsets = [0, 64], sizes = [16, 32], strides = [1, 1]} : vector<16x128xf32> to vector<16x32xf32>
    %24 = tpu.concatenate %22, %23 in 1 : vector<16x32xf32>, vector<16x32xf32> -> vector<16x64xf32>
    %25 = vector.extract_strided_slice %8 {offsets = [0, 96], sizes = [16, 32], strides = [1, 1]} : vector<16x128xf32> to vector<16x32xf32>
    %26 = vector.extract_strided_slice %15 {offsets = [0, 96], sizes = [16, 32], strides = [1, 1]} : vector<16x128xf32> to vector<16x32xf32>
    %27 = tpu.concatenate %25, %26 in 1 : vector<16x32xf32>, vector<16x32xf32> -> vector<16x64xf32>
    %cst_15 = arith.constant 0.000000e+00 : f32
    %28 = vector.broadcast %cst_15 : f32 to vector<2x64xf32>
    %cst_16 = arith.constant 0.000000e+00 : f32
    %29 = vector.broadcast %cst_16 : f32 to vector<2x64xf32>
    %30 = vector.extract_strided_slice %18 {offsets = [0, 0], sizes = [2, 64], strides = [1, 1]} : vector<16x64xf32> to vector<2x64xf32>
    %c0_17 = arith.constant 0 : index
    %c0_18 = arith.constant 0 : index
    %c0_19 = arith.constant 0 : index
    %31 = vector.load %arg6[%c0_17, %c0_18, %c0_19] : memref<8x64x64xf32, #tpu.memory_space<vmem>>, vector<1x64x64xf32>
    %32 = vector.shape_cast %31 : vector<1x64x64xf32> to vector<64x64xf32>
    %cst_20 = arith.constant dense<0.000000e+00> : vector<2x64xf32>
    %33 = tpu.matmul %28, %32, %cst_20 {dimension_numbers = #tpu.dot_dimension_numbers<[1], [0], [0], [1], [0, 0, 1, 1], [], []>} : vector<2x64xf32>, vector<64x64xf32>, vector<2x64xf32> -> vector<2x64xf32>
    %34 = arith.addf %30, %33 : vector<2x64xf32>
    %35 = arith.negf %34 : vector<2x64xf32>
    %36 = math.exp %35 : vector<2x64xf32>
    %cst_21 = arith.constant 1.000000e+00 : f32
    %37 = vector.broadcast %cst_21 : f32 to vector<2x64xf32>
    %38 = arith.addf %37, %36 : vector<2x64xf32>
    %39 = arith.divf %37, %38 : vector<2x64xf32>
    %40 = vector.extract_strided_slice %21 {offsets = [0, 0], sizes = [2, 64], strides = [1, 1]} : vector<16x64xf32> to vector<2x64xf32>
    %c1_22 = arith.constant 1 : index
    %c0_23 = arith.constant 0 : index
    %c0_24 = arith.constant 0 : index
    %41 = vector.load %arg6[%c1_22, %c0_23, %c0_24] : memref<8x64x64xf32, #tpu.memory_space<vmem>>, vector<1x64x64xf32>
    %42 = vector.shape_cast %41 : vector<1x64x64xf32> to vector<64x64xf32>
    %cst_25 = arith.constant dense<0.000000e+00> : vector<2x64xf32>
    %43 = tpu.matmul %28, %42, %cst_25 {dimension_numbers = #tpu.dot_dimension_numbers<[1], [0], [0], [1], [0, 0, 1, 1], [], []>} : vector<2x64xf32>, vector<64x64xf32>, vector<2x64xf32> -> vector<2x64xf32>
    %44 = arith.addf %40, %43 : vector<2x64xf32>
    %45 = arith.negf %44 : vector<2x64xf32>
    %46 = math.exp %45 : vector<2x64xf32>
    %cst_26 = arith.constant 1.000000e+00 : f32
    %47 = vector.broadcast %cst_26 : f32 to vector<2x64xf32>
    %48 = arith.addf %47, %46 : vector<2x64xf32>
    %49 = arith.divf %47, %48 : vector<2x64xf32>
    %50 = vector.extract_strided_slice %24 {offsets = [0, 0], sizes = [2, 64], strides = [1, 1]} : vector<16x64xf32> to vector<2x64xf32>
    %c2 = arith.constant 2 : index
    %c0_27 = arith.constant 0 : index
    %c0_28 = arith.constant 0 : index
    %51 = vector.load %arg6[%c2, %c0_27, %c0_28] : memref<8x64x64xf32, #tpu.memory_space<vmem>>, vector<1x64x64xf32>
    %52 = vector.shape_cast %51 : vector<1x64x64xf32> to vector<64x64xf32>
    %cst_29 = arith.constant dense<0.000000e+00> : vector<2x64xf32>
    %53 = tpu.matmul %28, %52, %cst_29 {dimension_numbers = #tpu.dot_dimension_numbers<[1], [0], [0], [1], [0, 0, 1, 1], [], []>} : vector<2x64xf32>, vector<64x64xf32>, vector<2x64xf32> -> vector<2x64xf32>
    %54 = arith.addf %50, %53 : vector<2x64xf32>
    %55 = math.tanh %54 : vector<2x64xf32>
    %56 = vector.extract_strided_slice %27 {offsets = [0, 0], sizes = [2, 64], strides = [1, 1]} : vector<16x64xf32> to vector<2x64xf32>
    %c3 = arith.constant 3 : index
    %c0_30 = arith.constant 0 : index
    %c0_31 = arith.constant 0 : index
    %57 = vector.load %arg6[%c3, %c0_30, %c0_31] : memref<8x64x64xf32, #tpu.memory_space<vmem>>, vector<1x64x64xf32>
    %58 = vector.shape_cast %57 : vector<1x64x64xf32> to vector<64x64xf32>
    %cst_32 = arith.constant dense<0.000000e+00> : vector<2x64xf32>
    %59 = tpu.matmul %28, %58, %cst_32 {dimension_numbers = #tpu.dot_dimension_numbers<[1], [0], [0], [1], [0, 0, 1, 1], [], []>} : vector<2x64xf32>, vector<64x64xf32>, vector<2x64xf32> -> vector<2x64xf32>
    %60 = arith.addf %56, %59 : vector<2x64xf32>
    %61 = arith.negf %60 : vector<2x64xf32>
    %62 = math.exp %61 : vector<2x64xf32>
    %cst_33 = arith.constant 1.000000e+00 : f32
    %63 = vector.broadcast %cst_33 : f32 to vector<2x64xf32>
    %64 = arith.addf %63, %62 : vector<2x64xf32>
    %65 = arith.divf %63, %64 : vector<2x64xf32>
    %66 = arith.mulf %49, %29 : vector<2x64xf32>
    %67 = arith.mulf %39, %55 : vector<2x64xf32>
    %68 = arith.addf %66, %67 : vector<2x64xf32>
    %69 = math.tanh %68 : vector<2x64xf32>
    %70 = arith.mulf %65, %69 : vector<2x64xf32>
    %71 = vector.extract_strided_slice %18 {offsets = [2, 0], sizes = [2, 64], strides = [1, 1]} : vector<16x64xf32> to vector<2x64xf32>
    %c0_34 = arith.constant 0 : index
    %c0_35 = arith.constant 0 : index
    %c0_36 = arith.constant 0 : index
    %72 = vector.load %arg6[%c0_34, %c0_35, %c0_36] : memref<8x64x64xf32, #tpu.memory_space<vmem>>, vector<1x64x64xf32>
    %73 = vector.shape_cast %72 : vector<1x64x64xf32> to vector<64x64xf32>
    %cst_37 = arith.constant dense<0.000000e+00> : vector<2x64xf32>
    %74 = tpu.matmul %70, %73, %cst_37 {dimension_numbers = #tpu.dot_dimension_numbers<[1], [0], [0], [1], [0, 0, 1, 1], [], []>} : vector<2x64xf32>, vector<64x64xf32>, vector<2x64xf32> -> vector<2x64xf32>
    %75 = arith.addf %71, %74 : vector<2x64xf32>
    %76 = arith.negf %75 : vector<2x64xf32>
    %77 = math.exp %76 : vector<2x64xf32>
    %cst_38 = arith.constant 1.000000e+00 : f32
    %78 = vector.broadcast %cst_38 : f32 to vector<2x64xf32>
    %79 = arith.addf %78, %77 : vector<2x64xf32>
    %80 = arith.divf %78, %79 : vector<2x64xf32>
    %81 = vector.extract_strided_slice %21 {offsets = [2, 0], sizes = [2, 64], strides = [1, 1]} : vector<16x64xf32> to vector<2x64xf32>
    %c1_39 = arith.constant 1 : index
    %c0_40 = arith.constant 0 : index
    %c0_41 = arith.constant 0 : index
    %82 = vector.load %arg6[%c1_39, %c0_40, %c0_41] : memref<8x64x64xf32, #tpu.memory_space<vmem>>, vector<1x64x64xf32>
    %83 = vector.shape_cast %82 : vector<1x64x64xf32> to vector<64x64xf32>
    %cst_42 = arith.constant dense<0.000000e+00> : vector<2x64xf32>
    %84 = tpu.matmul %70, %83, %cst_42 {dimension_numbers = #tpu.dot_dimension_numbers<[1], [0], [0], [1], [0, 0, 1, 1], [], []>} : vector<2x64xf32>, vector<64x64xf32>, vector<2x64xf32> -> vector<2x64xf32>
    %85 = arith.addf %81, %84 : vector<2x64xf32>
    %86 = arith.negf %85 : vector<2x64xf32>
    %87 = math.exp %86 : vector<2x64xf32>
    %cst_43 = arith.constant 1.000000e+00 : f32
    %88 = vector.broadcast %cst_43 : f32 to vector<2x64xf32>
    %89 = arith.addf %88, %87 : vector<2x64xf32>
    %90 = arith.divf %88, %89 : vector<2x64xf32>
    %91 = vector.extract_strided_slice %24 {offsets = [2, 0], sizes = [2, 64], strides = [1, 1]} : vector<16x64xf32> to vector<2x64xf32>
    %c2_44 = arith.constant 2 : index
    %c0_45 = arith.constant 0 : index
    %c0_46 = arith.constant 0 : index
    %92 = vector.load %arg6[%c2_44, %c0_45, %c0_46] : memref<8x64x64xf32, #tpu.memory_space<vmem>>, vector<1x64x64xf32>
    %93 = vector.shape_cast %92 : vector<1x64x64xf32> to vector<64x64xf32>
    %cst_47 = arith.constant dense<0.000000e+00> : vector<2x64xf32>
    %94 = tpu.matmul %70, %93, %cst_47 {dimension_numbers = #tpu.dot_dimension_numbers<[1], [0], [0], [1], [0, 0, 1, 1], [], []>} : vector<2x64xf32>, vector<64x64xf32>, vector<2x64xf32> -> vector<2x64xf32>
    %95 = arith.addf %91, %94 : vector<2x64xf32>
    %96 = math.tanh %95 : vector<2x64xf32>
    %97 = vector.extract_strided_slice %27 {offsets = [2, 0], sizes = [2, 64], strides = [1, 1]} : vector<16x64xf32> to vector<2x64xf32>
    %c3_48 = arith.constant 3 : index
    %c0_49 = arith.constant 0 : index
    %c0_50 = arith.constant 0 : index
    %98 = vector.load %arg6[%c3_48, %c0_49, %c0_50] : memref<8x64x64xf32, #tpu.memory_space<vmem>>, vector<1x64x64xf32>
    %99 = vector.shape_cast %98 : vector<1x64x64xf32> to vector<64x64xf32>
    %cst_51 = arith.constant dense<0.000000e+00> : vector<2x64xf32>
    %100 = tpu.matmul %70, %99, %cst_51 {dimension_numbers = #tpu.dot_dimension_numbers<[1], [0], [0], [1], [0, 0, 1, 1], [], []>} : vector<2x64xf32>, vector<64x64xf32>, vector<2x64xf32> -> vector<2x64xf32>
    %101 = arith.addf %97, %100 : vector<2x64xf32>
    %102 = arith.negf %101 : vector<2x64xf32>
    %103 = math.exp %102 : vector<2x64xf32>
    %cst_52 = arith.constant 1.000000e+00 : f32
    %104 = vector.broadcast %cst_52 : f32 to vector<2x64xf32>
    %105 = arith.addf %104, %103 : vector<2x64xf32>
    %106 = arith.divf %104, %105 : vector<2x64xf32>
    %107 = arith.mulf %90, %68 : vector<2x64xf32>
    %108 = arith.mulf %80, %96 : vector<2x64xf32>
    %109 = arith.addf %107, %108 : vector<2x64xf32>
    %110 = math.tanh %109 : vector<2x64xf32>
    %111 = arith.mulf %106, %110 : vector<2x64xf32>
    %112 = vector.extract_strided_slice %18 {offsets = [4, 0], sizes = [2, 64], strides = [1, 1]} : vector<16x64xf32> to vector<2x64xf32>
    %c0_53 = arith.constant 0 : index
    %c0_54 = arith.constant 0 : index
    %c0_55 = arith.constant 0 : index
    %113 = vector.load %arg6[%c0_53, %c0_54, %c0_55] : memref<8x64x64xf32, #tpu.memory_space<vmem>>, vector<1x64x64xf32>
    %114 = vector.shape_cast %113 : vector<1x64x64xf32> to vector<64x64xf32>
    %cst_56 = arith.constant dense<0.000000e+00> : vector<2x64xf32>
    %115 = tpu.matmul %111, %114, %cst_56 {dimension_numbers = #tpu.dot_dimension_numbers<[1], [0], [0], [1], [0, 0, 1, 1], [], []>} : vector<2x64xf32>, vector<64x64xf32>, vector<2x64xf32> -> vector<2x64xf32>
    %116 = arith.addf %112, %115 : vector<2x64xf32>
    %117 = arith.negf %116 : vector<2x64xf32>
    %118 = math.exp %117 : vector<2x64xf32>
    %cst_57 = arith.constant 1.000000e+00 : f32
    %119 = vector.broadcast %cst_57 : f32 to vector<2x64xf32>
    %120 = arith.addf %119, %118 : vector<2x64xf32>
    %121 = arith.divf %119, %120 : vector<2x64xf32>
    %122 = vector.extract_strided_slice %21 {offsets = [4, 0], sizes = [2, 64], strides = [1, 1]} : vector<16x64xf32> to vector<2x64xf32>
    %c1_58 = arith.constant 1 : index
    %c0_59 = arith.constant 0 : index
    %c0_60 = arith.constant 0 : index
    %123 = vector.load %arg6[%c1_58, %c0_59, %c0_60] : memref<8x64x64xf32, #tpu.memory_space<vmem>>, vector<1x64x64xf32>
    %124 = vector.shape_cast %123 : vector<1x64x64xf32> to vector<64x64xf32>
    %cst_61 = arith.constant dense<0.000000e+00> : vector<2x64xf32>
    %125 = tpu.matmul %111, %124, %cst_61 {dimension_numbers = #tpu.dot_dimension_numbers<[1], [0], [0], [1], [0, 0, 1, 1], [], []>} : vector<2x64xf32>, vector<64x64xf32>, vector<2x64xf32> -> vector<2x64xf32>
    %126 = arith.addf %122, %125 : vector<2x64xf32>
    %127 = arith.negf %126 : vector<2x64xf32>
    %128 = math.exp %127 : vector<2x64xf32>
    %cst_62 = arith.constant 1.000000e+00 : f32
    %129 = vector.broadcast %cst_62 : f32 to vector<2x64xf32>
    %130 = arith.addf %129, %128 : vector<2x64xf32>
    %131 = arith.divf %129, %130 : vector<2x64xf32>
    %132 = vector.extract_strided_slice %24 {offsets = [4, 0], sizes = [2, 64], strides = [1, 1]} : vector<16x64xf32> to vector<2x64xf32>
    %c2_63 = arith.constant 2 : index
    %c0_64 = arith.constant 0 : index
    %c0_65 = arith.constant 0 : index
    %133 = vector.load %arg6[%c2_63, %c0_64, %c0_65] : memref<8x64x64xf32, #tpu.memory_space<vmem>>, vector<1x64x64xf32>
    %134 = vector.shape_cast %133 : vector<1x64x64xf32> to vector<64x64xf32>
    %cst_66 = arith.constant dense<0.000000e+00> : vector<2x64xf32>
    %135 = tpu.matmul %111, %134, %cst_66 {dimension_numbers = #tpu.dot_dimension_numbers<[1], [0], [0], [1], [0, 0, 1, 1], [], []>} : vector<2x64xf32>, vector<64x64xf32>, vector<2x64xf32> -> vector<2x64xf32>
    %136 = arith.addf %132, %135 : vector<2x64xf32>
    %137 = math.tanh %136 : vector<2x64xf32>
    %138 = vector.extract_strided_slice %27 {offsets = [4, 0], sizes = [2, 64], strides = [1, 1]} : vector<16x64xf32> to vector<2x64xf32>
    %c3_67 = arith.constant 3 : index
    %c0_68 = arith.constant 0 : index
    %c0_69 = arith.constant 0 : index
    %139 = vector.load %arg6[%c3_67, %c0_68, %c0_69] : memref<8x64x64xf32, #tpu.memory_space<vmem>>, vector<1x64x64xf32>
    %140 = vector.shape_cast %139 : vector<1x64x64xf32> to vector<64x64xf32>
    %cst_70 = arith.constant dense<0.000000e+00> : vector<2x64xf32>
    %141 = tpu.matmul %111, %140, %cst_70 {dimension_numbers = #tpu.dot_dimension_numbers<[1], [0], [0], [1], [0, 0, 1, 1], [], []>} : vector<2x64xf32>, vector<64x64xf32>, vector<2x64xf32> -> vector<2x64xf32>
    %142 = arith.addf %138, %141 : vector<2x64xf32>
    %143 = arith.negf %142 : vector<2x64xf32>
    %144 = math.exp %143 : vector<2x64xf32>
    %cst_71 = arith.constant 1.000000e+00 : f32
    %145 = vector.broadcast %cst_71 : f32 to vector<2x64xf32>
    %146 = arith.addf %145, %144 : vector<2x64xf32>
    %147 = arith.divf %145, %146 : vector<2x64xf32>
    %148 = arith.mulf %131, %109 : vector<2x64xf32>
    %149 = arith.mulf %121, %137 : vector<2x64xf32>
    %150 = arith.addf %148, %149 : vector<2x64xf32>
    %151 = math.tanh %150 : vector<2x64xf32>
    %152 = arith.mulf %147, %151 : vector<2x64xf32>
    %153 = vector.extract_strided_slice %18 {offsets = [6, 0], sizes = [2, 64], strides = [1, 1]} : vector<16x64xf32> to vector<2x64xf32>
    %c0_72 = arith.constant 0 : index
    %c0_73 = arith.constant 0 : index
    %c0_74 = arith.constant 0 : index
    %154 = vector.load %arg6[%c0_72, %c0_73, %c0_74] : memref<8x64x64xf32, #tpu.memory_space<vmem>>, vector<1x64x64xf32>
    %155 = vector.shape_cast %154 : vector<1x64x64xf32> to vector<64x64xf32>
    %cst_75 = arith.constant dense<0.000000e+00> : vector<2x64xf32>
    %156 = tpu.matmul %152, %155, %cst_75 {dimension_numbers = #tpu.dot_dimension_numbers<[1], [0], [0], [1], [0, 0, 1, 1], [], []>} : vector<2x64xf32>, vector<64x64xf32>, vector<2x64xf32> -> vector<2x64xf32>
    %157 = arith.addf %153, %156 : vector<2x64xf32>
    %158 = arith.negf %157 : vector<2x64xf32>
    %159 = math.exp %158 : vector<2x64xf32>
    %cst_76 = arith.constant 1.000000e+00 : f32
    %160 = vector.broadcast %cst_76 : f32 to vector<2x64xf32>
    %161 = arith.addf %160, %159 : vector<2x64xf32>
    %162 = arith.divf %160, %161 : vector<2x64xf32>
    %163 = vector.extract_strided_slice %21 {offsets = [6, 0], sizes = [2, 64], strides = [1, 1]} : vector<16x64xf32> to vector<2x64xf32>
    %c1_77 = arith.constant 1 : index
    %c0_78 = arith.constant 0 : index
    %c0_79 = arith.constant 0 : index
    %164 = vector.load %arg6[%c1_77, %c0_78, %c0_79] : memref<8x64x64xf32, #tpu.memory_space<vmem>>, vector<1x64x64xf32>
    %165 = vector.shape_cast %164 : vector<1x64x64xf32> to vector<64x64xf32>
    %cst_80 = arith.constant dense<0.000000e+00> : vector<2x64xf32>
    %166 = tpu.matmul %152, %165, %cst_80 {dimension_numbers = #tpu.dot_dimension_numbers<[1], [0], [0], [1], [0, 0, 1, 1], [], []>} : vector<2x64xf32>, vector<64x64xf32>, vector<2x64xf32> -> vector<2x64xf32>
    %167 = arith.addf %163, %166 : vector<2x64xf32>
    %168 = arith.negf %167 : vector<2x64xf32>
    %169 = math.exp %168 : vector<2x64xf32>
    %cst_81 = arith.constant 1.000000e+00 : f32
    %170 = vector.broadcast %cst_81 : f32 to vector<2x64xf32>
    %171 = arith.addf %170, %169 : vector<2x64xf32>
    %172 = arith.divf %170, %171 : vector<2x64xf32>
    %173 = vector.extract_strided_slice %24 {offsets = [6, 0], sizes = [2, 64], strides = [1, 1]} : vector<16x64xf32> to vector<2x64xf32>
    %c2_82 = arith.constant 2 : index
    %c0_83 = arith.constant 0 : index
    %c0_84 = arith.constant 0 : index
    %174 = vector.load %arg6[%c2_82, %c0_83, %c0_84] : memref<8x64x64xf32, #tpu.memory_space<vmem>>, vector<1x64x64xf32>
    %175 = vector.shape_cast %174 : vector<1x64x64xf32> to vector<64x64xf32>
    %cst_85 = arith.constant dense<0.000000e+00> : vector<2x64xf32>
    %176 = tpu.matmul %152, %175, %cst_85 {dimension_numbers = #tpu.dot_dimension_numbers<[1], [0], [0], [1], [0, 0, 1, 1], [], []>} : vector<2x64xf32>, vector<64x64xf32>, vector<2x64xf32> -> vector<2x64xf32>
    %177 = arith.addf %173, %176 : vector<2x64xf32>
    %178 = math.tanh %177 : vector<2x64xf32>
    %179 = vector.extract_strided_slice %27 {offsets = [6, 0], sizes = [2, 64], strides = [1, 1]} : vector<16x64xf32> to vector<2x64xf32>
    %c3_86 = arith.constant 3 : index
    %c0_87 = arith.constant 0 : index
    %c0_88 = arith.constant 0 : index
    %180 = vector.load %arg6[%c3_86, %c0_87, %c0_88] : memref<8x64x64xf32, #tpu.memory_space<vmem>>, vector<1x64x64xf32>
    %181 = vector.shape_cast %180 : vector<1x64x64xf32> to vector<64x64xf32>
    %cst_89 = arith.constant dense<0.000000e+00> : vector<2x64xf32>
    %182 = tpu.matmul %152, %181, %cst_89 {dimension_numbers = #tpu.dot_dimension_numbers<[1], [0], [0], [1], [0, 0, 1, 1], [], []>} : vector<2x64xf32>, vector<64x64xf32>, vector<2x64xf32> -> vector<2x64xf32>
    %183 = arith.addf %179, %182 : vector<2x64xf32>
    %184 = arith.negf %183 : vector<2x64xf32>
    %185 = math.exp %184 : vector<2x64xf32>
    %cst_90 = arith.constant 1.000000e+00 : f32
    %186 = vector.broadcast %cst_90 : f32 to vector<2x64xf32>
    %187 = arith.addf %186, %185 : vector<2x64xf32>
    %188 = arith.divf %186, %187 : vector<2x64xf32>
    %189 = arith.mulf %172, %150 : vector<2x64xf32>
    %190 = arith.mulf %162, %178 : vector<2x64xf32>
    %191 = arith.addf %189, %190 : vector<2x64xf32>
    %192 = math.tanh %191 : vector<2x64xf32>
    %193 = arith.mulf %188, %192 : vector<2x64xf32>
    %194 = vector.extract_strided_slice %18 {offsets = [8, 0], sizes = [2, 64], strides = [1, 1]} : vector<16x64xf32> to vector<2x64xf32>
    %c0_91 = arith.constant 0 : index
    %c0_92 = arith.constant 0 : index
    %c0_93 = arith.constant 0 : index
    %195 = vector.load %arg6[%c0_91, %c0_92, %c0_93] : memref<8x64x64xf32, #tpu.memory_space<vmem>>, vector<1x64x64xf32>
    %196 = vector.shape_cast %195 : vector<1x64x64xf32> to vector<64x64xf32>
    %cst_94 = arith.constant dense<0.000000e+00> : vector<2x64xf32>
    %197 = tpu.matmul %193, %196, %cst_94 {dimension_numbers = #tpu.dot_dimension_numbers<[1], [0], [0], [1], [0, 0, 1, 1], [], []>} : vector<2x64xf32>, vector<64x64xf32>, vector<2x64xf32> -> vector<2x64xf32>
    %198 = arith.addf %194, %197 : vector<2x64xf32>
    %199 = arith.negf %198 : vector<2x64xf32>
    %200 = math.exp %199 : vector<2x64xf32>
    %cst_95 = arith.constant 1.000000e+00 : f32
    %201 = vector.broadcast %cst_95 : f32 to vector<2x64xf32>
    %202 = arith.addf %201, %200 : vector<2x64xf32>
    %203 = arith.divf %201, %202 : vector<2x64xf32>
    %204 = vector.extract_strided_slice %21 {offsets = [8, 0], sizes = [2, 64], strides = [1, 1]} : vector<16x64xf32> to vector<2x64xf32>
    %c1_96 = arith.constant 1 : index
    %c0_97 = arith.constant 0 : index
    %c0_98 = arith.constant 0 : index
    %205 = vector.load %arg6[%c1_96, %c0_97, %c0_98] : memref<8x64x64xf32, #tpu.memory_space<vmem>>, vector<1x64x64xf32>
    %206 = vector.shape_cast %205 : vector<1x64x64xf32> to vector<64x64xf32>
    %cst_99 = arith.constant dense<0.000000e+00> : vector<2x64xf32>
    %207 = tpu.matmul %193, %206, %cst_99 {dimension_numbers = #tpu.dot_dimension_numbers<[1], [0], [0], [1], [0, 0, 1, 1], [], []>} : vector<2x64xf32>, vector<64x64xf32>, vector<2x64xf32> -> vector<2x64xf32>
    %208 = arith.addf %204, %207 : vector<2x64xf32>
    %209 = arith.negf %208 : vector<2x64xf32>
    %210 = math.exp %209 : vector<2x64xf32>
    %cst_100 = arith.constant 1.000000e+00 : f32
    %211 = vector.broadcast %cst_100 : f32 to vector<2x64xf32>
    %212 = arith.addf %211, %210 : vector<2x64xf32>
    %213 = arith.divf %211, %212 : vector<2x64xf32>
    %214 = vector.extract_strided_slice %24 {offsets = [8, 0], sizes = [2, 64], strides = [1, 1]} : vector<16x64xf32> to vector<2x64xf32>
    %c2_101 = arith.constant 2 : index
    %c0_102 = arith.constant 0 : index
    %c0_103 = arith.constant 0 : index
    %215 = vector.load %arg6[%c2_101, %c0_102, %c0_103] : memref<8x64x64xf32, #tpu.memory_space<vmem>>, vector<1x64x64xf32>
    %216 = vector.shape_cast %215 : vector<1x64x64xf32> to vector<64x64xf32>
    %cst_104 = arith.constant dense<0.000000e+00> : vector<2x64xf32>
    %217 = tpu.matmul %193, %216, %cst_104 {dimension_numbers = #tpu.dot_dimension_numbers<[1], [0], [0], [1], [0, 0, 1, 1], [], []>} : vector<2x64xf32>, vector<64x64xf32>, vector<2x64xf32> -> vector<2x64xf32>
    %218 = arith.addf %214, %217 : vector<2x64xf32>
    %219 = math.tanh %218 : vector<2x64xf32>
    %220 = vector.extract_strided_slice %27 {offsets = [8, 0], sizes = [2, 64], strides = [1, 1]} : vector<16x64xf32> to vector<2x64xf32>
    %c3_105 = arith.constant 3 : index
    %c0_106 = arith.constant 0 : index
    %c0_107 = arith.constant 0 : index
    %221 = vector.load %arg6[%c3_105, %c0_106, %c0_107] : memref<8x64x64xf32, #tpu.memory_space<vmem>>, vector<1x64x64xf32>
    %222 = vector.shape_cast %221 : vector<1x64x64xf32> to vector<64x64xf32>
    %cst_108 = arith.constant dense<0.000000e+00> : vector<2x64xf32>
    %223 = tpu.matmul %193, %222, %cst_108 {dimension_numbers = #tpu.dot_dimension_numbers<[1], [0], [0], [1], [0, 0, 1, 1], [], []>} : vector<2x64xf32>, vector<64x64xf32>, vector<2x64xf32> -> vector<2x64xf32>
    %224 = arith.addf %220, %223 : vector<2x64xf32>
    %225 = arith.negf %224 : vector<2x64xf32>
    %226 = math.exp %225 : vector<2x64xf32>
    %cst_109 = arith.constant 1.000000e+00 : f32
    %227 = vector.broadcast %cst_109 : f32 to vector<2x64xf32>
    %228 = arith.addf %227, %226 : vector<2x64xf32>
    %229 = arith.divf %227, %228 : vector<2x64xf32>
    %230 = arith.mulf %213, %191 : vector<2x64xf32>
    %231 = arith.mulf %203, %219 : vector<2x64xf32>
    %232 = arith.addf %230, %231 : vector<2x64xf32>
    %233 = math.tanh %232 : vector<2x64xf32>
    %234 = arith.mulf %229, %233 : vector<2x64xf32>
    %235 = vector.extract_strided_slice %18 {offsets = [10, 0], sizes = [2, 64], strides = [1, 1]} : vector<16x64xf32> to vector<2x64xf32>
    %c0_110 = arith.constant 0 : index
    %c0_111 = arith.constant 0 : index
    %c0_112 = arith.constant 0 : index
    %236 = vector.load %arg6[%c0_110, %c0_111, %c0_112] : memref<8x64x64xf32, #tpu.memory_space<vmem>>, vector<1x64x64xf32>
    %237 = vector.shape_cast %236 : vector<1x64x64xf32> to vector<64x64xf32>
    %cst_113 = arith.constant dense<0.000000e+00> : vector<2x64xf32>
    %238 = tpu.matmul %234, %237, %cst_113 {dimension_numbers = #tpu.dot_dimension_numbers<[1], [0], [0], [1], [0, 0, 1, 1], [], []>} : vector<2x64xf32>, vector<64x64xf32>, vector<2x64xf32> -> vector<2x64xf32>
    %239 = arith.addf %235, %238 : vector<2x64xf32>
    %240 = arith.negf %239 : vector<2x64xf32>
    %241 = math.exp %240 : vector<2x64xf32>
    %cst_114 = arith.constant 1.000000e+00 : f32
    %242 = vector.broadcast %cst_114 : f32 to vector<2x64xf32>
    %243 = arith.addf %242, %241 : vector<2x64xf32>
    %244 = arith.divf %242, %243 : vector<2x64xf32>
    %245 = vector.extract_strided_slice %21 {offsets = [10, 0], sizes = [2, 64], strides = [1, 1]} : vector<16x64xf32> to vector<2x64xf32>
    %c1_115 = arith.constant 1 : index
    %c0_116 = arith.constant 0 : index
    %c0_117 = arith.constant 0 : index
    %246 = vector.load %arg6[%c1_115, %c0_116, %c0_117] : memref<8x64x64xf32, #tpu.memory_space<vmem>>, vector<1x64x64xf32>
    %247 = vector.shape_cast %246 : vector<1x64x64xf32> to vector<64x64xf32>
    %cst_118 = arith.constant dense<0.000000e+00> : vector<2x64xf32>
    %248 = tpu.matmul %234, %247, %cst_118 {dimension_numbers = #tpu.dot_dimension_numbers<[1], [0], [0], [1], [0, 0, 1, 1], [], []>} : vector<2x64xf32>, vector<64x64xf32>, vector<2x64xf32> -> vector<2x64xf32>
    %249 = arith.addf %245, %248 : vector<2x64xf32>
    %250 = arith.negf %249 : vector<2x64xf32>
    %251 = math.exp %250 : vector<2x64xf32>
    %cst_119 = arith.constant 1.000000e+00 : f32
    %252 = vector.broadcast %cst_119 : f32 to vector<2x64xf32>
    %253 = arith.addf %252, %251 : vector<2x64xf32>
    %254 = arith.divf %252, %253 : vector<2x64xf32>
    %255 = vector.extract_strided_slice %24 {offsets = [10, 0], sizes = [2, 64], strides = [1, 1]} : vector<16x64xf32> to vector<2x64xf32>
    %c2_120 = arith.constant 2 : index
    %c0_121 = arith.constant 0 : index
    %c0_122 = arith.constant 0 : index
    %256 = vector.load %arg6[%c2_120, %c0_121, %c0_122] : memref<8x64x64xf32, #tpu.memory_space<vmem>>, vector<1x64x64xf32>
    %257 = vector.shape_cast %256 : vector<1x64x64xf32> to vector<64x64xf32>
    %cst_123 = arith.constant dense<0.000000e+00> : vector<2x64xf32>
    %258 = tpu.matmul %234, %257, %cst_123 {dimension_numbers = #tpu.dot_dimension_numbers<[1], [0], [0], [1], [0, 0, 1, 1], [], []>} : vector<2x64xf32>, vector<64x64xf32>, vector<2x64xf32> -> vector<2x64xf32>
    %259 = arith.addf %255, %258 : vector<2x64xf32>
    %260 = math.tanh %259 : vector<2x64xf32>
    %261 = vector.extract_strided_slice %27 {offsets = [10, 0], sizes = [2, 64], strides = [1, 1]} : vector<16x64xf32> to vector<2x64xf32>
    %c3_124 = arith.constant 3 : index
    %c0_125 = arith.constant 0 : index
    %c0_126 = arith.constant 0 : index
    %262 = vector.load %arg6[%c3_124, %c0_125, %c0_126] : memref<8x64x64xf32, #tpu.memory_space<vmem>>, vector<1x64x64xf32>
    %263 = vector.shape_cast %262 : vector<1x64x64xf32> to vector<64x64xf32>
    %cst_127 = arith.constant dense<0.000000e+00> : vector<2x64xf32>
    %264 = tpu.matmul %234, %263, %cst_127 {dimension_numbers = #tpu.dot_dimension_numbers<[1], [0], [0], [1], [0, 0, 1, 1], [], []>} : vector<2x64xf32>, vector<64x64xf32>, vector<2x64xf32> -> vector<2x64xf32>
    %265 = arith.addf %261, %264 : vector<2x64xf32>
    %266 = arith.negf %265 : vector<2x64xf32>
    %267 = math.exp %266 : vector<2x64xf32>
    %cst_128 = arith.constant 1.000000e+00 : f32
    %268 = vector.broadcast %cst_128 : f32 to vector<2x64xf32>
    %269 = arith.addf %268, %267 : vector<2x64xf32>
    %270 = arith.divf %268, %269 : vector<2x64xf32>
    %271 = arith.mulf %254, %232 : vector<2x64xf32>
    %272 = arith.mulf %244, %260 : vector<2x64xf32>
    %273 = arith.addf %271, %272 : vector<2x64xf32>
    %274 = math.tanh %273 : vector<2x64xf32>
    %275 = arith.mulf %270, %274 : vector<2x64xf32>
    %276 = vector.extract_strided_slice %18 {offsets = [12, 0], sizes = [2, 64], strides = [1, 1]} : vector<16x64xf32> to vector<2x64xf32>
    %c0_129 = arith.constant 0 : index
    %c0_130 = arith.constant 0 : index
    %c0_131 = arith.constant 0 : index
    %277 = vector.load %arg6[%c0_129, %c0_130, %c0_131] : memref<8x64x64xf32, #tpu.memory_space<vmem>>, vector<1x64x64xf32>
    %278 = vector.shape_cast %277 : vector<1x64x64xf32> to vector<64x64xf32>
    %cst_132 = arith.constant dense<0.000000e+00> : vector<2x64xf32>
    %279 = tpu.matmul %275, %278, %cst_132 {dimension_numbers = #tpu.dot_dimension_numbers<[1], [0], [0], [1], [0, 0, 1, 1], [], []>} : vector<2x64xf32>, vector<64x64xf32>, vector<2x64xf32> -> vector<2x64xf32>
    %280 = arith.addf %276, %279 : vector<2x64xf32>
    %281 = arith.negf %280 : vector<2x64xf32>
    %282 = math.exp %281 : vector<2x64xf32>
    %cst_133 = arith.constant 1.000000e+00 : f32
    %283 = vector.broadcast %cst_133 : f32 to vector<2x64xf32>
    %284 = arith.addf %283, %282 : vector<2x64xf32>
    %285 = arith.divf %283, %284 : vector<2x64xf32>
    %286 = vector.extract_strided_slice %21 {offsets = [12, 0], sizes = [2, 64], strides = [1, 1]} : vector<16x64xf32> to vector<2x64xf32>
    %c1_134 = arith.constant 1 : index
    %c0_135 = arith.constant 0 : index
    %c0_136 = arith.constant 0 : index
    %287 = vector.load %arg6[%c1_134, %c0_135, %c0_136] : memref<8x64x64xf32, #tpu.memory_space<vmem>>, vector<1x64x64xf32>
    %288 = vector.shape_cast %287 : vector<1x64x64xf32> to vector<64x64xf32>
    %cst_137 = arith.constant dense<0.000000e+00> : vector<2x64xf32>
    %289 = tpu.matmul %275, %288, %cst_137 {dimension_numbers = #tpu.dot_dimension_numbers<[1], [0], [0], [1], [0, 0, 1, 1], [], []>} : vector<2x64xf32>, vector<64x64xf32>, vector<2x64xf32> -> vector<2x64xf32>
    %290 = arith.addf %286, %289 : vector<2x64xf32>
    %291 = arith.negf %290 : vector<2x64xf32>
    %292 = math.exp %291 : vector<2x64xf32>
    %cst_138 = arith.constant 1.000000e+00 : f32
    %293 = vector.broadcast %cst_138 : f32 to vector<2x64xf32>
    %294 = arith.addf %293, %292 : vector<2x64xf32>
    %295 = arith.divf %293, %294 : vector<2x64xf32>
    %296 = vector.extract_strided_slice %24 {offsets = [12, 0], sizes = [2, 64], strides = [1, 1]} : vector<16x64xf32> to vector<2x64xf32>
    %c2_139 = arith.constant 2 : index
    %c0_140 = arith.constant 0 : index
    %c0_141 = arith.constant 0 : index
    %297 = vector.load %arg6[%c2_139, %c0_140, %c0_141] : memref<8x64x64xf32, #tpu.memory_space<vmem>>, vector<1x64x64xf32>
    %298 = vector.shape_cast %297 : vector<1x64x64xf32> to vector<64x64xf32>
    %cst_142 = arith.constant dense<0.000000e+00> : vector<2x64xf32>
    %299 = tpu.matmul %275, %298, %cst_142 {dimension_numbers = #tpu.dot_dimension_numbers<[1], [0], [0], [1], [0, 0, 1, 1], [], []>} : vector<2x64xf32>, vector<64x64xf32>, vector<2x64xf32> -> vector<2x64xf32>
    %300 = arith.addf %296, %299 : vector<2x64xf32>
    %301 = math.tanh %300 : vector<2x64xf32>
    %302 = vector.extract_strided_slice %27 {offsets = [12, 0], sizes = [2, 64], strides = [1, 1]} : vector<16x64xf32> to vector<2x64xf32>
    %c3_143 = arith.constant 3 : index
    %c0_144 = arith.constant 0 : index
    %c0_145 = arith.constant 0 : index
    %303 = vector.load %arg6[%c3_143, %c0_144, %c0_145] : memref<8x64x64xf32, #tpu.memory_space<vmem>>, vector<1x64x64xf32>
    %304 = vector.shape_cast %303 : vector<1x64x64xf32> to vector<64x64xf32>
    %cst_146 = arith.constant dense<0.000000e+00> : vector<2x64xf32>
    %305 = tpu.matmul %275, %304, %cst_146 {dimension_numbers = #tpu.dot_dimension_numbers<[1], [0], [0], [1], [0, 0, 1, 1], [], []>} : vector<2x64xf32>, vector<64x64xf32>, vector<2x64xf32> -> vector<2x64xf32>
    %306 = arith.addf %302, %305 : vector<2x64xf32>
    %307 = arith.negf %306 : vector<2x64xf32>
    %308 = math.exp %307 : vector<2x64xf32>
    %cst_147 = arith.constant 1.000000e+00 : f32
    %309 = vector.broadcast %cst_147 : f32 to vector<2x64xf32>
    %310 = arith.addf %309, %308 : vector<2x64xf32>
    %311 = arith.divf %309, %310 : vector<2x64xf32>
    %312 = arith.mulf %295, %273 : vector<2x64xf32>
    %313 = arith.mulf %285, %301 : vector<2x64xf32>
    %314 = arith.addf %312, %313 : vector<2x64xf32>
    %315 = math.tanh %314 : vector<2x64xf32>
    %316 = arith.mulf %311, %315 : vector<2x64xf32>
    %317 = vector.extract_strided_slice %18 {offsets = [14, 0], sizes = [2, 64], strides = [1, 1]} : vector<16x64xf32> to vector<2x64xf32>
    %c0_148 = arith.constant 0 : index
    %c0_149 = arith.constant 0 : index
    %c0_150 = arith.constant 0 : index
    %318 = vector.load %arg6[%c0_148, %c0_149, %c0_150] : memref<8x64x64xf32, #tpu.memory_space<vmem>>, vector<1x64x64xf32>
    %319 = vector.shape_cast %318 : vector<1x64x64xf32> to vector<64x64xf32>
    %cst_151 = arith.constant dense<0.000000e+00> : vector<2x64xf32>
    %320 = tpu.matmul %316, %319, %cst_151 {dimension_numbers = #tpu.dot_dimension_numbers<[1], [0], [0], [1], [0, 0, 1, 1], [], []>} : vector<2x64xf32>, vector<64x64xf32>, vector<2x64xf32> -> vector<2x64xf32>
    %321 = arith.addf %317, %320 : vector<2x64xf32>
    %322 = arith.negf %321 : vector<2x64xf32>
    %323 = math.exp %322 : vector<2x64xf32>
    %cst_152 = arith.constant 1.000000e+00 : f32
    %324 = vector.broadcast %cst_152 : f32 to vector<2x64xf32>
    %325 = arith.addf %324, %323 : vector<2x64xf32>
    %326 = arith.divf %324, %325 : vector<2x64xf32>
    %327 = vector.extract_strided_slice %21 {offsets = [14, 0], sizes = [2, 64], strides = [1, 1]} : vector<16x64xf32> to vector<2x64xf32>
    %c1_153 = arith.constant 1 : index
    %c0_154 = arith.constant 0 : index
    %c0_155 = arith.constant 0 : index
    %328 = vector.load %arg6[%c1_153, %c0_154, %c0_155] : memref<8x64x64xf32, #tpu.memory_space<vmem>>, vector<1x64x64xf32>
    %329 = vector.shape_cast %328 : vector<1x64x64xf32> to vector<64x64xf32>
    %cst_156 = arith.constant dense<0.000000e+00> : vector<2x64xf32>
    %330 = tpu.matmul %316, %329, %cst_156 {dimension_numbers = #tpu.dot_dimension_numbers<[1], [0], [0], [1], [0, 0, 1, 1], [], []>} : vector<2x64xf32>, vector<64x64xf32>, vector<2x64xf32> -> vector<2x64xf32>
    %331 = arith.addf %327, %330 : vector<2x64xf32>
    %332 = arith.negf %331 : vector<2x64xf32>
    %333 = math.exp %332 : vector<2x64xf32>
    %cst_157 = arith.constant 1.000000e+00 : f32
    %334 = vector.broadcast %cst_157 : f32 to vector<2x64xf32>
    %335 = arith.addf %334, %333 : vector<2x64xf32>
    %336 = arith.divf %334, %335 : vector<2x64xf32>
    %337 = vector.extract_strided_slice %24 {offsets = [14, 0], sizes = [2, 64], strides = [1, 1]} : vector<16x64xf32> to vector<2x64xf32>
    %c2_158 = arith.constant 2 : index
    %c0_159 = arith.constant 0 : index
    %c0_160 = arith.constant 0 : index
    %338 = vector.load %arg6[%c2_158, %c0_159, %c0_160] : memref<8x64x64xf32, #tpu.memory_space<vmem>>, vector<1x64x64xf32>
    %339 = vector.shape_cast %338 : vector<1x64x64xf32> to vector<64x64xf32>
    %cst_161 = arith.constant dense<0.000000e+00> : vector<2x64xf32>
    %340 = tpu.matmul %316, %339, %cst_161 {dimension_numbers = #tpu.dot_dimension_numbers<[1], [0], [0], [1], [0, 0, 1, 1], [], []>} : vector<2x64xf32>, vector<64x64xf32>, vector<2x64xf32> -> vector<2x64xf32>
    %341 = arith.addf %337, %340 : vector<2x64xf32>
    %342 = math.tanh %341 : vector<2x64xf32>
    %343 = vector.extract_strided_slice %27 {offsets = [14, 0], sizes = [2, 64], strides = [1, 1]} : vector<16x64xf32> to vector<2x64xf32>
    %c3_162 = arith.constant 3 : index
    %c0_163 = arith.constant 0 : index
    %c0_164 = arith.constant 0 : index
    %344 = vector.load %arg6[%c3_162, %c0_163, %c0_164] : memref<8x64x64xf32, #tpu.memory_space<vmem>>, vector<1x64x64xf32>
    %345 = vector.shape_cast %344 : vector<1x64x64xf32> to vector<64x64xf32>
    %cst_165 = arith.constant dense<0.000000e+00> : vector<2x64xf32>
    %346 = tpu.matmul %316, %345, %cst_165 {dimension_numbers = #tpu.dot_dimension_numbers<[1], [0], [0], [1], [0, 0, 1, 1], [], []>} : vector<2x64xf32>, vector<64x64xf32>, vector<2x64xf32> -> vector<2x64xf32>
    %347 = arith.addf %343, %346 : vector<2x64xf32>
    %348 = arith.negf %347 : vector<2x64xf32>
    %349 = math.exp %348 : vector<2x64xf32>
    %cst_166 = arith.constant 1.000000e+00 : f32
    %350 = vector.broadcast %cst_166 : f32 to vector<2x64xf32>
    %351 = arith.addf %350, %349 : vector<2x64xf32>
    %352 = arith.divf %350, %351 : vector<2x64xf32>
    %353 = arith.mulf %336, %314 : vector<2x64xf32>
    %354 = arith.mulf %326, %342 : vector<2x64xf32>
    %355 = arith.addf %353, %354 : vector<2x64xf32>
    %356 = math.tanh %355 : vector<2x64xf32>
    %357 = arith.mulf %352, %356 : vector<2x64xf32>
    %358 = vector.extract_strided_slice %70 {offsets = [0, 0], sizes = [2, 32], strides = [1, 1]} : vector<2x64xf32> to vector<2x32xf32>
    %359 = vector.extract_strided_slice %357 {offsets = [0, 32], sizes = [2, 32], strides = [1, 1]} : vector<2x64xf32> to vector<2x32xf32>
    %360 = tpu.concatenate %358, %359 in 1 : vector<2x32xf32>, vector<2x32xf32> -> vector<2x64xf32>
    %361 = vector.extract_strided_slice %111 {offsets = [0, 0], sizes = [2, 32], strides = [1, 1]} : vector<2x64xf32> to vector<2x32xf32>
    %362 = vector.extract_strided_slice %316 {offsets = [0, 32], sizes = [2, 32], strides = [1, 1]} : vector<2x64xf32> to vector<2x32xf32>
    %363 = tpu.concatenate %361, %362 in 1 : vector<2x32xf32>, vector<2x32xf32> -> vector<2x64xf32>
    %364 = vector.extract_strided_slice %152 {offsets = [0, 0], sizes = [2, 32], strides = [1, 1]} : vector<2x64xf32> to vector<2x32xf32>
    %365 = vector.extract_strided_slice %275 {offsets = [0, 32], sizes = [2, 32], strides = [1, 1]} : vector<2x64xf32> to vector<2x32xf32>
    %366 = tpu.concatenate %364, %365 in 1 : vector<2x32xf32>, vector<2x32xf32> -> vector<2x64xf32>
    %367 = vector.extract_strided_slice %193 {offsets = [0, 0], sizes = [2, 32], strides = [1, 1]} : vector<2x64xf32> to vector<2x32xf32>
    %368 = vector.extract_strided_slice %234 {offsets = [0, 32], sizes = [2, 32], strides = [1, 1]} : vector<2x64xf32> to vector<2x32xf32>
    %369 = tpu.concatenate %367, %368 in 1 : vector<2x32xf32>, vector<2x32xf32> -> vector<2x64xf32>
    %370 = vector.extract_strided_slice %234 {offsets = [0, 0], sizes = [2, 32], strides = [1, 1]} : vector<2x64xf32> to vector<2x32xf32>
    %371 = vector.extract_strided_slice %193 {offsets = [0, 32], sizes = [2, 32], strides = [1, 1]} : vector<2x64xf32> to vector<2x32xf32>
    %372 = tpu.concatenate %370, %371 in 1 : vector<2x32xf32>, vector<2x32xf32> -> vector<2x64xf32>
    %373 = vector.extract_strided_slice %275 {offsets = [0, 0], sizes = [2, 32], strides = [1, 1]} : vector<2x64xf32> to vector<2x32xf32>
    %374 = vector.extract_strided_slice %152 {offsets = [0, 32], sizes = [2, 32], strides = [1, 1]} : vector<2x64xf32> to vector<2x32xf32>
    %375 = tpu.concatenate %373, %374 in 1 : vector<2x32xf32>, vector<2x32xf32> -> vector<2x64xf32>
    %376 = vector.extract_strided_slice %316 {offsets = [0, 0], sizes = [2, 32], strides = [1, 1]} : vector<2x64xf32> to vector<2x32xf32>
    %377 = vector.extract_strided_slice %111 {offsets = [0, 32], sizes = [2, 32], strides = [1, 1]} : vector<2x64xf32> to vector<2x32xf32>
    %378 = tpu.concatenate %376, %377 in 1 : vector<2x32xf32>, vector<2x32xf32> -> vector<2x64xf32>
    %379 = vector.extract_strided_slice %357 {offsets = [0, 0], sizes = [2, 32], strides = [1, 1]} : vector<2x64xf32> to vector<2x32xf32>
    %380 = vector.extract_strided_slice %70 {offsets = [0, 32], sizes = [2, 32], strides = [1, 1]} : vector<2x64xf32> to vector<2x32xf32>
    %381 = tpu.concatenate %379, %380 in 1 : vector<2x32xf32>, vector<2x32xf32> -> vector<2x64xf32>
    %382 = tpu.concatenate %360, %363, %366, %369, %372, %375, %378, %381 in 0 : vector<2x64xf32>, vector<2x64xf32>, vector<2x64xf32>, vector<2x64xf32>, vector<2x64xf32>, vector<2x64xf32>, vector<2x64xf32>, vector<2x64xf32> -> vector<16x64xf32>
    %383 = tpu.concatenate %381, %378, %375, %372, %369, %366, %363, %360 in 0 : vector<2x64xf32>, vector<2x64xf32>, vector<2x64xf32>, vector<2x64xf32>, vector<2x64xf32>, vector<2x64xf32>, vector<2x64xf32>, vector<2x64xf32> -> vector<16x64xf32>
    %c0_167 = arith.constant 0 : index
    %c0_168 = arith.constant 0 : index
    %c0_169 = arith.constant 0 : index
    %384 = vector.load %arg4[%c0_167, %c0_168, %c0_169] : memref<2x64x128xf32, #tpu.memory_space<vmem>>, vector<1x64x128xf32>
    %385 = vector.shape_cast %384 : vector<1x64x128xf32> to vector<64x128xf32>
    %cst_170 = arith.constant dense<0.000000e+00> : vector<16x128xf32>
    %386 = tpu.matmul %382, %385, %cst_170 {dimension_numbers = #tpu.dot_dimension_numbers<[1], [0], [0], [1], [0, 0, 1, 1], [], []>} : vector<16x64xf32>, vector<64x128xf32>, vector<16x128xf32> -> vector<16x128xf32>
    %c0_171 = arith.constant 0 : index
    %c0_172 = arith.constant 0 : index
    %c0_173 = arith.constant 0 : index
    %387 = vector.load %arg5[%c0_171, %c0_172, %c0_173] : memref<2x1x128xf32, #tpu.memory_space<vmem>>, vector<1x1x128xf32>
    %388 = vector.shape_cast %387 : vector<1x1x128xf32> to vector<1x128xf32>
    %389 = vector.broadcast %388 : vector<1x128xf32> to vector<16x128xf32>
    %390 = arith.addf %386, %389 : vector<16x128xf32>
    %c1_174 = arith.constant 1 : index
    %c0_175 = arith.constant 0 : index
    %c0_176 = arith.constant 0 : index
    %391 = vector.load %arg4[%c1_174, %c0_175, %c0_176] : memref<2x64x128xf32, #tpu.memory_space<vmem>>, vector<1x64x128xf32>
    %392 = vector.shape_cast %391 : vector<1x64x128xf32> to vector<64x128xf32>
    %cst_177 = arith.constant dense<0.000000e+00> : vector<16x128xf32>
    %393 = tpu.matmul %383, %392, %cst_177 {dimension_numbers = #tpu.dot_dimension_numbers<[1], [0], [0], [1], [0, 0, 1, 1], [], []>} : vector<16x64xf32>, vector<64x128xf32>, vector<16x128xf32> -> vector<16x128xf32>
    %c1_178 = arith.constant 1 : index
    %c0_179 = arith.constant 0 : index
    %c0_180 = arith.constant 0 : index
    %394 = vector.load %arg5[%c1_178, %c0_179, %c0_180] : memref<2x1x128xf32, #tpu.memory_space<vmem>>, vector<1x1x128xf32>
    %395 = vector.shape_cast %394 : vector<1x1x128xf32> to vector<1x128xf32>
    %396 = vector.broadcast %395 : vector<1x128xf32> to vector<16x128xf32>
    %397 = arith.addf %393, %396 : vector<16x128xf32>
    %398 = vector.extract_strided_slice %390 {offsets = [0, 0], sizes = [16, 32], strides = [1, 1]} : vector<16x128xf32> to vector<16x32xf32>
    %399 = vector.extract_strided_slice %397 {offsets = [0, 0], sizes = [16, 32], strides = [1, 1]} : vector<16x128xf32> to vector<16x32xf32>
    %400 = tpu.concatenate %398, %399 in 1 : vector<16x32xf32>, vector<16x32xf32> -> vector<16x64xf32>
    %401 = vector.extract_strided_slice %390 {offsets = [0, 32], sizes = [16, 32], strides = [1, 1]} : vector<16x128xf32> to vector<16x32xf32>
    %402 = vector.extract_strided_slice %397 {offsets = [0, 32], sizes = [16, 32], strides = [1, 1]} : vector<16x128xf32> to vector<16x32xf32>
    %403 = tpu.concatenate %401, %402 in 1 : vector<16x32xf32>, vector<16x32xf32> -> vector<16x64xf32>
    %404 = vector.extract_strided_slice %390 {offsets = [0, 64], sizes = [16, 32], strides = [1, 1]} : vector<16x128xf32> to vector<16x32xf32>
    %405 = vector.extract_strided_slice %397 {offsets = [0, 64], sizes = [16, 32], strides = [1, 1]} : vector<16x128xf32> to vector<16x32xf32>
    %406 = tpu.concatenate %404, %405 in 1 : vector<16x32xf32>, vector<16x32xf32> -> vector<16x64xf32>
    %407 = vector.extract_strided_slice %390 {offsets = [0, 96], sizes = [16, 32], strides = [1, 1]} : vector<16x128xf32> to vector<16x32xf32>
    %408 = vector.extract_strided_slice %397 {offsets = [0, 96], sizes = [16, 32], strides = [1, 1]} : vector<16x128xf32> to vector<16x32xf32>
    %409 = tpu.concatenate %407, %408 in 1 : vector<16x32xf32>, vector<16x32xf32> -> vector<16x64xf32>
    %cst_181 = arith.constant 0.000000e+00 : f32
    %410 = vector.broadcast %cst_181 : f32 to vector<2x64xf32>
    %cst_182 = arith.constant 0.000000e+00 : f32
    %411 = vector.broadcast %cst_182 : f32 to vector<2x64xf32>
    %412 = vector.extract_strided_slice %400 {offsets = [0, 0], sizes = [2, 64], strides = [1, 1]} : vector<16x64xf32> to vector<2x64xf32>
    %c4 = arith.constant 4 : index
    %c0_183 = arith.constant 0 : index
    %c0_184 = arith.constant 0 : index
    %413 = vector.load %arg6[%c4, %c0_183, %c0_184] : memref<8x64x64xf32, #tpu.memory_space<vmem>>, vector<1x64x64xf32>
    %414 = vector.shape_cast %413 : vector<1x64x64xf32> to vector<64x64xf32>
    %cst_185 = arith.constant dense<0.000000e+00> : vector<2x64xf32>
    %415 = tpu.matmul %410, %414, %cst_185 {dimension_numbers = #tpu.dot_dimension_numbers<[1], [0], [0], [1], [0, 0, 1, 1], [], []>} : vector<2x64xf32>, vector<64x64xf32>, vector<2x64xf32> -> vector<2x64xf32>
    %416 = arith.addf %412, %415 : vector<2x64xf32>
    %417 = arith.negf %416 : vector<2x64xf32>
    %418 = math.exp %417 : vector<2x64xf32>
    %cst_186 = arith.constant 1.000000e+00 : f32
    %419 = vector.broadcast %cst_186 : f32 to vector<2x64xf32>
    %420 = arith.addf %419, %418 : vector<2x64xf32>
    %421 = arith.divf %419, %420 : vector<2x64xf32>
    %422 = vector.extract_strided_slice %403 {offsets = [0, 0], sizes = [2, 64], strides = [1, 1]} : vector<16x64xf32> to vector<2x64xf32>
    %c5 = arith.constant 5 : index
    %c0_187 = arith.constant 0 : index
    %c0_188 = arith.constant 0 : index
    %423 = vector.load %arg6[%c5, %c0_187, %c0_188] : memref<8x64x64xf32, #tpu.memory_space<vmem>>, vector<1x64x64xf32>
    %424 = vector.shape_cast %423 : vector<1x64x64xf32> to vector<64x64xf32>
    %cst_189 = arith.constant dense<0.000000e+00> : vector<2x64xf32>
    %425 = tpu.matmul %410, %424, %cst_189 {dimension_numbers = #tpu.dot_dimension_numbers<[1], [0], [0], [1], [0, 0, 1, 1], [], []>} : vector<2x64xf32>, vector<64x64xf32>, vector<2x64xf32> -> vector<2x64xf32>
    %426 = arith.addf %422, %425 : vector<2x64xf32>
    %427 = arith.negf %426 : vector<2x64xf32>
    %428 = math.exp %427 : vector<2x64xf32>
    %cst_190 = arith.constant 1.000000e+00 : f32
    %429 = vector.broadcast %cst_190 : f32 to vector<2x64xf32>
    %430 = arith.addf %429, %428 : vector<2x64xf32>
    %431 = arith.divf %429, %430 : vector<2x64xf32>
    %432 = vector.extract_strided_slice %406 {offsets = [0, 0], sizes = [2, 64], strides = [1, 1]} : vector<16x64xf32> to vector<2x64xf32>
    %c6 = arith.constant 6 : index
    %c0_191 = arith.constant 0 : index
    %c0_192 = arith.constant 0 : index
    %433 = vector.load %arg6[%c6, %c0_191, %c0_192] : memref<8x64x64xf32, #tpu.memory_space<vmem>>, vector<1x64x64xf32>
    %434 = vector.shape_cast %433 : vector<1x64x64xf32> to vector<64x64xf32>
    %cst_193 = arith.constant dense<0.000000e+00> : vector<2x64xf32>
    %435 = tpu.matmul %410, %434, %cst_193 {dimension_numbers = #tpu.dot_dimension_numbers<[1], [0], [0], [1], [0, 0, 1, 1], [], []>} : vector<2x64xf32>, vector<64x64xf32>, vector<2x64xf32> -> vector<2x64xf32>
    %436 = arith.addf %432, %435 : vector<2x64xf32>
    %437 = math.tanh %436 : vector<2x64xf32>
    %438 = vector.extract_strided_slice %409 {offsets = [0, 0], sizes = [2, 64], strides = [1, 1]} : vector<16x64xf32> to vector<2x64xf32>
    %c7 = arith.constant 7 : index
    %c0_194 = arith.constant 0 : index
    %c0_195 = arith.constant 0 : index
    %439 = vector.load %arg6[%c7, %c0_194, %c0_195] : memref<8x64x64xf32, #tpu.memory_space<vmem>>, vector<1x64x64xf32>
    %440 = vector.shape_cast %439 : vector<1x64x64xf32> to vector<64x64xf32>
    %cst_196 = arith.constant dense<0.000000e+00> : vector<2x64xf32>
    %441 = tpu.matmul %410, %440, %cst_196 {dimension_numbers = #tpu.dot_dimension_numbers<[1], [0], [0], [1], [0, 0, 1, 1], [], []>} : vector<2x64xf32>, vector<64x64xf32>, vector<2x64xf32> -> vector<2x64xf32>
    %442 = arith.addf %438, %441 : vector<2x64xf32>
    %443 = arith.negf %442 : vector<2x64xf32>
    %444 = math.exp %443 : vector<2x64xf32>
    %cst_197 = arith.constant 1.000000e+00 : f32
    %445 = vector.broadcast %cst_197 : f32 to vector<2x64xf32>
    %446 = arith.addf %445, %444 : vector<2x64xf32>
    %447 = arith.divf %445, %446 : vector<2x64xf32>
    %448 = arith.mulf %431, %411 : vector<2x64xf32>
    %449 = arith.mulf %421, %437 : vector<2x64xf32>
    %450 = arith.addf %448, %449 : vector<2x64xf32>
    %451 = math.tanh %450 : vector<2x64xf32>
    %452 = arith.mulf %447, %451 : vector<2x64xf32>
    %453 = vector.extract_strided_slice %400 {offsets = [2, 0], sizes = [2, 64], strides = [1, 1]} : vector<16x64xf32> to vector<2x64xf32>
    %c4_198 = arith.constant 4 : index
    %c0_199 = arith.constant 0 : index
    %c0_200 = arith.constant 0 : index
    %454 = vector.load %arg6[%c4_198, %c0_199, %c0_200] : memref<8x64x64xf32, #tpu.memory_space<vmem>>, vector<1x64x64xf32>
    %455 = vector.shape_cast %454 : vector<1x64x64xf32> to vector<64x64xf32>
    %cst_201 = arith.constant dense<0.000000e+00> : vector<2x64xf32>
    %456 = tpu.matmul %452, %455, %cst_201 {dimension_numbers = #tpu.dot_dimension_numbers<[1], [0], [0], [1], [0, 0, 1, 1], [], []>} : vector<2x64xf32>, vector<64x64xf32>, vector<2x64xf32> -> vector<2x64xf32>
    %457 = arith.addf %453, %456 : vector<2x64xf32>
    %458 = arith.negf %457 : vector<2x64xf32>
    %459 = math.exp %458 : vector<2x64xf32>
    %cst_202 = arith.constant 1.000000e+00 : f32
    %460 = vector.broadcast %cst_202 : f32 to vector<2x64xf32>
    %461 = arith.addf %460, %459 : vector<2x64xf32>
    %462 = arith.divf %460, %461 : vector<2x64xf32>
    %463 = vector.extract_strided_slice %403 {offsets = [2, 0], sizes = [2, 64], strides = [1, 1]} : vector<16x64xf32> to vector<2x64xf32>
    %c5_203 = arith.constant 5 : index
    %c0_204 = arith.constant 0 : index
    %c0_205 = arith.constant 0 : index
    %464 = vector.load %arg6[%c5_203, %c0_204, %c0_205] : memref<8x64x64xf32, #tpu.memory_space<vmem>>, vector<1x64x64xf32>
    %465 = vector.shape_cast %464 : vector<1x64x64xf32> to vector<64x64xf32>
    %cst_206 = arith.constant dense<0.000000e+00> : vector<2x64xf32>
    %466 = tpu.matmul %452, %465, %cst_206 {dimension_numbers = #tpu.dot_dimension_numbers<[1], [0], [0], [1], [0, 0, 1, 1], [], []>} : vector<2x64xf32>, vector<64x64xf32>, vector<2x64xf32> -> vector<2x64xf32>
    %467 = arith.addf %463, %466 : vector<2x64xf32>
    %468 = arith.negf %467 : vector<2x64xf32>
    %469 = math.exp %468 : vector<2x64xf32>
    %cst_207 = arith.constant 1.000000e+00 : f32
    %470 = vector.broadcast %cst_207 : f32 to vector<2x64xf32>
    %471 = arith.addf %470, %469 : vector<2x64xf32>
    %472 = arith.divf %470, %471 : vector<2x64xf32>
    %473 = vector.extract_strided_slice %406 {offsets = [2, 0], sizes = [2, 64], strides = [1, 1]} : vector<16x64xf32> to vector<2x64xf32>
    %c6_208 = arith.constant 6 : index
    %c0_209 = arith.constant 0 : index
    %c0_210 = arith.constant 0 : index
    %474 = vector.load %arg6[%c6_208, %c0_209, %c0_210] : memref<8x64x64xf32, #tpu.memory_space<vmem>>, vector<1x64x64xf32>
    %475 = vector.shape_cast %474 : vector<1x64x64xf32> to vector<64x64xf32>
    %cst_211 = arith.constant dense<0.000000e+00> : vector<2x64xf32>
    %476 = tpu.matmul %452, %475, %cst_211 {dimension_numbers = #tpu.dot_dimension_numbers<[1], [0], [0], [1], [0, 0, 1, 1], [], []>} : vector<2x64xf32>, vector<64x64xf32>, vector<2x64xf32> -> vector<2x64xf32>
    %477 = arith.addf %473, %476 : vector<2x64xf32>
    %478 = math.tanh %477 : vector<2x64xf32>
    %479 = vector.extract_strided_slice %409 {offsets = [2, 0], sizes = [2, 64], strides = [1, 1]} : vector<16x64xf32> to vector<2x64xf32>
    %c7_212 = arith.constant 7 : index
    %c0_213 = arith.constant 0 : index
    %c0_214 = arith.constant 0 : index
    %480 = vector.load %arg6[%c7_212, %c0_213, %c0_214] : memref<8x64x64xf32, #tpu.memory_space<vmem>>, vector<1x64x64xf32>
    %481 = vector.shape_cast %480 : vector<1x64x64xf32> to vector<64x64xf32>
    %cst_215 = arith.constant dense<0.000000e+00> : vector<2x64xf32>
    %482 = tpu.matmul %452, %481, %cst_215 {dimension_numbers = #tpu.dot_dimension_numbers<[1], [0], [0], [1], [0, 0, 1, 1], [], []>} : vector<2x64xf32>, vector<64x64xf32>, vector<2x64xf32> -> vector<2x64xf32>
    %483 = arith.addf %479, %482 : vector<2x64xf32>
    %484 = arith.negf %483 : vector<2x64xf32>
    %485 = math.exp %484 : vector<2x64xf32>
    %cst_216 = arith.constant 1.000000e+00 : f32
    %486 = vector.broadcast %cst_216 : f32 to vector<2x64xf32>
    %487 = arith.addf %486, %485 : vector<2x64xf32>
    %488 = arith.divf %486, %487 : vector<2x64xf32>
    %489 = arith.mulf %472, %450 : vector<2x64xf32>
    %490 = arith.mulf %462, %478 : vector<2x64xf32>
    %491 = arith.addf %489, %490 : vector<2x64xf32>
    %492 = math.tanh %491 : vector<2x64xf32>
    %493 = arith.mulf %488, %492 : vector<2x64xf32>
    %494 = vector.extract_strided_slice %400 {offsets = [4, 0], sizes = [2, 64], strides = [1, 1]} : vector<16x64xf32> to vector<2x64xf32>
    %c4_217 = arith.constant 4 : index
    %c0_218 = arith.constant 0 : index
    %c0_219 = arith.constant 0 : index
    %495 = vector.load %arg6[%c4_217, %c0_218, %c0_219] : memref<8x64x64xf32, #tpu.memory_space<vmem>>, vector<1x64x64xf32>
    %496 = vector.shape_cast %495 : vector<1x64x64xf32> to vector<64x64xf32>
    %cst_220 = arith.constant dense<0.000000e+00> : vector<2x64xf32>
    %497 = tpu.matmul %493, %496, %cst_220 {dimension_numbers = #tpu.dot_dimension_numbers<[1], [0], [0], [1], [0, 0, 1, 1], [], []>} : vector<2x64xf32>, vector<64x64xf32>, vector<2x64xf32> -> vector<2x64xf32>
    %498 = arith.addf %494, %497 : vector<2x64xf32>
    %499 = arith.negf %498 : vector<2x64xf32>
    %500 = math.exp %499 : vector<2x64xf32>
    %cst_221 = arith.constant 1.000000e+00 : f32
    %501 = vector.broadcast %cst_221 : f32 to vector<2x64xf32>
    %502 = arith.addf %501, %500 : vector<2x64xf32>
    %503 = arith.divf %501, %502 : vector<2x64xf32>
    %504 = vector.extract_strided_slice %403 {offsets = [4, 0], sizes = [2, 64], strides = [1, 1]} : vector<16x64xf32> to vector<2x64xf32>
    %c5_222 = arith.constant 5 : index
    %c0_223 = arith.constant 0 : index
    %c0_224 = arith.constant 0 : index
    %505 = vector.load %arg6[%c5_222, %c0_223, %c0_224] : memref<8x64x64xf32, #tpu.memory_space<vmem>>, vector<1x64x64xf32>
    %506 = vector.shape_cast %505 : vector<1x64x64xf32> to vector<64x64xf32>
    %cst_225 = arith.constant dense<0.000000e+00> : vector<2x64xf32>
    %507 = tpu.matmul %493, %506, %cst_225 {dimension_numbers = #tpu.dot_dimension_numbers<[1], [0], [0], [1], [0, 0, 1, 1], [], []>} : vector<2x64xf32>, vector<64x64xf32>, vector<2x64xf32> -> vector<2x64xf32>
    %508 = arith.addf %504, %507 : vector<2x64xf32>
    %509 = arith.negf %508 : vector<2x64xf32>
    %510 = math.exp %509 : vector<2x64xf32>
    %cst_226 = arith.constant 1.000000e+00 : f32
    %511 = vector.broadcast %cst_226 : f32 to vector<2x64xf32>
    %512 = arith.addf %511, %510 : vector<2x64xf32>
    %513 = arith.divf %511, %512 : vector<2x64xf32>
    %514 = vector.extract_strided_slice %406 {offsets = [4, 0], sizes = [2, 64], strides = [1, 1]} : vector<16x64xf32> to vector<2x64xf32>
    %c6_227 = arith.constant 6 : index
    %c0_228 = arith.constant 0 : index
    %c0_229 = arith.constant 0 : index
    %515 = vector.load %arg6[%c6_227, %c0_228, %c0_229] : memref<8x64x64xf32, #tpu.memory_space<vmem>>, vector<1x64x64xf32>
    %516 = vector.shape_cast %515 : vector<1x64x64xf32> to vector<64x64xf32>
    %cst_230 = arith.constant dense<0.000000e+00> : vector<2x64xf32>
    %517 = tpu.matmul %493, %516, %cst_230 {dimension_numbers = #tpu.dot_dimension_numbers<[1], [0], [0], [1], [0, 0, 1, 1], [], []>} : vector<2x64xf32>, vector<64x64xf32>, vector<2x64xf32> -> vector<2x64xf32>
    %518 = arith.addf %514, %517 : vector<2x64xf32>
    %519 = math.tanh %518 : vector<2x64xf32>
    %520 = vector.extract_strided_slice %409 {offsets = [4, 0], sizes = [2, 64], strides = [1, 1]} : vector<16x64xf32> to vector<2x64xf32>
    %c7_231 = arith.constant 7 : index
    %c0_232 = arith.constant 0 : index
    %c0_233 = arith.constant 0 : index
    %521 = vector.load %arg6[%c7_231, %c0_232, %c0_233] : memref<8x64x64xf32, #tpu.memory_space<vmem>>, vector<1x64x64xf32>
    %522 = vector.shape_cast %521 : vector<1x64x64xf32> to vector<64x64xf32>
    %cst_234 = arith.constant dense<0.000000e+00> : vector<2x64xf32>
    %523 = tpu.matmul %493, %522, %cst_234 {dimension_numbers = #tpu.dot_dimension_numbers<[1], [0], [0], [1], [0, 0, 1, 1], [], []>} : vector<2x64xf32>, vector<64x64xf32>, vector<2x64xf32> -> vector<2x64xf32>
    %524 = arith.addf %520, %523 : vector<2x64xf32>
    %525 = arith.negf %524 : vector<2x64xf32>
    %526 = math.exp %525 : vector<2x64xf32>
    %cst_235 = arith.constant 1.000000e+00 : f32
    %527 = vector.broadcast %cst_235 : f32 to vector<2x64xf32>
    %528 = arith.addf %527, %526 : vector<2x64xf32>
    %529 = arith.divf %527, %528 : vector<2x64xf32>
    %530 = arith.mulf %513, %491 : vector<2x64xf32>
    %531 = arith.mulf %503, %519 : vector<2x64xf32>
    %532 = arith.addf %530, %531 : vector<2x64xf32>
    %533 = math.tanh %532 : vector<2x64xf32>
    %534 = arith.mulf %529, %533 : vector<2x64xf32>
    %535 = vector.extract_strided_slice %400 {offsets = [6, 0], sizes = [2, 64], strides = [1, 1]} : vector<16x64xf32> to vector<2x64xf32>
    %c4_236 = arith.constant 4 : index
    %c0_237 = arith.constant 0 : index
    %c0_238 = arith.constant 0 : index
    %536 = vector.load %arg6[%c4_236, %c0_237, %c0_238] : memref<8x64x64xf32, #tpu.memory_space<vmem>>, vector<1x64x64xf32>
    %537 = vector.shape_cast %536 : vector<1x64x64xf32> to vector<64x64xf32>
    %cst_239 = arith.constant dense<0.000000e+00> : vector<2x64xf32>
    %538 = tpu.matmul %534, %537, %cst_239 {dimension_numbers = #tpu.dot_dimension_numbers<[1], [0], [0], [1], [0, 0, 1, 1], [], []>} : vector<2x64xf32>, vector<64x64xf32>, vector<2x64xf32> -> vector<2x64xf32>
    %539 = arith.addf %535, %538 : vector<2x64xf32>
    %540 = arith.negf %539 : vector<2x64xf32>
    %541 = math.exp %540 : vector<2x64xf32>
    %cst_240 = arith.constant 1.000000e+00 : f32
    %542 = vector.broadcast %cst_240 : f32 to vector<2x64xf32>
    %543 = arith.addf %542, %541 : vector<2x64xf32>
    %544 = arith.divf %542, %543 : vector<2x64xf32>
    %545 = vector.extract_strided_slice %403 {offsets = [6, 0], sizes = [2, 64], strides = [1, 1]} : vector<16x64xf32> to vector<2x64xf32>
    %c5_241 = arith.constant 5 : index
    %c0_242 = arith.constant 0 : index
    %c0_243 = arith.constant 0 : index
    %546 = vector.load %arg6[%c5_241, %c0_242, %c0_243] : memref<8x64x64xf32, #tpu.memory_space<vmem>>, vector<1x64x64xf32>
    %547 = vector.shape_cast %546 : vector<1x64x64xf32> to vector<64x64xf32>
    %cst_244 = arith.constant dense<0.000000e+00> : vector<2x64xf32>
    %548 = tpu.matmul %534, %547, %cst_244 {dimension_numbers = #tpu.dot_dimension_numbers<[1], [0], [0], [1], [0, 0, 1, 1], [], []>} : vector<2x64xf32>, vector<64x64xf32>, vector<2x64xf32> -> vector<2x64xf32>
    %549 = arith.addf %545, %548 : vector<2x64xf32>
    %550 = arith.negf %549 : vector<2x64xf32>
    %551 = math.exp %550 : vector<2x64xf32>
    %cst_245 = arith.constant 1.000000e+00 : f32
    %552 = vector.broadcast %cst_245 : f32 to vector<2x64xf32>
    %553 = arith.addf %552, %551 : vector<2x64xf32>
    %554 = arith.divf %552, %553 : vector<2x64xf32>
    %555 = vector.extract_strided_slice %406 {offsets = [6, 0], sizes = [2, 64], strides = [1, 1]} : vector<16x64xf32> to vector<2x64xf32>
    %c6_246 = arith.constant 6 : index
    %c0_247 = arith.constant 0 : index
    %c0_248 = arith.constant 0 : index
    %556 = vector.load %arg6[%c6_246, %c0_247, %c0_248] : memref<8x64x64xf32, #tpu.memory_space<vmem>>, vector<1x64x64xf32>
    %557 = vector.shape_cast %556 : vector<1x64x64xf32> to vector<64x64xf32>
    %cst_249 = arith.constant dense<0.000000e+00> : vector<2x64xf32>
    %558 = tpu.matmul %534, %557, %cst_249 {dimension_numbers = #tpu.dot_dimension_numbers<[1], [0], [0], [1], [0, 0, 1, 1], [], []>} : vector<2x64xf32>, vector<64x64xf32>, vector<2x64xf32> -> vector<2x64xf32>
    %559 = arith.addf %555, %558 : vector<2x64xf32>
    %560 = math.tanh %559 : vector<2x64xf32>
    %561 = vector.extract_strided_slice %409 {offsets = [6, 0], sizes = [2, 64], strides = [1, 1]} : vector<16x64xf32> to vector<2x64xf32>
    %c7_250 = arith.constant 7 : index
    %c0_251 = arith.constant 0 : index
    %c0_252 = arith.constant 0 : index
    %562 = vector.load %arg6[%c7_250, %c0_251, %c0_252] : memref<8x64x64xf32, #tpu.memory_space<vmem>>, vector<1x64x64xf32>
    %563 = vector.shape_cast %562 : vector<1x64x64xf32> to vector<64x64xf32>
    %cst_253 = arith.constant dense<0.000000e+00> : vector<2x64xf32>
    %564 = tpu.matmul %534, %563, %cst_253 {dimension_numbers = #tpu.dot_dimension_numbers<[1], [0], [0], [1], [0, 0, 1, 1], [], []>} : vector<2x64xf32>, vector<64x64xf32>, vector<2x64xf32> -> vector<2x64xf32>
    %565 = arith.addf %561, %564 : vector<2x64xf32>
    %566 = arith.negf %565 : vector<2x64xf32>
    %567 = math.exp %566 : vector<2x64xf32>
    %cst_254 = arith.constant 1.000000e+00 : f32
    %568 = vector.broadcast %cst_254 : f32 to vector<2x64xf32>
    %569 = arith.addf %568, %567 : vector<2x64xf32>
    %570 = arith.divf %568, %569 : vector<2x64xf32>
    %571 = arith.mulf %554, %532 : vector<2x64xf32>
    %572 = arith.mulf %544, %560 : vector<2x64xf32>
    %573 = arith.addf %571, %572 : vector<2x64xf32>
    %574 = math.tanh %573 : vector<2x64xf32>
    %575 = arith.mulf %570, %574 : vector<2x64xf32>
    %576 = vector.extract_strided_slice %400 {offsets = [8, 0], sizes = [2, 64], strides = [1, 1]} : vector<16x64xf32> to vector<2x64xf32>
    %c4_255 = arith.constant 4 : index
    %c0_256 = arith.constant 0 : index
    %c0_257 = arith.constant 0 : index
    %577 = vector.load %arg6[%c4_255, %c0_256, %c0_257] : memref<8x64x64xf32, #tpu.memory_space<vmem>>, vector<1x64x64xf32>
    %578 = vector.shape_cast %577 : vector<1x64x64xf32> to vector<64x64xf32>
    %cst_258 = arith.constant dense<0.000000e+00> : vector<2x64xf32>
    %579 = tpu.matmul %575, %578, %cst_258 {dimension_numbers = #tpu.dot_dimension_numbers<[1], [0], [0], [1], [0, 0, 1, 1], [], []>} : vector<2x64xf32>, vector<64x64xf32>, vector<2x64xf32> -> vector<2x64xf32>
    %580 = arith.addf %576, %579 : vector<2x64xf32>
    %581 = arith.negf %580 : vector<2x64xf32>
    %582 = math.exp %581 : vector<2x64xf32>
    %cst_259 = arith.constant 1.000000e+00 : f32
    %583 = vector.broadcast %cst_259 : f32 to vector<2x64xf32>
    %584 = arith.addf %583, %582 : vector<2x64xf32>
    %585 = arith.divf %583, %584 : vector<2x64xf32>
    %586 = vector.extract_strided_slice %403 {offsets = [8, 0], sizes = [2, 64], strides = [1, 1]} : vector<16x64xf32> to vector<2x64xf32>
    %c5_260 = arith.constant 5 : index
    %c0_261 = arith.constant 0 : index
    %c0_262 = arith.constant 0 : index
    %587 = vector.load %arg6[%c5_260, %c0_261, %c0_262] : memref<8x64x64xf32, #tpu.memory_space<vmem>>, vector<1x64x64xf32>
    %588 = vector.shape_cast %587 : vector<1x64x64xf32> to vector<64x64xf32>
    %cst_263 = arith.constant dense<0.000000e+00> : vector<2x64xf32>
    %589 = tpu.matmul %575, %588, %cst_263 {dimension_numbers = #tpu.dot_dimension_numbers<[1], [0], [0], [1], [0, 0, 1, 1], [], []>} : vector<2x64xf32>, vector<64x64xf32>, vector<2x64xf32> -> vector<2x64xf32>
    %590 = arith.addf %586, %589 : vector<2x64xf32>
    %591 = arith.negf %590 : vector<2x64xf32>
    %592 = math.exp %591 : vector<2x64xf32>
    %cst_264 = arith.constant 1.000000e+00 : f32
    %593 = vector.broadcast %cst_264 : f32 to vector<2x64xf32>
    %594 = arith.addf %593, %592 : vector<2x64xf32>
    %595 = arith.divf %593, %594 : vector<2x64xf32>
    %596 = vector.extract_strided_slice %406 {offsets = [8, 0], sizes = [2, 64], strides = [1, 1]} : vector<16x64xf32> to vector<2x64xf32>
    %c6_265 = arith.constant 6 : index
    %c0_266 = arith.constant 0 : index
    %c0_267 = arith.constant 0 : index
    %597 = vector.load %arg6[%c6_265, %c0_266, %c0_267] : memref<8x64x64xf32, #tpu.memory_space<vmem>>, vector<1x64x64xf32>
    %598 = vector.shape_cast %597 : vector<1x64x64xf32> to vector<64x64xf32>
    %cst_268 = arith.constant dense<0.000000e+00> : vector<2x64xf32>
    %599 = tpu.matmul %575, %598, %cst_268 {dimension_numbers = #tpu.dot_dimension_numbers<[1], [0], [0], [1], [0, 0, 1, 1], [], []>} : vector<2x64xf32>, vector<64x64xf32>, vector<2x64xf32> -> vector<2x64xf32>
    %600 = arith.addf %596, %599 : vector<2x64xf32>
    %601 = math.tanh %600 : vector<2x64xf32>
    %602 = vector.extract_strided_slice %409 {offsets = [8, 0], sizes = [2, 64], strides = [1, 1]} : vector<16x64xf32> to vector<2x64xf32>
    %c7_269 = arith.constant 7 : index
    %c0_270 = arith.constant 0 : index
    %c0_271 = arith.constant 0 : index
    %603 = vector.load %arg6[%c7_269, %c0_270, %c0_271] : memref<8x64x64xf32, #tpu.memory_space<vmem>>, vector<1x64x64xf32>
    %604 = vector.shape_cast %603 : vector<1x64x64xf32> to vector<64x64xf32>
    %cst_272 = arith.constant dense<0.000000e+00> : vector<2x64xf32>
    %605 = tpu.matmul %575, %604, %cst_272 {dimension_numbers = #tpu.dot_dimension_numbers<[1], [0], [0], [1], [0, 0, 1, 1], [], []>} : vector<2x64xf32>, vector<64x64xf32>, vector<2x64xf32> -> vector<2x64xf32>
    %606 = arith.addf %602, %605 : vector<2x64xf32>
    %607 = arith.negf %606 : vector<2x64xf32>
    %608 = math.exp %607 : vector<2x64xf32>
    %cst_273 = arith.constant 1.000000e+00 : f32
    %609 = vector.broadcast %cst_273 : f32 to vector<2x64xf32>
    %610 = arith.addf %609, %608 : vector<2x64xf32>
    %611 = arith.divf %609, %610 : vector<2x64xf32>
    %612 = arith.mulf %595, %573 : vector<2x64xf32>
    %613 = arith.mulf %585, %601 : vector<2x64xf32>
    %614 = arith.addf %612, %613 : vector<2x64xf32>
    %615 = math.tanh %614 : vector<2x64xf32>
    %616 = arith.mulf %611, %615 : vector<2x64xf32>
    %617 = vector.extract_strided_slice %400 {offsets = [10, 0], sizes = [2, 64], strides = [1, 1]} : vector<16x64xf32> to vector<2x64xf32>
    %c4_274 = arith.constant 4 : index
    %c0_275 = arith.constant 0 : index
    %c0_276 = arith.constant 0 : index
    %618 = vector.load %arg6[%c4_274, %c0_275, %c0_276] : memref<8x64x64xf32, #tpu.memory_space<vmem>>, vector<1x64x64xf32>
    %619 = vector.shape_cast %618 : vector<1x64x64xf32> to vector<64x64xf32>
    %cst_277 = arith.constant dense<0.000000e+00> : vector<2x64xf32>
    %620 = tpu.matmul %616, %619, %cst_277 {dimension_numbers = #tpu.dot_dimension_numbers<[1], [0], [0], [1], [0, 0, 1, 1], [], []>} : vector<2x64xf32>, vector<64x64xf32>, vector<2x64xf32> -> vector<2x64xf32>
    %621 = arith.addf %617, %620 : vector<2x64xf32>
    %622 = arith.negf %621 : vector<2x64xf32>
    %623 = math.exp %622 : vector<2x64xf32>
    %cst_278 = arith.constant 1.000000e+00 : f32
    %624 = vector.broadcast %cst_278 : f32 to vector<2x64xf32>
    %625 = arith.addf %624, %623 : vector<2x64xf32>
    %626 = arith.divf %624, %625 : vector<2x64xf32>
    %627 = vector.extract_strided_slice %403 {offsets = [10, 0], sizes = [2, 64], strides = [1, 1]} : vector<16x64xf32> to vector<2x64xf32>
    %c5_279 = arith.constant 5 : index
    %c0_280 = arith.constant 0 : index
    %c0_281 = arith.constant 0 : index
    %628 = vector.load %arg6[%c5_279, %c0_280, %c0_281] : memref<8x64x64xf32, #tpu.memory_space<vmem>>, vector<1x64x64xf32>
    %629 = vector.shape_cast %628 : vector<1x64x64xf32> to vector<64x64xf32>
    %cst_282 = arith.constant dense<0.000000e+00> : vector<2x64xf32>
    %630 = tpu.matmul %616, %629, %cst_282 {dimension_numbers = #tpu.dot_dimension_numbers<[1], [0], [0], [1], [0, 0, 1, 1], [], []>} : vector<2x64xf32>, vector<64x64xf32>, vector<2x64xf32> -> vector<2x64xf32>
    %631 = arith.addf %627, %630 : vector<2x64xf32>
    %632 = arith.negf %631 : vector<2x64xf32>
    %633 = math.exp %632 : vector<2x64xf32>
    %cst_283 = arith.constant 1.000000e+00 : f32
    %634 = vector.broadcast %cst_283 : f32 to vector<2x64xf32>
    %635 = arith.addf %634, %633 : vector<2x64xf32>
    %636 = arith.divf %634, %635 : vector<2x64xf32>
    %637 = vector.extract_strided_slice %406 {offsets = [10, 0], sizes = [2, 64], strides = [1, 1]} : vector<16x64xf32> to vector<2x64xf32>
    %c6_284 = arith.constant 6 : index
    %c0_285 = arith.constant 0 : index
    %c0_286 = arith.constant 0 : index
    %638 = vector.load %arg6[%c6_284, %c0_285, %c0_286] : memref<8x64x64xf32, #tpu.memory_space<vmem>>, vector<1x64x64xf32>
    %639 = vector.shape_cast %638 : vector<1x64x64xf32> to vector<64x64xf32>
    %cst_287 = arith.constant dense<0.000000e+00> : vector<2x64xf32>
    %640 = tpu.matmul %616, %639, %cst_287 {dimension_numbers = #tpu.dot_dimension_numbers<[1], [0], [0], [1], [0, 0, 1, 1], [], []>} : vector<2x64xf32>, vector<64x64xf32>, vector<2x64xf32> -> vector<2x64xf32>
    %641 = arith.addf %637, %640 : vector<2x64xf32>
    %642 = math.tanh %641 : vector<2x64xf32>
    %643 = vector.extract_strided_slice %409 {offsets = [10, 0], sizes = [2, 64], strides = [1, 1]} : vector<16x64xf32> to vector<2x64xf32>
    %c7_288 = arith.constant 7 : index
    %c0_289 = arith.constant 0 : index
    %c0_290 = arith.constant 0 : index
    %644 = vector.load %arg6[%c7_288, %c0_289, %c0_290] : memref<8x64x64xf32, #tpu.memory_space<vmem>>, vector<1x64x64xf32>
    %645 = vector.shape_cast %644 : vector<1x64x64xf32> to vector<64x64xf32>
    %cst_291 = arith.constant dense<0.000000e+00> : vector<2x64xf32>
    %646 = tpu.matmul %616, %645, %cst_291 {dimension_numbers = #tpu.dot_dimension_numbers<[1], [0], [0], [1], [0, 0, 1, 1], [], []>} : vector<2x64xf32>, vector<64x64xf32>, vector<2x64xf32> -> vector<2x64xf32>
    %647 = arith.addf %643, %646 : vector<2x64xf32>
    %648 = arith.negf %647 : vector<2x64xf32>
    %649 = math.exp %648 : vector<2x64xf32>
    %cst_292 = arith.constant 1.000000e+00 : f32
    %650 = vector.broadcast %cst_292 : f32 to vector<2x64xf32>
    %651 = arith.addf %650, %649 : vector<2x64xf32>
    %652 = arith.divf %650, %651 : vector<2x64xf32>
    %653 = arith.mulf %636, %614 : vector<2x64xf32>
    %654 = arith.mulf %626, %642 : vector<2x64xf32>
    %655 = arith.addf %653, %654 : vector<2x64xf32>
    %656 = math.tanh %655 : vector<2x64xf32>
    %657 = arith.mulf %652, %656 : vector<2x64xf32>
    %658 = vector.extract_strided_slice %400 {offsets = [12, 0], sizes = [2, 64], strides = [1, 1]} : vector<16x64xf32> to vector<2x64xf32>
    %c4_293 = arith.constant 4 : index
    %c0_294 = arith.constant 0 : index
    %c0_295 = arith.constant 0 : index
    %659 = vector.load %arg6[%c4_293, %c0_294, %c0_295] : memref<8x64x64xf32, #tpu.memory_space<vmem>>, vector<1x64x64xf32>
    %660 = vector.shape_cast %659 : vector<1x64x64xf32> to vector<64x64xf32>
    %cst_296 = arith.constant dense<0.000000e+00> : vector<2x64xf32>
    %661 = tpu.matmul %657, %660, %cst_296 {dimension_numbers = #tpu.dot_dimension_numbers<[1], [0], [0], [1], [0, 0, 1, 1], [], []>} : vector<2x64xf32>, vector<64x64xf32>, vector<2x64xf32> -> vector<2x64xf32>
    %662 = arith.addf %658, %661 : vector<2x64xf32>
    %663 = arith.negf %662 : vector<2x64xf32>
    %664 = math.exp %663 : vector<2x64xf32>
    %cst_297 = arith.constant 1.000000e+00 : f32
    %665 = vector.broadcast %cst_297 : f32 to vector<2x64xf32>
    %666 = arith.addf %665, %664 : vector<2x64xf32>
    %667 = arith.divf %665, %666 : vector<2x64xf32>
    %668 = vector.extract_strided_slice %403 {offsets = [12, 0], sizes = [2, 64], strides = [1, 1]} : vector<16x64xf32> to vector<2x64xf32>
    %c5_298 = arith.constant 5 : index
    %c0_299 = arith.constant 0 : index
    %c0_300 = arith.constant 0 : index
    %669 = vector.load %arg6[%c5_298, %c0_299, %c0_300] : memref<8x64x64xf32, #tpu.memory_space<vmem>>, vector<1x64x64xf32>
    %670 = vector.shape_cast %669 : vector<1x64x64xf32> to vector<64x64xf32>
    %cst_301 = arith.constant dense<0.000000e+00> : vector<2x64xf32>
    %671 = tpu.matmul %657, %670, %cst_301 {dimension_numbers = #tpu.dot_dimension_numbers<[1], [0], [0], [1], [0, 0, 1, 1], [], []>} : vector<2x64xf32>, vector<64x64xf32>, vector<2x64xf32> -> vector<2x64xf32>
    %672 = arith.addf %668, %671 : vector<2x64xf32>
    %673 = arith.negf %672 : vector<2x64xf32>
    %674 = math.exp %673 : vector<2x64xf32>
    %cst_302 = arith.constant 1.000000e+00 : f32
    %675 = vector.broadcast %cst_302 : f32 to vector<2x64xf32>
    %676 = arith.addf %675, %674 : vector<2x64xf32>
    %677 = arith.divf %675, %676 : vector<2x64xf32>
    %678 = vector.extract_strided_slice %406 {offsets = [12, 0], sizes = [2, 64], strides = [1, 1]} : vector<16x64xf32> to vector<2x64xf32>
    %c6_303 = arith.constant 6 : index
    %c0_304 = arith.constant 0 : index
    %c0_305 = arith.constant 0 : index
    %679 = vector.load %arg6[%c6_303, %c0_304, %c0_305] : memref<8x64x64xf32, #tpu.memory_space<vmem>>, vector<1x64x64xf32>
    %680 = vector.shape_cast %679 : vector<1x64x64xf32> to vector<64x64xf32>
    %cst_306 = arith.constant dense<0.000000e+00> : vector<2x64xf32>
    %681 = tpu.matmul %657, %680, %cst_306 {dimension_numbers = #tpu.dot_dimension_numbers<[1], [0], [0], [1], [0, 0, 1, 1], [], []>} : vector<2x64xf32>, vector<64x64xf32>, vector<2x64xf32> -> vector<2x64xf32>
    %682 = arith.addf %678, %681 : vector<2x64xf32>
    %683 = math.tanh %682 : vector<2x64xf32>
    %684 = vector.extract_strided_slice %409 {offsets = [12, 0], sizes = [2, 64], strides = [1, 1]} : vector<16x64xf32> to vector<2x64xf32>
    %c7_307 = arith.constant 7 : index
    %c0_308 = arith.constant 0 : index
    %c0_309 = arith.constant 0 : index
    %685 = vector.load %arg6[%c7_307, %c0_308, %c0_309] : memref<8x64x64xf32, #tpu.memory_space<vmem>>, vector<1x64x64xf32>
    %686 = vector.shape_cast %685 : vector<1x64x64xf32> to vector<64x64xf32>
    %cst_310 = arith.constant dense<0.000000e+00> : vector<2x64xf32>
    %687 = tpu.matmul %657, %686, %cst_310 {dimension_numbers = #tpu.dot_dimension_numbers<[1], [0], [0], [1], [0, 0, 1, 1], [], []>} : vector<2x64xf32>, vector<64x64xf32>, vector<2x64xf32> -> vector<2x64xf32>
    %688 = arith.addf %684, %687 : vector<2x64xf32>
    %689 = arith.negf %688 : vector<2x64xf32>
    %690 = math.exp %689 : vector<2x64xf32>
    %cst_311 = arith.constant 1.000000e+00 : f32
    %691 = vector.broadcast %cst_311 : f32 to vector<2x64xf32>
    %692 = arith.addf %691, %690 : vector<2x64xf32>
    %693 = arith.divf %691, %692 : vector<2x64xf32>
    %694 = arith.mulf %677, %655 : vector<2x64xf32>
    %695 = arith.mulf %667, %683 : vector<2x64xf32>
    %696 = arith.addf %694, %695 : vector<2x64xf32>
    %697 = math.tanh %696 : vector<2x64xf32>
    %698 = arith.mulf %693, %697 : vector<2x64xf32>
    %699 = vector.extract_strided_slice %400 {offsets = [14, 0], sizes = [2, 64], strides = [1, 1]} : vector<16x64xf32> to vector<2x64xf32>
    %c4_312 = arith.constant 4 : index
    %c0_313 = arith.constant 0 : index
    %c0_314 = arith.constant 0 : index
    %700 = vector.load %arg6[%c4_312, %c0_313, %c0_314] : memref<8x64x64xf32, #tpu.memory_space<vmem>>, vector<1x64x64xf32>
    %701 = vector.shape_cast %700 : vector<1x64x64xf32> to vector<64x64xf32>
    %cst_315 = arith.constant dense<0.000000e+00> : vector<2x64xf32>
    %702 = tpu.matmul %698, %701, %cst_315 {dimension_numbers = #tpu.dot_dimension_numbers<[1], [0], [0], [1], [0, 0, 1, 1], [], []>} : vector<2x64xf32>, vector<64x64xf32>, vector<2x64xf32> -> vector<2x64xf32>
    %703 = arith.addf %699, %702 : vector<2x64xf32>
    %704 = arith.negf %703 : vector<2x64xf32>
    %705 = math.exp %704 : vector<2x64xf32>
    %cst_316 = arith.constant 1.000000e+00 : f32
    %706 = vector.broadcast %cst_316 : f32 to vector<2x64xf32>
    %707 = arith.addf %706, %705 : vector<2x64xf32>
    %708 = arith.divf %706, %707 : vector<2x64xf32>
    %709 = vector.extract_strided_slice %403 {offsets = [14, 0], sizes = [2, 64], strides = [1, 1]} : vector<16x64xf32> to vector<2x64xf32>
    %c5_317 = arith.constant 5 : index
    %c0_318 = arith.constant 0 : index
    %c0_319 = arith.constant 0 : index
    %710 = vector.load %arg6[%c5_317, %c0_318, %c0_319] : memref<8x64x64xf32, #tpu.memory_space<vmem>>, vector<1x64x64xf32>
    %711 = vector.shape_cast %710 : vector<1x64x64xf32> to vector<64x64xf32>
    %cst_320 = arith.constant dense<0.000000e+00> : vector<2x64xf32>
    %712 = tpu.matmul %698, %711, %cst_320 {dimension_numbers = #tpu.dot_dimension_numbers<[1], [0], [0], [1], [0, 0, 1, 1], [], []>} : vector<2x64xf32>, vector<64x64xf32>, vector<2x64xf32> -> vector<2x64xf32>
    %713 = arith.addf %709, %712 : vector<2x64xf32>
    %714 = arith.negf %713 : vector<2x64xf32>
    %715 = math.exp %714 : vector<2x64xf32>
    %cst_321 = arith.constant 1.000000e+00 : f32
    %716 = vector.broadcast %cst_321 : f32 to vector<2x64xf32>
    %717 = arith.addf %716, %715 : vector<2x64xf32>
    %718 = arith.divf %716, %717 : vector<2x64xf32>
    %719 = vector.extract_strided_slice %406 {offsets = [14, 0], sizes = [2, 64], strides = [1, 1]} : vector<16x64xf32> to vector<2x64xf32>
    %c6_322 = arith.constant 6 : index
    %c0_323 = arith.constant 0 : index
    %c0_324 = arith.constant 0 : index
    %720 = vector.load %arg6[%c6_322, %c0_323, %c0_324] : memref<8x64x64xf32, #tpu.memory_space<vmem>>, vector<1x64x64xf32>
    %721 = vector.shape_cast %720 : vector<1x64x64xf32> to vector<64x64xf32>
    %cst_325 = arith.constant dense<0.000000e+00> : vector<2x64xf32>
    %722 = tpu.matmul %698, %721, %cst_325 {dimension_numbers = #tpu.dot_dimension_numbers<[1], [0], [0], [1], [0, 0, 1, 1], [], []>} : vector<2x64xf32>, vector<64x64xf32>, vector<2x64xf32> -> vector<2x64xf32>
    %723 = arith.addf %719, %722 : vector<2x64xf32>
    %724 = math.tanh %723 : vector<2x64xf32>
    %725 = vector.extract_strided_slice %409 {offsets = [14, 0], sizes = [2, 64], strides = [1, 1]} : vector<16x64xf32> to vector<2x64xf32>
    %c7_326 = arith.constant 7 : index
    %c0_327 = arith.constant 0 : index
    %c0_328 = arith.constant 0 : index
    %726 = vector.load %arg6[%c7_326, %c0_327, %c0_328] : memref<8x64x64xf32, #tpu.memory_space<vmem>>, vector<1x64x64xf32>
    %727 = vector.shape_cast %726 : vector<1x64x64xf32> to vector<64x64xf32>
    %cst_329 = arith.constant dense<0.000000e+00> : vector<2x64xf32>
    %728 = tpu.matmul %698, %727, %cst_329 {dimension_numbers = #tpu.dot_dimension_numbers<[1], [0], [0], [1], [0, 0, 1, 1], [], []>} : vector<2x64xf32>, vector<64x64xf32>, vector<2x64xf32> -> vector<2x64xf32>
    %729 = arith.addf %725, %728 : vector<2x64xf32>
    %730 = arith.negf %729 : vector<2x64xf32>
    %731 = math.exp %730 : vector<2x64xf32>
    %cst_330 = arith.constant 1.000000e+00 : f32
    %732 = vector.broadcast %cst_330 : f32 to vector<2x64xf32>
    %733 = arith.addf %732, %731 : vector<2x64xf32>
    %734 = arith.divf %732, %733 : vector<2x64xf32>
    %735 = arith.mulf %718, %696 : vector<2x64xf32>
    %736 = arith.mulf %708, %724 : vector<2x64xf32>
    %737 = arith.addf %735, %736 : vector<2x64xf32>
    %738 = math.tanh %737 : vector<2x64xf32>
    %739 = arith.mulf %734, %738 : vector<2x64xf32>
    %740 = vector.extract_strided_slice %452 {offsets = [0, 0], sizes = [2, 32], strides = [1, 1]} : vector<2x64xf32> to vector<2x32xf32>
    %741 = vector.extract_strided_slice %739 {offsets = [0, 32], sizes = [2, 32], strides = [1, 1]} : vector<2x64xf32> to vector<2x32xf32>
    %742 = tpu.concatenate %740, %741 in 1 : vector<2x32xf32>, vector<2x32xf32> -> vector<2x64xf32>
    %743 = vector.extract_strided_slice %493 {offsets = [0, 0], sizes = [2, 32], strides = [1, 1]} : vector<2x64xf32> to vector<2x32xf32>
    %744 = vector.extract_strided_slice %698 {offsets = [0, 32], sizes = [2, 32], strides = [1, 1]} : vector<2x64xf32> to vector<2x32xf32>
    %745 = tpu.concatenate %743, %744 in 1 : vector<2x32xf32>, vector<2x32xf32> -> vector<2x64xf32>
    %746 = vector.extract_strided_slice %534 {offsets = [0, 0], sizes = [2, 32], strides = [1, 1]} : vector<2x64xf32> to vector<2x32xf32>
    %747 = vector.extract_strided_slice %657 {offsets = [0, 32], sizes = [2, 32], strides = [1, 1]} : vector<2x64xf32> to vector<2x32xf32>
    %748 = tpu.concatenate %746, %747 in 1 : vector<2x32xf32>, vector<2x32xf32> -> vector<2x64xf32>
    %749 = vector.extract_strided_slice %575 {offsets = [0, 0], sizes = [2, 32], strides = [1, 1]} : vector<2x64xf32> to vector<2x32xf32>
    %750 = vector.extract_strided_slice %616 {offsets = [0, 32], sizes = [2, 32], strides = [1, 1]} : vector<2x64xf32> to vector<2x32xf32>
    %751 = tpu.concatenate %749, %750 in 1 : vector<2x32xf32>, vector<2x32xf32> -> vector<2x64xf32>
    %752 = vector.extract_strided_slice %616 {offsets = [0, 0], sizes = [2, 32], strides = [1, 1]} : vector<2x64xf32> to vector<2x32xf32>
    %753 = vector.extract_strided_slice %575 {offsets = [0, 32], sizes = [2, 32], strides = [1, 1]} : vector<2x64xf32> to vector<2x32xf32>
    %754 = tpu.concatenate %752, %753 in 1 : vector<2x32xf32>, vector<2x32xf32> -> vector<2x64xf32>
    %755 = vector.extract_strided_slice %657 {offsets = [0, 0], sizes = [2, 32], strides = [1, 1]} : vector<2x64xf32> to vector<2x32xf32>
    %756 = vector.extract_strided_slice %534 {offsets = [0, 32], sizes = [2, 32], strides = [1, 1]} : vector<2x64xf32> to vector<2x32xf32>
    %757 = tpu.concatenate %755, %756 in 1 : vector<2x32xf32>, vector<2x32xf32> -> vector<2x64xf32>
    %758 = vector.extract_strided_slice %698 {offsets = [0, 0], sizes = [2, 32], strides = [1, 1]} : vector<2x64xf32> to vector<2x32xf32>
    %759 = vector.extract_strided_slice %493 {offsets = [0, 32], sizes = [2, 32], strides = [1, 1]} : vector<2x64xf32> to vector<2x32xf32>
    %760 = tpu.concatenate %758, %759 in 1 : vector<2x32xf32>, vector<2x32xf32> -> vector<2x64xf32>
    %761 = vector.extract_strided_slice %739 {offsets = [0, 0], sizes = [2, 32], strides = [1, 1]} : vector<2x64xf32> to vector<2x32xf32>
    %762 = vector.extract_strided_slice %452 {offsets = [0, 32], sizes = [2, 32], strides = [1, 1]} : vector<2x64xf32> to vector<2x32xf32>
    %763 = tpu.concatenate %761, %762 in 1 : vector<2x32xf32>, vector<2x32xf32> -> vector<2x64xf32>
    %764 = vector.shape_cast %742 : vector<2x64xf32> to vector<2x1x64xf32>
    %765 = vector.shape_cast %745 : vector<2x64xf32> to vector<2x1x64xf32>
    %766 = vector.shape_cast %748 : vector<2x64xf32> to vector<2x1x64xf32>
    %767 = vector.shape_cast %751 : vector<2x64xf32> to vector<2x1x64xf32>
    %768 = vector.shape_cast %754 : vector<2x64xf32> to vector<2x1x64xf32>
    %769 = vector.shape_cast %757 : vector<2x64xf32> to vector<2x1x64xf32>
    %770 = vector.shape_cast %760 : vector<2x64xf32> to vector<2x1x64xf32>
    %771 = vector.shape_cast %763 : vector<2x64xf32> to vector<2x1x64xf32>
    %772 = tpu.concatenate %764, %765, %766, %767, %768, %769, %770, %771 in 1 : vector<2x1x64xf32>, vector<2x1x64xf32>, vector<2x1x64xf32>, vector<2x1x64xf32>, vector<2x1x64xf32>, vector<2x1x64xf32>, vector<2x1x64xf32>, vector<2x1x64xf32> -> vector<2x8x64xf32>
    %773 = vector.extract_strided_slice %772 {offsets = [0, 7, 0], sizes = [2, 1, 64], strides = [1, 1, 1]} : vector<2x8x64xf32> to vector<2x1x64xf32>
    "tpu.trace_start"() <{level = 10 : i32, message = "btd,bsd->bts"}> : () -> ()
    %cst_331 = arith.constant dense<0.000000e+00> : vector<2x8x1xf32>
    %774 = tpu.matmul %772, %773, %cst_331 {dimension_numbers = #tpu.dot_dimension_numbers<[2], [2], [1], [1], [0, 0, 0, 1, 1, 1], [0], [0]>} : vector<2x8x64xf32>, vector<2x1x64xf32>, vector<2x8x1xf32> -> vector<2x8x1xf32>
    "tpu.trace_stop"() : () -> ()
    %775 = vector.shape_cast %774 : vector<2x8x1xf32> to vector<2x8xf32>
    %cst_332 = arith.constant dense<0xFF800000> : vector<2xf32>
    %776 = vector.multi_reduction <maximumf>, %775, %cst_332 [1] : vector<2x8xf32> to vector<2xf32>
    %777 = vector.shape_cast %776 : vector<2xf32> to vector<2x1xf32>
    %778 = vector.broadcast %777 : vector<2x1xf32> to vector<2x8xf32>
    %779 = arith.subf %775, %778 : vector<2x8xf32>
    %780 = math.exp %779 : vector<2x8xf32>
    %cst_333 = arith.constant dense<0.000000e+00> : vector<2xf32>
    %781 = vector.multi_reduction <add>, %780, %cst_333 [1] : vector<2x8xf32> to vector<2xf32>
    %782 = vector.shape_cast %781 : vector<2xf32> to vector<2x1xf32>
    %783 = vector.broadcast %782 : vector<2x1xf32> to vector<2x8xf32>
    %784 = arith.divf %780, %783 : vector<2x8xf32>
    %785 = vector.shape_cast %784 : vector<2x8xf32> to vector<2x1x8xf32>
    "tpu.trace_start"() <{level = 10 : i32, message = "bst,btd->bsd"}> : () -> ()
    %cst_334 = arith.constant dense<0.000000e+00> : vector<2x1x64xf32>
    %786 = tpu.matmul %785, %772, %cst_334 {dimension_numbers = #tpu.dot_dimension_numbers<[2], [1], [1], [2], [0, 0, 0, 1, 1, 2], [0], [0]>} : vector<2x1x8xf32>, vector<2x8x64xf32>, vector<2x1x64xf32> -> vector<2x1x64xf32>
    "tpu.trace_stop"() : () -> ()
    %787 = vector.shape_cast %786 : vector<2x1x64xf32> to vector<2x64xf32>
    %c0_335 = arith.constant 0 : index
    %c0_336 = arith.constant 0 : index
    %788 = vector.load %arg7[%c0_335, %c0_336] : memref<64x5xf32, #tpu.memory_space<vmem>>, vector<64x5xf32>
    %cst_337 = arith.constant dense<0.000000e+00> : vector<2x5xf32>
    %789 = tpu.matmul %787, %788, %cst_337 {dimension_numbers = #tpu.dot_dimension_numbers<[1], [0], [0], [1], [0, 0, 1, 1], [], []>} : vector<2x64xf32>, vector<64x5xf32>, vector<2x5xf32> -> vector<2x5xf32>
    %c0_338 = arith.constant 0 : index
    %c0_339 = arith.constant 0 : index
    %790 = vector.load %arg8[%c0_338, %c0_339] : memref<1x5xf32, #tpu.memory_space<vmem>>, vector<1x5xf32>
    %791 = vector.broadcast %790 : vector<1x5xf32> to vector<2x5xf32>
    %792 = arith.addf %789, %791 : vector<2x5xf32>
    %c0_340 = arith.constant 0 : index
    %c0_341 = arith.constant 0 : index
    %793 = vector.load %arg9[%c0_340, %c0_341] : memref<2x5xf32, #tpu.memory_space<vmem>>, vector<2x5xf32>
    tpu.vector_store %arg9[%c0_340, %c0_341], %792 {strides = array<i32>} : memref<2x5xf32, #tpu.memory_space<vmem>>, vector<2x5xf32>,
    return
  }
}

</mosaic_0001>

<bundles_post_ra>
// kernel: lstm_attention_forward.1
= control target key start
LH: loop header
LB: loop body
LE: loop exit
PB: predicated region body
PF: predicated region fallthrough
CT: control target
= control target key end

     0   :  { %vm43_vm0 = vcmask 130048   ;;  %s5718_s0 = inlined_call_operand.vmem [shape: f32[16,16], index: 0, kind: input, shape index: {}]   ;;  %s5719_s1 = inlined_call_operand.vmem [shape: f32[16,16], index: 1, kind: input, shape index: {}]   ;;  %s5720_s2 = inlined_call_operand.vmem [shape: f32[2,16,128], index: 2, kind: input, shape index: {}]   ;;  %s5721_s3 = inlined_call_operand.vmem [shape: f32[2,1,128], index: 3, kind: input, shape index: {}]   ;;  %s5722_s4 = inlined_call_operand.vmem [shape: f32[2,64,128], index: 4, kind: input, shape index: {}]   ;;  %s5723_s5 = inlined_call_operand.vmem [shape: f32[2,1,128], index: 5, kind: input, shape index: {}]   ;;  %s5724_s6 = inlined_call_operand.vmem [shape: f32[8,64,64], index: 6, kind: input, shape index: {}]   ;;  %s5725_s7 = inlined_call_operand.vmem [shape: f32[64,5], index: 7, kind: input, shape index: {}]   ;;  %s5726_s8 = inlined_call_operand.vmem [shape: f32[1,5], index: 8, kind: input, shape index: {}]   ;;  %s5727_s9 = inlined_call_operand.hbm [shape: f32[2,5], index: 9, kind: output, shape index: {}]  }
   0x1   :  { %v38_v0 = vld [vmem:[%s5720_s2 + $0x8] sm:$0xff]  ;;  %v3334_v1 = vld [vmem:[%s5720_s2 + $0x18] sm:$0xff]  ;;  %v37_v2 = vld [vmem:[%s5720_s2] sm:$0xff] }
   0x2   :  { %64 = vmatpush.msra.mxu0 %v38_v0  ;;  %101 = vmatpush.msra.mxu1 %v3334_v1  ;;  %v3333_v3 = vld [vmem:[%s5720_s2 + $0x10] sm:$0xff]  ;;  %v33_v4 = vld [vmem:[%s5718_s0] sm:$0xff]  ;;  %v3959_v6 = vld [vmem:[%s5724_s6 + $0xb8] sm:$0xff] }
   0x3   :  { %v35_v5 = vld [vmem:[%s5719_s1] sm:$0xff]  ;;  %v3966_v7 = vld [vmem:[%s5724_s6 + $0xb0] sm:$0xff]  ;;  %v3971_v8 = vld [vmem:[%s5724_s6 + $0x38] sm:$0xff] }
   0x4   :  { %65 = vmatpush.msra.mxu0 %v37_v2  ;;  %102 = vmatpush.msra.mxu1 %v3333_v3  ;;  %v3978_v9 = vld [vmem:[%s5724_s6 + $0x30] sm:$0xff]  ;;  %v3983_v10 = vld [vmem:[%s5724_s6 + $0xa8] sm:$0xff]  ;;  %v3995_v12 = vld [vmem:[%s5724_s6 + $0x78] sm:$0xff] }
   0x5   :  { %3331 = vmatmul.msk.f32.vlgmr.msra.gmra.mxu0 %vm43_vm0, %v33_v4  ;;  %3336 = vmatmul.msk.f32.vlgmr.msra.gmra.mxu1 %vm43_vm0, %v35_v5  ;;  %v3988_v11 = vld [vmem:[%s5724_s6 + $0x28] sm:$0xff]  ;;  %v4000_v13 = vld [vmem:[%s5724_s6 + $0x70] sm:$0xff]  ;;  %v4005_v14 = vld [vmem:[%s5724_s6 + $0xa0] sm:$0xff] }
   0x6   :  { %277 = vmatpush.msrb.mxu0 %v3959_v6  ;;  %179 = vmatpush.msra.mxu2 %v3971_v8  ;;  %v4010_v15 = vld [vmem:[%s5724_s6 + $0x20] sm:$0xff]  ;;  %v34_v16 = vld [vmem:[%s5718_s0 + $0x8] sm:$0xff]  ;;  %v4024_v18 = vld [vmem:[%s5724_s6 + $0xf8] sm:$0xff] }
   0x7   :  { %228 = vmatpush.msra.mxu3 %v3995_v12  ;;  %v36_v17 = vld [vmem:[%s5719_s1 + $0x8] sm:$0xff]  ;;  %v4029_v19 = vld [vmem:[%s5724_s6 + $0x98] sm:$0xff]  ;;  %308 = vmatpush.msrb.mxu1 %v4024_v18  ;;  %v4042_v21 = vld [vmem:[%s5724_s6 + $0x90] sm:$0xff] }
   0x8   :  { %278 = vmatpush.msrb.mxu0 %v3966_v7  ;;  %180 = vmatpush.msra.mxu2 %v3978_v9  ;;  %v4034_v20 = vld [vmem:[%s5724_s6 + $0x18] sm:$0xff]  ;;  %v4048_v22 = vld [vmem:[%s5724_s6 + $0x68] sm:$0xff]  ;;  %v4053_v23 = vld [vmem:[%s5724_s6 + $0xf0] sm:$0xff] }
   0x9   :  { %229 = vmatpush.msra.mxu3 %v4000_v13  ;;  %v4060_v24 = vld [vmem:[%s5724_s6 + $0x88] sm:$0xff]  ;;  %v4065_v25 = vld [vmem:[%s5724_s6 + $0x10] sm:$0xff]  ;;  %v4075_v27 = vld [vmem:[%s5724_s6 + $0x60] sm:$0xff]  ;;  %309 = vmatpush.msrb.mxu1 %v4053_v23 }
   0xa   :  { %279 = vmatpush.msrb.mxu0 %v3983_v10  ;;  %181 = vmatpush.msra.mxu2 %v3988_v11  ;;  %v4070_v26 = vld [vmem:[%s5724_s6 + $0x8] sm:$0xff]  ;;  %v4091_v29 = vld [vmem:[%s5724_s6 + $0x58] sm:$0xff]  ;;  %v4096_v30 = vld [vmem:[%s5724_s6 + $0xe0] sm:$0xff] }
   0xb   :  { %v4082_v28 = vld [vmem:[%s5724_s6 + $0xe8] sm:$0xff]  ;;  %230 = vmatpush.msra.mxu3 %v4048_v22 }
   0xc   :  { %280 = vmatpush.msrb.mxu0 %v4005_v14  ;;  %182 = vmatpush.msra.mxu2 %v4010_v15 }
   0xd   :  { %3332 = vmatmul.msk.f32.gmra.mxu0 %vm43_vm0, %v34_v16  ;;  %3337 = vmatmul.msk.f32.gmra.mxu1 %vm43_vm0, %v36_v17 }
   0xe   :  { %281 = vmatpush.msrb.mxu0 %v4029_v19  ;;  %183 = vmatpush.msra.mxu2 %v4034_v20 }
  0x10   :  { %282 = vmatpush.msrb.mxu0 %v4042_v21  ;;  %184 = vmatpush.msra.mxu2 %v4065_v25 }
  0x11   :  { %14 = vsyncpa [#allocation3], 0  ;;  %v4101_v31 = vld [vmem:[%s5724_s6 + $0x80] sm:$0xff]  ;;  %231 = vmatpush.msra.mxu3 %v4075_v27  ;;  %310 = vmatpush.msrb.mxu1 %v4082_v28  ;;  %v4116_v33 = vld [vmem:[%s5724_s6 + $0x50] sm:$0xff]  ;;  %v5728_v35 = vmov 0.0   ;;  %s3883_s2 = smov 32  }
  0x12   :  { %v4106_v32 = vld [vmem:[%s5724_s6] sm:$0xff]  ;;  %283 = vmatpush.msrb.mxu0 %v4060_v24  ;;  %185 = vmatpush.msra.mxu2 %v4070_v26  ;;  %v4122_v34 = vld [vmem:[%s5724_s6 + $0xd8] sm:$0xff]  ;;  %v4131_v36 = vld [vmem:[%s5724_s6 + $0x48] sm:$0xff]  ;;  %s3884_s23 = smov 64   ;;  %s3885_s24 = smov 96   ;;  %vm118_vm1 = vcmask 261120  }
  0x13   :  { %232 = vmatpush.msra.mxu3 %v4091_v29  ;;  %311 = vmatpush.msrb.mxu1 %v4096_v30  ;;  %v4136_v37 = vld [vmem:[%s5724_s6 + $0xd0] sm:$0xff]  ;;  %v4143_v38 = vld [vmem:[%s5724_s6 + $0x40] sm:$0xff]  ;;  %v4148_v39 = vld [vmem:[%s5724_s6 + $0xc8] sm:$0xff]  ;;  %vm167_vm14 = vcmask 523264   ;;  %s3322_s29 = sshll.u32 %s5727_s9, 4  ;;  %s3323_s29 = int_to_ptr.hbm [resolvable:$true] %s3322_s29 }
  0x14   :  { %284 = vmatpush.msrb.mxu0 %v4101_v31  ;;  %186 = vmatpush.msra.mxu2 %v4106_v32  ;;  %v4206_v40 = vld [vmem:[%s5724_s6 + $0xc0] sm:$0xff] }
  0x15   :  { %285 = vmatmul.f32.vlgmr.msrb.gmra.mxu0 %v5728_v35  ;;  %187 = vmatmul.f32.vlgmr.msra.gmra.mxu2 %v5728_v35  ;;  %v3523_v41 = vld [vmem:[%s5721_s3] ss:$0 sm:$0xff]  ;;  %v3524_v42 = vld [vmem:[%s5721_s3 + $0x1] ss:$0 sm:$0xff] }
  0x16   :  { %233 = vmatpush.msra.mxu3 %v4116_v33  ;;  %312 = vmatpush.msrb.mxu1 %v4122_v34 }
  0x17   :  { %356 = vmatpush.msrb.mxu2 %v3971_v8  ;;  %442 = vmatpush.msra.mxu0 %v3959_v6 }
  0x18   :  { %234 = vmatpush.msra.mxu3 %v4131_v36  ;;  %313 = vmatpush.msrb.mxu1 %v4136_v37 }
  0x19   :  { %357 = vmatpush.msrb.mxu2 %v3978_v9  ;;  %443 = vmatpush.msra.mxu0 %v3966_v7 }
  0x1a   :  { %235 = vmatpush.msra.mxu3 %v4143_v38  ;;  %314 = vmatpush.msrb.mxu1 %v4148_v39 }
  0x1b   :  { %236 = vmatmul.f32.vlgmr.msra.gmra.mxu3 %v5728_v35  ;;  %358 = vmatpush.msrb.mxu2 %v3988_v11 }
  0x1c   :  { %399 = vmatpush.msrb.mxu3 %v3995_v12  ;;  %444 = vmatpush.msra.mxu0 %v3983_v10 }
  0x1d   :  { %359 = vmatpush.msrb.mxu2 %v4010_v15  ;;  %315 = vmatpush.msrb.mxu1 %v4206_v40 }
  0x1e   :  { %400 = vmatpush.msrb.mxu3 %v4000_v13  ;;  %445 = vmatpush.msra.mxu0 %v4005_v14 }
  0x1f   :  { %360 = vmatpush.msrb.mxu2 %v4034_v20  ;;  %316 = vmatmul.f32.vlgmr.msrb.gmra.mxu1 %v5728_v35 }
  0x20   :  { %401 = vmatpush.msrb.mxu3 %v4048_v22  ;;  %446 = vmatpush.msra.mxu0 %v4029_v19 }
  0x21   :  { %361 = vmatpush.msrb.mxu2 %v4065_v25  ;;  %467 = vmatpush.msra.mxu1 %v4024_v18 }
  0x22   :  { %402 = vmatpush.msrb.mxu3 %v4075_v27  ;;  %447 = vmatpush.msra.mxu0 %v4042_v21 }
  0x23   :  { %362 = vmatpush.msrb.mxu2 %v4070_v26  ;;  %468 = vmatpush.msra.mxu1 %v4053_v23 }
  0x24   :  { %403 = vmatpush.msrb.mxu3 %v4091_v29  ;;  %448 = vmatpush.msra.mxu0 %v4060_v24 }
  0x25   :  { %363 = vmatpush.msrb.mxu2 %v4106_v32  ;;  %469 = vmatpush.msra.mxu1 %v4082_v28 }
  0x26   :  { %404 = vmatpush.msrb.mxu3 %v4116_v33  ;;  %449 = vmatpush.msra.mxu0 %v4101_v31 }
  0x27   :  { %522 = vmatpush.msra.mxu2 %v3971_v8  ;;  %470 = vmatpush.msra.mxu1 %v4096_v30 }
  0x28   :  { %608 = vmatpush.msrb.mxu0 %v3959_v6  ;;  %405 = vmatpush.msrb.mxu3 %v4131_v36 }
  0x29   :  { %523 = vmatpush.msra.mxu2 %v3978_v9  ;;  %471 = vmatpush.msra.mxu1 %v4122_v34 }
  0x2a   :  { %609 = vmatpush.msrb.mxu0 %v3966_v7  ;;  %406 = vmatpush.msrb.mxu3 %v4143_v38 }
  0x2b   :  { %524 = vmatpush.msra.mxu2 %v3988_v11  ;;  %472 = vmatpush.msra.mxu1 %v4136_v37 }
  0x2c   :  { %565 = vmatpush.msra.mxu3 %v3995_v12  ;;  %610 = vmatpush.msrb.mxu0 %v3983_v10 }
  0x2d   :  { %525 = vmatpush.msra.mxu2 %v4010_v15  ;;  %473 = vmatpush.msra.mxu1 %v4148_v39 }
  0x2e   :  { %566 = vmatpush.msra.mxu3 %v4000_v13  ;;  %611 = vmatpush.msrb.mxu0 %v4005_v14 }
  0x2f   :  { %526 = vmatpush.msra.mxu2 %v4034_v20  ;;  %474 = vmatpush.msra.mxu1 %v4206_v40 }
  0x30   :  { %567 = vmatpush.msra.mxu3 %v4048_v22  ;;  %612 = vmatpush.msrb.mxu0 %v4029_v19 }
  0x31   :  { %527 = vmatpush.msra.mxu2 %v4065_v25  ;;  %633 = vmatpush.msrb.mxu1 %v4024_v18 }
  0x32   :  { %568 = vmatpush.msra.mxu3 %v4075_v27  ;;  %613 = vmatpush.msrb.mxu0 %v4042_v21 }
  0x33   :  { %528 = vmatpush.msra.mxu2 %v4070_v26  ;;  %634 = vmatpush.msrb.mxu1 %v4053_v23 }
  0x34   :  { %569 = vmatpush.msra.mxu3 %v4091_v29  ;;  %614 = vmatpush.msrb.mxu0 %v4060_v24 }
  0x35   :  { %529 = vmatpush.msra.mxu2 %v4106_v32  ;;  %635 = vmatpush.msrb.mxu1 %v4082_v28 }
  0x36   :  { %570 = vmatpush.msra.mxu3 %v4116_v33  ;;  %615 = vmatpush.msrb.mxu0 %v4101_v31 }
  0x37   :  { %636 = vmatpush.msrb.mxu1 %v4096_v30 }
  0x38   :  { %571 = vmatpush.msra.mxu3 %v4131_v36 }
  0x39   :  { %637 = vmatpush.msrb.mxu1 %v4122_v34 }
  0x3a   :  { %572 = vmatpush.msra.mxu3 %v4143_v38 }
  0x3b   :  { %638 = vmatpush.msrb.mxu1 %v4136_v37 }
  0x3d   :  { %639 = vmatpush.msrb.mxu1 %v4148_v39 }
  0x3f   :  { %640 = vmatpush.msrb.mxu1 %v4206_v40 }
  0x82   :  { %v67_v43 = vpop.f32.mrf.mxu0  ;;  %v104_v44 = vpop.f32.mrf.mxu1 }
  0x83   :  { %v68_v45 = vadd.f32 %v3523_v41, %v67_v43  ;;  %v105_v46 = vadd.f32 %v3524_v42, %v104_v44 }
  0x85   :  { %112 = vrot.lane.b32.xlu0 %v105_v46, %s3883_s2  ;;  %131 = vrot.lane.b32.xlu2 %v68_v45, %s3884_s23 }
  0x86   :  { %145 = vrot.lane.b32.xlu1 %v68_v45, %s3883_s2 }
  0x8a   :  { %v107_v47 = vpop.f32.mrf.mxu1  ;;  %v70_v48 = vpop.f32.mrf.mxu0 }
  0x8b   :  { %v4238_v49 = vadd.f32 %v3524_v42, %v107_v47  ;;  %v4240_v50 = vadd.f32 %v3523_v41, %v70_v48 }
  0x8d   :  { %137 = vrot.lane.b32.xlu2 %v105_v46, %s3885_s24  ;;  %123 = vrot.lane.b32.xlu0 %v68_v45, %s3885_s24  ;;  %5740 = vst [vmem:[#allocation5_spill] sm:$0xff] %v4240_v50 }
  0x8e   :  { %151 = vrot.lane.b32.xlu1 %v105_v46, %s3884_s23 }
  0x92   :  { %v286_v48 = vpop.f32.mrf.mxu0 }
  0x95   :  { %114 = vrot.lane.b32.xlu0 %v4238_v49, %s3883_s2  ;;  %147 = vrot.lane.b32.xlu2 %v4240_v50, %s3883_s2 }
  0x96   :  { %125 = vrot.lane.b32.xlu1 %v4240_v50, %s3885_s24 }
  0x98   :  { %v188_v51 = vpop.f32.mrf.mxu2 }
  0x9c   :  { %v317_v59 = vpop.f32.mrf.mxu1 }
  0x9d   :  { %153 = vrot.lane.b32.xlu0 %v4238_v49, %s3884_s23  ;;  %139 = vrot.lane.b32.xlu2 %v4238_v49, %s3885_s24 }
  0x9e   :  { %133 = vrot.lane.b32.xlu1 %v4240_v50, %s3884_s23  ;;  %v237_v57 = vpop.f32.mrf.mxu3 }
  0xdf   :  { %v132_v3 = vpop.permute.xlu2 %131 }
  0xe7   :  { %v138_v44 = vpop.permute.xlu2 %137 }
  0xe8   :  { %v4267_v47 = vsel %vm118_vm1, %v132_v3, %v138_v44 }
  0xf7   :  { %v113_v52 = vpop.permute.xlu0 %112 }
  0xf8   :  { %v4255_v53 = vsel %vm118_vm1, %v68_v45, %v113_v52  ;;  %v146_v54 = vpop.permute.xlu1 %145 }
  0xf9   :  { %v191_v55 = vadd.f32 %v188_v51, %v4255_v53 }
  0xfb   :  { %v3338_v56 = vmul.f32 -1.442695, %v191_v55 }
  0xfd   :  { %3528 = vpow2.f32 %v3338_v56 }
  0xff   :  { %v124_v58 = vpop.permute.xlu0 %123 }
 0x100   :  { %v152_v60 = vpop.permute.xlu1 %151  ;;  %v4259_v61 = vsel %vm118_vm1, %v124_v58, %v105_v46 }
 0x101   :  { %v4262_v62 = vsel %vm118_vm1, %v146_v54, %v152_v60  ;;  %v240_v63 = vadd.f32 %v237_v57, %v4259_v61  ;;  %v289_v54 = vadd.f32 %v286_v48, %v4267_v47 }
 0x102   :  { %v320_v0 = vadd.f32 %v317_v59, %v4262_v62 }
 0x103   :  { %v3529_v1 = vpop.eup %3528  ;;  %v3347_v2 = vmul.f32 -1.442695, %v240_v63 }
 0x104   :  { %v195_v4 = vadd.f32 1.0, %v3529_v1  ;;  %v3364_v5 = vmul.f32 -1.442695, %v320_v0 }
 0x105   :  { %3530 = vpow2.f32 %v3347_v2 }
 0x106   :  { %3532 = vrcp.f32 %v195_v4  ;;  %v207_v57 = vand.u32 2147483648, %v195_v4  ;;  %vm201_vm3 = vweird.f32 %v195_v4  ;;  %v205_v59 = vand.u32 2147483647, %v195_v4 }
 0x107   :  { %3534 = vpow2.f32 %v3364_v5 }
 0x108   :  { %v208_v5 = vor.u32 1.1754944e-38, %v207_v57  ;;  %vm206_vm6 = vcmp.eq.f32.partialorder %v205_v59, 8.507059e+37 }
 0x10b   :  { %v3531_v16 = vpop.eup %3530 }
 0x10c   :  { %v3533_v17 = vpop.eup %3532  ;;  %v244_v41 = vadd.f32 1.0, %v3531_v16 }
 0x10d   :  { %v3535_v42 = vpop.eup %3534  ;;  %v197_v43 = vmul.f32 %v3533_v17, %v195_v4  ;;  %vm202_vm2 = vweird.f32 %v3533_v17 }
 0x10e   :  { %3536 = vrcp.f32 %v244_v41  ;;  %v324_v46 = vadd.f32 1.0, %v3535_v42  ;;  %vm203_vm4 = vmor %vm201_vm3, %vm202_vm2  ;;  %v256_v63 = vand.u32 2147483648, %v244_v41  ;;  %v254_v3 = vand.u32 2147483647, %v244_v41 }
 0x10f   :  { %v198_v45 = vsub.f32 1.0, %v197_v43  ;;  %vm250_vm7 = vweird.f32 %v244_v41 }
 0x110   :  { %3538 = vrcp.f32 %v324_v46  ;;  %v257_v44 = vor.u32 1.1754944e-38, %v256_v63  ;;  %vm255_vm9 = vcmp.eq.f32.partialorder %v254_v3, 8.507059e+37  ;;  %vm330_vm11 = vweird.f32 %v324_v46 }
 0x111   :  { %v199_v51 = vmul.f32 %v3533_v17, %v198_v45  ;;  %3540 = vtanh.f32 %v289_v54  ;;  %v334_v57 = vand.u32 2147483647, %v324_v46 }
 0x113   :  { %v200_v55 = vadd.f32 %v3533_v17, %v199_v51  ;;  %vm335_vm13 = vcmp.eq.f32.partialorder %v334_v57, 8.507059e+37 }
 0x114   :  { %v3537_v52 = vpop.eup %3536 }
 0x115   :  { %v246_v56 = vmul.f32 %v3537_v52, %v244_v41  ;;  %v204_v1 = vsel %vm203_vm4, %v3533_v17, %v200_v55  ;;  %vm251_vm5 = vweird.f32 %v3537_v52  ;;  %v336_v55 = vand.u32 2147483648, %v324_v46 }
 0x116   :  { %v3539_v58 = vpop.eup %3538  ;;  %v209_v43 = vsel %vm206_vm6, %v208_v5, %v204_v1  ;;  %vm252_vm8 = vmor %vm250_vm7, %vm251_vm5 }
 0x117   :  { %v247_v60 = vsub.f32 1.0, %v246_v56  ;;  %v326_v0 = vmul.f32 %v3539_v58, %v324_v46  ;;  %v3541_v4 = vpop.eup %3540  ;;  %vm331_vm10 = vweird.f32 %v3539_v58  ;;  %v337_v59 = vor.u32 1.1754944e-38, %v336_v55 }
 0x118   :  { %v341_v54 = vmul.f32 %v3541_v4, %v209_v43  ;;  %vm332_vm12 = vmor %vm330_vm11, %vm331_vm10 }
 0x119   :  { %v248_v2 = vmul.f32 %v3537_v52, %v247_v60  ;;  %v327_v16 = vsub.f32 1.0, %v326_v0 }
 0x11b   :  { %v249_v42 = vadd.f32 %v3537_v52, %v248_v2  ;;  %v328_v51 = vmul.f32 %v3539_v58, %v327_v16 }
 0x11d   :  { %v253_v45 = vsel %vm252_vm8, %v3537_v52, %v249_v42  ;;  %v329_v17 = vadd.f32 %v3539_v58, %v328_v51 }
 0x11e   :  { %v258_v48 = vsel %vm255_vm9, %v257_v44, %v253_v45 }
 0x11f   :  { %v340_v56 = vmul.f32 0.0, %v258_v48  ;;  %v333_v41 = vsel %vm332_vm12, %v3539_v58, %v329_v17 }
 0x120   :  { %v338_v60 = vsel %vm335_vm13, %v337_v59, %v333_v41 }
 0x121   :  { %v4270_v35 = vadd.f32 %v341_v54, %v340_v56 }
 0x123   :  { %3542 = vtanh.f32 %v4270_v35 }
 0x129   :  { %v3543_v52 = vpop.eup %3542 }
 0x12a   :  { %v4273_v63 = vmul.f32 %v3543_v52, %v338_v60 }
 0x12c   :  { %5741 = vst [vmem:[#allocation6_spill] sm:$0xff] %v4273_v63  ;;  %3365 = vmatmul.msk.f32.vlgmr.msrb.gmra.mxu2 %vm167_vm14, %v4273_v63  ;;  %3367 = vmatmul.msk.f32.vlgmr.msrb.gmra.mxu3 %vm167_vm14, %v4273_v63 }
 0x12d   :  { %3369 = vmatmul.msk.f32.vlgmr.msra.gmra.mxu0 %vm167_vm14, %v4273_v63  ;;  %3370 = vmatmul.msk.f32.vlgmr.msra.gmra.mxu1 %vm167_vm14, %v4273_v63 }
 0x12e   :  { %688 = vmatpush.msrb.mxu2 %v3971_v8  ;;  %731 = vmatpush.msrb.mxu3 %v3995_v12 }
 0x12f   :  { %774 = vmatpush.msra.mxu0 %v3959_v6  ;;  %799 = vmatpush.msra.mxu1 %v4024_v18 }
 0x130   :  { %689 = vmatpush.msrb.mxu2 %v3978_v9  ;;  %732 = vmatpush.msrb.mxu3 %v4000_v13 }
 0x131   :  { %775 = vmatpush.msra.mxu0 %v3966_v7  ;;  %800 = vmatpush.msra.mxu1 %v4053_v23 }
 0x132   :  { %690 = vmatpush.msrb.mxu2 %v3988_v11  ;;  %733 = vmatpush.msrb.mxu3 %v4048_v22 }
 0x133   :  { %776 = vmatpush.msra.mxu0 %v3983_v10  ;;  %801 = vmatpush.msra.mxu1 %v4082_v28 }
 0x134   :  { %691 = vmatpush.msrb.mxu2 %v4010_v15  ;;  %734 = vmatpush.msrb.mxu3 %v4075_v27 }
 0x135   :  { %777 = vmatpush.msra.mxu0 %v4005_v14  ;;  %802 = vmatpush.msra.mxu1 %v4096_v30 }
 0x136   :  { %692 = vmatpush.msrb.mxu2 %v4034_v20  ;;  %735 = vmatpush.msrb.mxu3 %v4091_v29 }
 0x137   :  { %778 = vmatpush.msra.mxu0 %v4029_v19  ;;  %803 = vmatpush.msra.mxu1 %v4122_v34 }
 0x138   :  { %693 = vmatpush.msrb.mxu2 %v4065_v25  ;;  %736 = vmatpush.msrb.mxu3 %v4116_v33 }
 0x139   :  { %779 = vmatpush.msra.mxu0 %v4042_v21  ;;  %804 = vmatpush.msra.mxu1 %v4136_v37 }
 0x13a   :  { %694 = vmatpush.msrb.mxu2 %v4070_v26  ;;  %737 = vmatpush.msrb.mxu3 %v4131_v36 }
 0x13b   :  { %780 = vmatpush.msra.mxu0 %v4060_v24  ;;  %805 = vmatpush.msra.mxu1 %v4148_v39 }
 0x13c   :  { %695 = vmatpush.msrb.mxu2 %v4106_v32  ;;  %738 = vmatpush.msrb.mxu3 %v4143_v38 }
 0x13d   :  { %781 = vmatpush.msra.mxu0 %v4101_v31  ;;  %806 = vmatpush.msra.mxu1 %v4206_v40 }
 0x1aa   :  { %v476_v46 = vpop.f32.mrf.mxu1  ;;  %v451_v17 = vpop.f32.mrf.mxu0 }
 0x1ab   :  { %v480_v58 = vrot.slane %v476_v46, 6  ;;  %v455_v57 = vrot.slane %v451_v17, 6 }
 0x1ad   :  { %v482_v0 = vadd.f32 %v480_v58, %v4262_v62  ;;  %v457_v52 = vadd.f32 %v455_v57, %v4267_v47 }
 0x1af   :  { %v3371_v1 = vmul.f32 -1.442695, %v482_v0  ;;  %v365_v2 = vpop.f32.mrf.mxu2  ;;  %v408_v3 = vpop.f32.mrf.mxu3 }
 0x1b0   :  { %v369_v5 = vrot.slane %v365_v2, 6  ;;  %v412_v16 = vrot.slane %v408_v3, 6 }
 0x1b1   :  { %3544 = vpow2.f32 %v3371_v1 }
 0x1b2   :  { %v371_v42 = vadd.f32 %v369_v5, %v4255_v53  ;;  %v414_v43 = vadd.f32 %v412_v16, %v4259_v61 }
 0x1b4   :  { %v3366_v44 = vmul.f32 -1.442695, %v371_v42  ;;  %v3368_v45 = vmul.f32 -1.442695, %v414_v43 }
 0x1b6   :  { %3546 = vpow2.f32 %v3366_v44 }
 0x1b7   :  { %v3545_v4 = vpop.eup %3544  ;;  %3548 = vpow2.f32 %v3368_v45 }
 0x1b8   :  { %v486_v48 = vadd.f32 1.0, %v3545_v4 }
 0x1ba   :  { %3550 = vrcp.f32 %v486_v48  ;;  %vm492_vm9 = vweird.f32 %v486_v48 }
 0x1bc   :  { %v3547_v51 = vpop.eup %3546 }
 0x1bd   :  { %v3549_v54 = vpop.eup %3548  ;;  %v375_v56 = vadd.f32 1.0, %v3547_v51 }
 0x1be   :  { %v418_v55 = vadd.f32 1.0, %v3549_v54 }
 0x1bf   :  { %3552 = vrcp.f32 %v375_v56  ;;  %v387_v2 = vand.u32 2147483648, %v375_v56  ;;  %v385_v16 = vand.u32 2147483647, %v375_v56  ;;  %vm381_vm2 = vweird.f32 %v375_v56 }
 0x1c0   :  { %3554 = vrcp.f32 %v418_v55  ;;  %v3551_v41 = vpop.eup %3550  ;;  %v430_v42 = vand.u32 2147483648, %v418_v55  ;;  %v428_v44 = vand.u32 2147483647, %v418_v55  ;;  %vm424_vm4 = vweird.f32 %v418_v55 }
 0x1c1   :  { %v488_v0 = vmul.f32 %v3551_v41, %v486_v48  ;;  %3556 = vtanh.f32 %v457_v52  ;;  %v388_v51 = vor.u32 1.1754944e-38, %v387_v2  ;;  %vm386_vm5 = vcmp.eq.f32.partialorder %v385_v16, 8.507059e+37 }
 0x1c2   :  { %v431_v57 = vor.u32 1.1754944e-38, %v430_v42  ;;  %vm429_vm7 = vcmp.eq.f32.partialorder %v428_v44, 8.507059e+37  ;;  %vm493_vm8 = vweird.f32 %v3551_v41  ;;  %v498_v2 = vand.u32 2147483648, %v486_v48 }
 0x1c3   :  { %v489_v45 = vsub.f32 1.0, %v488_v0  ;;  %vm494_vm10 = vmor %vm492_vm9, %vm493_vm8 }
 0x1c4   :  { %v499_v16 = vor.u32 1.1754944e-38, %v498_v2 }
 0x1c5   :  { %v3553_v59 = vpop.eup %3552 }
 0x1c6   :  { %v3555_v60 = vpop.eup %3554  ;;  %v377_v46 = vmul.f32 %v3553_v59, %v375_v56  ;;  %vm382_vm15 = vweird.f32 %v3553_v59 }
 0x1c7   :  { %v420_v58 = vmul.f32 %v3555_v60, %v418_v55  ;;  %vm425_vm0 = vweird.f32 %v3555_v60  ;;  %vm383_vm3 = vmor %vm381_vm2, %vm382_vm15  ;;  %v3557_v52 = vpop.eup %3556  ;;  %v496_v55 = vand.u32 2147483647, %v486_v48 }
 0x1c8   :  { %v378_v1 = vsub.f32 1.0, %v377_v46  ;;  %vm426_vm6 = vmor %vm424_vm4, %vm425_vm0  ;;  %v503_v46 = vrot.slane %v4270_v35, 6 }
 0x1c9   :  { %v421_v3 = vsub.f32 1.0, %v420_v58  ;;  %vm497_vm11 = vcmp.eq.f32.partialorder %v496_v55, 8.507059e+37 }
 0x1ca   :  { %v379_v5 = vmul.f32 %v3553_v59, %v378_v1 }
 0x1cb   :  { %v422_v43 = vmul.f32 %v3555_v60, %v421_v3  ;;  %v490_v3 = vmul.f32 %v3551_v41, %v489_v45 }
 0x1cc   :  { %v380_v4 = vadd.f32 %v3553_v59, %v379_v5 }
 0x1cd   :  { %v423_v54 = vadd.f32 %v3555_v60, %v422_v43  ;;  %v491_v56 = vadd.f32 %v3551_v41, %v490_v3 }
 0x1ce   :  { %v384_v17 = vsel %vm383_vm3, %v3553_v59, %v380_v4 }
 0x1cf   :  { %v389_v58 = vsel %vm386_vm5, %v388_v51, %v384_v17  ;;  %v427_v1 = vsel %vm426_vm6, %v3555_v60, %v423_v54  ;;  %v495_v59 = vsel %vm494_vm10, %v3551_v41, %v491_v56 }
 0x1d0   :  { %v506_v63 = vmul.f32 %v3557_v52, %v389_v58  ;;  %v432_v50 = vsel %vm429_vm7, %v431_v57, %v427_v1  ;;  %v500_v60 = vsel %vm497_vm11, %v499_v16, %v495_v59 }
 0x1d1   :  { %v505_v0 = vmul.f32 %v503_v46, %v432_v50 }
 0x1d3   :  { %v4320_v5 = vadd.f32 %v506_v63, %v505_v0 }
 0x1d5   :  { %3558 = vtanh.f32 %v4320_v5 }
 0x1db   :  { %v3559_v35 = vpop.eup %3558 }
 0x1dc   :  { %v4323_v42 = vmul.f32 %v3559_v35, %v500_v60 }
 0x1de   :  { %5742 = vst [vmem:[#allocation7_spill] sm:$0xff] %v4323_v42  ;;  %v511_v43 = vrot.slane %v4323_v42, 2 }
 0x1e0   :  { %3372 = vmatmul.msk.f32.vlgmr.msra.gmra.mxu2 %vm167_vm14, %v511_v43  ;;  %3374 = vmatmul.msk.f32.vlgmr.msra.gmra.mxu3 %vm167_vm14, %v511_v43 }
 0x1e1   :  { %3376 = vmatmul.msk.f32.vlgmr.msrb.gmra.mxu0 %vm167_vm14, %v511_v43  ;;  %3377 = vmatmul.msk.f32.vlgmr.msrb.gmra.mxu1 %vm167_vm14, %v511_v43 }
 0x1e2   :  { %854 = vmatpush.msra.mxu2 %v3971_v8  ;;  %894 = vmatpush.msra.mxu3 %v3995_v12 }
 0x1e3   :  { %934 = vmatpush.msrb.mxu0 %v3959_v6  ;;  %956 = vmatpush.msrb.mxu1 %v4024_v18 }
 0x1e4   :  { %855 = vmatpush.msra.mxu2 %v3978_v9  ;;  %895 = vmatpush.msra.mxu3 %v4000_v13 }
 0x1e5   :  { %935 = vmatpush.msrb.mxu0 %v3966_v7  ;;  %957 = vmatpush.msrb.mxu1 %v4053_v23 }
 0x1e6   :  { %856 = vmatpush.msra.mxu2 %v3988_v11  ;;  %896 = vmatpush.msra.mxu3 %v4048_v22 }
 0x1e7   :  { %936 = vmatpush.msrb.mxu0 %v3983_v10  ;;  %958 = vmatpush.msrb.mxu1 %v4082_v28 }
 0x1e8   :  { %857 = vmatpush.msra.mxu2 %v4010_v15  ;;  %897 = vmatpush.msra.mxu3 %v4075_v27 }
 0x1e9   :  { %937 = vmatpush.msrb.mxu0 %v4005_v14  ;;  %959 = vmatpush.msrb.mxu1 %v4096_v30 }
 0x1ea   :  { %858 = vmatpush.msra.mxu2 %v4034_v20  ;;  %898 = vmatpush.msra.mxu3 %v4091_v29 }
 0x1eb   :  { %938 = vmatpush.msrb.mxu0 %v4029_v19  ;;  %960 = vmatpush.msrb.mxu1 %v4122_v34 }
 0x1ec   :  { %859 = vmatpush.msra.mxu2 %v4065_v25  ;;  %899 = vmatpush.msra.mxu3 %v4116_v33 }
 0x1ed   :  { %939 = vmatpush.msrb.mxu0 %v4042_v21  ;;  %961 = vmatpush.msrb.mxu1 %v4136_v37 }
 0x1ee   :  { %860 = vmatpush.msra.mxu2 %v4070_v26  ;;  %900 = vmatpush.msra.mxu3 %v4131_v36 }
 0x1ef   :  { %940 = vmatpush.msrb.mxu0 %v4060_v24  ;;  %962 = vmatpush.msrb.mxu1 %v4148_v39 }
 0x1f0   :  { %861 = vmatpush.msra.mxu2 %v4106_v32  ;;  %901 = vmatpush.msra.mxu3 %v4143_v38 }
 0x1f1   :  { %941 = vmatpush.msrb.mxu0 %v4101_v31  ;;  %963 = vmatpush.msrb.mxu1 %v4206_v40 }
 0x25e   :  { %v642_v50 = vpop.f32.mrf.mxu1  ;;  %v617_v56 = vpop.f32.mrf.mxu0 }
 0x25f   :  { %v646_v63 = vrot.slane %v642_v50, 4  ;;  %v621_v55 = vrot.slane %v617_v56, 4 }
 0x261   :  { %v648_v48 = vadd.f32 %v646_v63, %v4262_v62  ;;  %v623_v35 = vadd.f32 %v621_v55, %v4267_v47 }
 0x263   :  { %v3378_v41 = vmul.f32 -1.442695, %v648_v48  ;;  %v531_v44 = vpop.f32.mrf.mxu2  ;;  %v574_v45 = vpop.f32.mrf.mxu3 }
 0x264   :  { %v535_v4 = vrot.slane %v531_v44, 4  ;;  %v578_v51 = vrot.slane %v574_v45, 4 }
 0x265   :  { %3560 = vpow2.f32 %v3378_v41 }
 0x266   :  { %v537_v54 = vadd.f32 %v535_v4, %v4255_v53  ;;  %v580_v17 = vadd.f32 %v578_v51, %v4259_v61 }
 0x268   :  { %v3373_v57 = vmul.f32 -1.442695, %v537_v54  ;;  %v3375_v52 = vmul.f32 -1.442695, %v580_v17 }
 0x26a   :  { %3562 = vpow2.f32 %v3373_v57 }
 0x26b   :  { %v3561_v46 = vpop.eup %3560  ;;  %3564 = vpow2.f32 %v3375_v52 }
 0x26c   :  { %v652_v58 = vadd.f32 1.0, %v3561_v46 }
 0x26e   :  { %3566 = vrcp.f32 %v652_v58  ;;  %vm658_vm7 = vweird.f32 %v652_v58 }
 0x270   :  { %v3563_v1 = vpop.eup %3562 }
 0x271   :  { %v3565_v3 = vpop.eup %3564  ;;  %v541_v0 = vadd.f32 1.0, %v3563_v1 }
 0x272   :  { %v584_v2 = vadd.f32 1.0, %v3565_v3 }
 0x273   :  { %3568 = vrcp.f32 %v541_v0  ;;  %v553_v41 = vand.u32 2147483648, %v541_v0  ;;  %v551_v4 = vand.u32 2147483647, %v541_v0  ;;  %vm547_vm15 = vweird.f32 %v541_v0 }
 0x274   :  { %3570 = vrcp.f32 %v584_v2  ;;  %v3567_v59 = vpop.eup %3566  ;;  %v596_v51 = vand.u32 2147483648, %v584_v2  ;;  %v594_v17 = vand.u32 2147483647, %v584_v2  ;;  %vm590_vm2 = vweird.f32 %v584_v2 }
 0x275   :  { %v654_v63 = vmul.f32 %v3567_v59, %v652_v58  ;;  %3572 = vtanh.f32 %v623_v35  ;;  %v554_v46 = vor.u32 1.1754944e-38, %v553_v41  ;;  %vm552_vm3 = vcmp.eq.f32.partialorder %v551_v4, 8.507059e+37 }
 0x276   :  { %v597_v56 = vor.u32 1.1754944e-38, %v596_v51  ;;  %vm595_vm5 = vcmp.eq.f32.partialorder %v594_v17, 8.507059e+37  ;;  %vm659_vm6 = vweird.f32 %v3567_v59  ;;  %v664_v41 = vand.u32 2147483648, %v652_v58 }
 0x277   :  { %v655_v57 = vsub.f32 1.0, %v654_v63  ;;  %vm660_vm8 = vmor %vm658_vm7, %vm659_vm6 }
 0x278   :  { %v665_v4 = vor.u32 1.1754944e-38, %v664_v41 }
 0x279   :  { %v3569_v16 = vpop.eup %3568 }
 0x27a   :  { %v3571_v60 = vpop.eup %3570  ;;  %v543_v43 = vmul.f32 %v3569_v16, %v541_v0  ;;  %vm548_vm12 = vweird.f32 %v3569_v16 }
 0x27b   :  { %v586_v50 = vmul.f32 %v3571_v60, %v584_v2  ;;  %vm591_vm13 = vweird.f32 %v3571_v60  ;;  %vm549_vm0 = vmor %vm547_vm15, %vm548_vm12  ;;  %v3573_v55 = vpop.eup %3572  ;;  %v662_v2 = vand.u32 2147483647, %v652_v58 }
 0x27c   :  { %v544_v48 = vsub.f32 1.0, %v543_v43  ;;  %vm592_vm4 = vmor %vm590_vm2, %vm591_vm13 }
 0x27d   :  { %v587_v44 = vsub.f32 1.0, %v586_v50  ;;  %v669_v50 = vrot.slane %v4320_v5, 6  ;;  %vm663_vm9 = vcmp.eq.f32.partialorder %v662_v2, 8.507059e+37 }
 0x27e   :  { %v545_v45 = vmul.f32 %v3569_v16, %v544_v48  ;;  %v656_v48 = vmul.f32 %v3567_v59, %v655_v57 }
 0x27f   :  { %v588_v54 = vmul.f32 %v3571_v60, %v587_v44 }
 0x280   :  { %v546_v52 = vadd.f32 %v3569_v16, %v545_v45  ;;  %v657_v0 = vadd.f32 %v3567_v59, %v656_v48 }
 0x281   :  { %v589_v1 = vadd.f32 %v3571_v60, %v588_v54 }
 0x282   :  { %v550_v3 = vsel %vm549_vm0, %v3569_v16, %v546_v52  ;;  %v661_v16 = vsel %vm660_vm8, %v3567_v59, %v657_v0 }
 0x283   :  { %v555_v35 = vsel %vm552_vm3, %v554_v46, %v550_v3  ;;  %v593_v43 = vsel %vm592_vm4, %v3571_v60, %v589_v1  ;;  %v666_v51 = vsel %vm663_vm9, %v665_v4, %v661_v16 }
 0x284   :  { %v672_v44 = vmul.f32 %v3573_v55, %v555_v35  ;;  %v598_v42 = vsel %vm595_vm5, %v597_v56, %v593_v43 }
 0x285   :  { %v671_v63 = vmul.f32 %v669_v50, %v598_v42 }
 0x287   :  { %v4367_v45 = vadd.f32 %v672_v44, %v671_v63 }
 0x289   :  { %3574 = vtanh.f32 %v4367_v45  ;;  %v835_v56 = vrot.slane %v4367_v45, 6 }
 0x28f   :  { %v3575_v60 = vpop.eup %3574 }
 0x290   :  { %v4370_v5 = vmul.f32 %v3575_v60, %v666_v51  ;;  %v4433_v51 = vld [vmem:[%s5724_s6 + $0x38] sm:$0xff] }
 0x292   :  { %v677_v54 = vrot.slane %v4370_v5, 4 }
 0x294   :  { %3379 = vmatmul.msk.f32.vlgmr.msrb.gmra.mxu2 %vm167_vm14, %v677_v54  ;;  %3381 = vmatmul.msk.f32.vlgmr.msrb.gmra.mxu3 %vm167_vm14, %v677_v54 }
 0x295   :  { %3383 = vmatmul.msk.f32.vlgmr.msra.gmra.mxu0 %vm167_vm14, %v677_v54  ;;  %3384 = vmatmul.msk.f32.vlgmr.msra.gmra.mxu1 %vm167_vm14, %v677_v54  ;;  %v4439_v54 = vld [vmem:[%s5724_s6 + $0x78] sm:$0xff] }
 0x296   :  { %1007 = vmatpush.msrb.mxu2 %v3971_v8  ;;  %1050 = vmatpush.msrb.mxu3 %v3995_v12 }
 0x297   :  { %1093 = vmatpush.msra.mxu0 %v3959_v6  ;;  %1118 = vmatpush.msra.mxu1 %v4024_v18 }
 0x298   :  { %1008 = vmatpush.msrb.mxu2 %v3978_v9  ;;  %1051 = vmatpush.msrb.mxu3 %v4000_v13 }
 0x299   :  { %1094 = vmatpush.msra.mxu0 %v3966_v7  ;;  %1119 = vmatpush.msra.mxu1 %v4053_v23 }
 0x29a   :  { %1009 = vmatpush.msrb.mxu2 %v3988_v11  ;;  %1052 = vmatpush.msrb.mxu3 %v4048_v22 }
 0x29b   :  { %1095 = vmatpush.msra.mxu0 %v3983_v10  ;;  %1120 = vmatpush.msra.mxu1 %v4082_v28 }
 0x29c   :  { %1010 = vmatpush.msrb.mxu2 %v4010_v15  ;;  %1053 = vmatpush.msrb.mxu3 %v4075_v27 }
 0x29d   :  { %1096 = vmatpush.msra.mxu0 %v4005_v14  ;;  %1121 = vmatpush.msra.mxu1 %v4096_v30 }
 0x29e   :  { %1011 = vmatpush.msrb.mxu2 %v4034_v20  ;;  %1054 = vmatpush.msrb.mxu3 %v4091_v29 }
 0x29f   :  { %1097 = vmatpush.msra.mxu0 %v4029_v19  ;;  %1122 = vmatpush.msra.mxu1 %v4122_v34 }
 0x2a0   :  { %1012 = vmatpush.msrb.mxu2 %v4065_v25  ;;  %1055 = vmatpush.msrb.mxu3 %v4116_v33 }
 0x2a1   :  { %1098 = vmatpush.msra.mxu0 %v4042_v21  ;;  %1123 = vmatpush.msra.mxu1 %v4136_v37 }
 0x2a2   :  { %1013 = vmatpush.msrb.mxu2 %v4070_v26  ;;  %1056 = vmatpush.msrb.mxu3 %v4131_v36 }
 0x2a3   :  { %1099 = vmatpush.msra.mxu0 %v4060_v24  ;;  %1124 = vmatpush.msra.mxu1 %v4148_v39 }
 0x2a4   :  { %1014 = vmatpush.msrb.mxu2 %v4106_v32  ;;  %1057 = vmatpush.msrb.mxu3 %v4143_v38 }
 0x2a5   :  { %1100 = vmatpush.msra.mxu0 %v4101_v31  ;;  %1125 = vmatpush.msra.mxu1 %v4206_v40 }
 0x312   :  { %v808_v6 = vpop.f32.mrf.mxu1  ;;  %v783_v25 = vpop.f32.mrf.mxu0 }
 0x313   :  { %v812_v7 = vrot.slane %v808_v6, 2  ;;  %v787_v27 = vrot.slane %v783_v25, 2  ;;  %v4445_v6 = vld [vmem:[%s5724_s6 + $0xb8] sm:$0xff] }
 0x314   :  { %v4547_v25 = vld [vmem:[%s5724_s6 + $0xd8] sm:$0xff] }
 0x315   :  { %v814_v8 = vadd.f32 %v812_v7, %v4262_v62  ;;  %v789_v30 = vadd.f32 %v787_v27, %v4267_v47  ;;  %v4451_v7 = vld [vmem:[%s5724_s6 + $0xf8] sm:$0xff]  ;;  %v4559_v27 = vld [vmem:[%s5724_s6 + $0x50] sm:$0xff] }
 0x317   :  { %v3385_v9 = vmul.f32 -1.442695, %v814_v8  ;;  %v697_v10 = vpop.f32.mrf.mxu2  ;;  %v740_v11 = vpop.f32.mrf.mxu3  ;;  %v4457_v8 = vld [vmem:[%s5724_s6 + $0x30] sm:$0xff] }
 0x318   :  { %v701_v12 = vrot.slane %v697_v10, 2  ;;  %v744_v13 = vrot.slane %v740_v11, 2  ;;  %v4469_v10 = vld [vmem:[%s5724_s6 + $0xb0] sm:$0xff] }
 0x319   :  { %3576 = vpow2.f32 %v3385_v9  ;;  %v4463_v9 = vld [vmem:[%s5724_s6 + $0x70] sm:$0xff] }
 0x31a   :  { %v703_v14 = vadd.f32 %v701_v12, %v4255_v53  ;;  %v746_v15 = vadd.f32 %v744_v13, %v4259_v61  ;;  %v4475_v11 = vld [vmem:[%s5724_s6 + $0xf0] sm:$0xff]  ;;  %v4481_v12 = vld [vmem:[%s5724_s6 + $0x28] sm:$0xff] }
 0x31b   :  { %v4487_v13 = vld [vmem:[%s5724_s6 + $0x68] sm:$0xff] }
 0x31c   :  { %v3380_v18 = vmul.f32 -1.442695, %v703_v14  ;;  %v3382_v19 = vmul.f32 -1.442695, %v746_v15  ;;  %v4493_v14 = vld [vmem:[%s5724_s6 + $0xa8] sm:$0xff] }
 0x31d   :  { %v4499_v15 = vld [vmem:[%s5724_s6 + $0xe8] sm:$0xff] }
 0x31e   :  { %3578 = vpow2.f32 %v3380_v18  ;;  %v4505_v18 = vld [vmem:[%s5724_s6 + $0x20] sm:$0xff] }
 0x31f   :  { %v3577_v20 = vpop.eup %3576  ;;  %3580 = vpow2.f32 %v3382_v19  ;;  %v4511_v19 = vld [vmem:[%s5724_s6 + $0x60] sm:$0xff] }
 0x320   :  { %v818_v21 = vadd.f32 1.0, %v3577_v20  ;;  %v4517_v20 = vld [vmem:[%s5724_s6 + $0xa0] sm:$0xff] }
 0x322   :  { %3582 = vrcp.f32 %v818_v21  ;;  %v830_v63 = vand.u32 2147483648, %v818_v21  ;;  %vm824_vm5 = vweird.f32 %v818_v21  ;;  %v828_v0 = vand.u32 2147483647, %v818_v21 }
 0x324   :  { %v3579_v22 = vpop.eup %3578  ;;  %v831_v2 = vor.u32 1.1754944e-38, %v830_v63  ;;  %vm829_vm7 = vcmp.eq.f32.partialorder %v828_v0, 8.507059e+37 }
 0x325   :  { %v3581_v23 = vpop.eup %3580  ;;  %v707_v24 = vadd.f32 1.0, %v3579_v22  ;;  %v4529_v22 = vld [vmem:[%s5724_s6 + $0x18] sm:$0xff] }
 0x326   :  { %v750_v26 = vadd.f32 1.0, %v3581_v23  ;;  %v4535_v23 = vld [vmem:[%s5724_s6 + $0x58] sm:$0xff] }
 0x327   :  { %3584 = vrcp.f32 %v707_v24  ;;  %v719_v37 = vand.u32 2147483648, %v707_v24  ;;  %v717_v53 = vand.u32 2147483647, %v707_v24  ;;  %vm713_vm12 = vweird.f32 %v707_v24 }
 0x328   :  { %3586 = vrcp.f32 %v750_v26  ;;  %v3583_v28 = vpop.eup %3582  ;;  %v762_v61 = vand.u32 2147483648, %v750_v26  ;;  %v760_v42 = vand.u32 2147483647, %v750_v26  ;;  %vm756_vm15 = vweird.f32 %v750_v26 }
 0x329   :  { %v820_v34 = vmul.f32 %v3583_v28, %v818_v21  ;;  %3588 = vtanh.f32 %v789_v30  ;;  %v720_v47 = vor.u32 1.1754944e-38, %v719_v37  ;;  %vm718_vm0 = vcmp.eq.f32.partialorder %v717_v53, 8.507059e+37  ;;  %v4523_v21 = vld [vmem:[%s5724_s6 + $0xe0] sm:$0xff]  ;;  %v4577_v30 = vld [vmem:[%s5724_s6 + $0x8] sm:$0xff]  ;;  %v148_v53 = vpop.permute.xlu2 %147 }
 0x32a   :  { %v763_v52 = vor.u32 1.1754944e-38, %v762_v61  ;;  %vm761_vm3 = vcmp.eq.f32.partialorder %v760_v42, 8.507059e+37  ;;  %vm825_vm4 = vweird.f32 %v3583_v28  ;;  %v4613_v37 = vld [vmem:[%s5724_s6 + $0x80] sm:$0xff] }
 0x32b   :  { %v821_v58 = vsub.f32 1.0, %v820_v34  ;;  %vm826_vm6 = vmor %vm824_vm5, %vm825_vm4  ;;  %v4601_v34 = vld [vmem:[%s5724_s6] sm:$0xff] }
 0x32d   :  { %v3585_v29 = vpop.eup %3584  ;;  %v822_v55 = vmul.f32 %v3583_v28, %v821_v58  ;;  %v126_v58 = vpop.permute.xlu1 %125 }
 0x32e   :  { %v3587_v31 = vpop.eup %3586  ;;  %v709_v32 = vmul.f32 %v3585_v29, %v707_v24  ;;  %vm714_vm10 = vweird.f32 %v3585_v29  ;;  %v4541_v24 = vld [vmem:[%s5724_s6 + $0x98] sm:$0xff] }
 0x32f   :  { %v752_v33 = vmul.f32 %v3587_v31, %v750_v26  ;;  %vm757_vm11 = vweird.f32 %v3587_v31  ;;  %vm715_vm13 = vmor %vm713_vm12, %vm714_vm10  ;;  %v3589_v46 = vpop.eup %3588  ;;  %v823_v44 = vadd.f32 %v3583_v28, %v822_v55  ;;  %v4553_v26 = vld [vmem:[%s5724_s6 + $0x10] sm:$0xff] }
 0x330   :  { %v710_v36 = vsub.f32 1.0, %v709_v32  ;;  %vm758_vm2 = vmor %vm756_vm15, %vm757_vm11  ;;  %v4589_v32 = vld [vmem:[%s5724_s6 + $0x88] sm:$0xff] }
 0x331   :  { %v753_v38 = vsub.f32 1.0, %v752_v33  ;;  %v827_v41 = vsel %vm826_vm6, %v3583_v28, %v823_v44  ;;  %v4565_v28 = vld [vmem:[%s5724_s6 + $0x90] sm:$0xff]  ;;  %v4595_v33 = vld [vmem:[%s5724_s6 + $0xc8] sm:$0xff]  ;;  %v140_v63 = vpop.permute.xlu2 %139 }
 0x332   :  { %v711_v39 = vmul.f32 %v3585_v29, %v710_v36  ;;  %v832_v4 = vsel %vm829_vm7, %v831_v2, %v827_v41  ;;  %v4607_v36 = vld [vmem:[%s5724_s6 + $0x40] sm:$0xff] }
 0x333   :  { %v754_v62 = vmul.f32 %v3587_v31, %v753_v38  ;;  %v115_v38 = vpop.permute.xlu0 %114 }
 0x334   :  { %v712_v59 = vadd.f32 %v3585_v29, %v711_v39 }
 0x335   :  { %v755_v17 = vadd.f32 %v3587_v31, %v754_v62  ;;  %v134_v0 = vpop.permute.xlu1 %133 }
 0x336   :  { %v716_v57 = vsel %vm715_vm13, %v3585_v29, %v712_v59  ;;  %v4571_v29 = vld [vmem:[%s5724_s6 + $0xd0] sm:$0xff] }
 0x337   :  { %v721_v1 = vsel %vm718_vm0, %v720_v47, %v716_v57  ;;  %v759_v3 = vsel %vm758_vm2, %v3587_v31, %v755_v17  ;;  %v4583_v31 = vld [vmem:[%s5724_s6 + $0x48] sm:$0xff]  ;;  %v4623_v47 = vsel %vm118_vm1, %v126_v58, %v4238_v49 }
 0x338   :  { %v838_v35 = vmul.f32 %v3589_v46, %v721_v1  ;;  %v764_v43 = vsel %vm761_vm3, %v763_v52, %v759_v3  ;;  %v5744_v17 = vld [vmem:[#allocation5_spill] sm:$0xff] }
 0x339   :  { %v837_v50 = vmul.f32 %v835_v56, %v764_v43  ;;  %v4627_v57 = vsel %vm118_vm1, %v5744_v17, %v115_v38 }
 0x33b   :  { %v4414_v48 = vadd.f32 %v838_v35, %v837_v50  ;;  %v154_v39 = vpop.permute.xlu0 %153 }
 0x33c   :  { %v4618_v61 = vsel %vm118_vm1, %v148_v53, %v154_v39 }
 0x33d   :  { %3590 = vtanh.f32 %v4414_v48 }
 0x343   :  { %v3591_v16 = vpop.eup %3590 }
 0x344   :  { %v4417_v45 = vmul.f32 %v3591_v16, %v832_v4  ;;  %v4632_v16 = vsel %vm118_vm1, %v134_v0, %v140_v63 }
 0x346   :  { %5743 = vst [vmem:[#allocation8_spill] sm:$0xff] %v4417_v45  ;;  %v4420_v60 = vrot.slane %v4417_v45, 6 }
 0x348   :  { %3386 = vmatmul.msk.f32.vlgmr.msra.gmra.mxu2 %vm167_vm14, %v4420_v60  ;;  %3388 = vmatmul.msk.f32.vlgmr.msra.gmra.mxu3 %vm167_vm14, %v4420_v60 }
 0x349   :  { %3390 = vmatmul.msk.f32.vlgmr.msrb.gmra.mxu0 %vm167_vm14, %v4420_v60  ;;  %3391 = vmatmul.msk.f32.vlgmr.msrb.gmra.mxu1 %vm167_vm14, %v4420_v60 }
 0x34a   :  { %1173 = vmatpush.msra.mxu2 %v4433_v51  ;;  %1216 = vmatpush.msra.mxu3 %v4439_v54 }
 0x34b   :  { %1259 = vmatpush.msrb.mxu0 %v4445_v6  ;;  %1284 = vmatpush.msrb.mxu1 %v4451_v7 }
 0x34c   :  { %1174 = vmatpush.msra.mxu2 %v4457_v8  ;;  %1217 = vmatpush.msra.mxu3 %v4463_v9 }
 0x34d   :  { %1260 = vmatpush.msrb.mxu0 %v4469_v10  ;;  %1285 = vmatpush.msrb.mxu1 %v4475_v11 }
 0x34e   :  { %1175 = vmatpush.msra.mxu2 %v4481_v12  ;;  %1218 = vmatpush.msra.mxu3 %v4487_v13 }
 0x34f   :  { %1261 = vmatpush.msrb.mxu0 %v4493_v14  ;;  %1286 = vmatpush.msrb.mxu1 %v4499_v15 }
 0x350   :  { %1176 = vmatpush.msra.mxu2 %v4505_v18  ;;  %1219 = vmatpush.msra.mxu3 %v4511_v19 }
 0x351   :  { %1262 = vmatpush.msrb.mxu0 %v4517_v20  ;;  %1287 = vmatpush.msrb.mxu1 %v4523_v21 }
 0x352   :  { %1177 = vmatpush.msra.mxu2 %v4529_v22  ;;  %1220 = vmatpush.msra.mxu3 %v4535_v23 }
 0x353   :  { %1263 = vmatpush.msrb.mxu0 %v4541_v24  ;;  %1288 = vmatpush.msrb.mxu1 %v4547_v25 }
 0x354   :  { %1178 = vmatpush.msra.mxu2 %v4553_v26  ;;  %1221 = vmatpush.msra.mxu3 %v4559_v27 }
 0x355   :  { %1264 = vmatpush.msrb.mxu0 %v4565_v28  ;;  %1289 = vmatpush.msrb.mxu1 %v4571_v29 }
 0x356   :  { %1179 = vmatpush.msra.mxu2 %v4577_v30  ;;  %1222 = vmatpush.msra.mxu3 %v4583_v31 }
 0x357   :  { %1265 = vmatpush.msrb.mxu0 %v4589_v32  ;;  %1290 = vmatpush.msrb.mxu1 %v4595_v33 }
 0x358   :  { %1180 = vmatpush.msra.mxu2 %v4601_v34  ;;  %1223 = vmatpush.msra.mxu3 %v4607_v36 }
 0x359   :  { %1266 = vmatpush.msrb.mxu0 %v4613_v37  ;;  %1291 = vmatpush.msrb.mxu1 %v4206_v40 }
 0x3c6   :  { %v965_v62 = vpop.f32.mrf.mxu1  ;;  %v943_v41 = vpop.f32.mrf.mxu0 }
 0x3c7   :  { %v968_v42 = vadd.f32 %v965_v62, %v4618_v61  ;;  %v946_v38 = vadd.f32 %v943_v41, %v4632_v16 }
 0x3c9   :  { %v3392_v59 = vmul.f32 -1.442695, %v968_v42 }
 0x3cb   :  { %3592 = vpow2.f32 %v3392_v59  ;;  %v863_v40 = vpop.f32.mrf.mxu2  ;;  %v903_v52 = vpop.f32.mrf.mxu3 }
 0x3cc   :  { %v866_v46 = vadd.f32 %v863_v40, %v4627_v57  ;;  %v906_v1 = vadd.f32 %v903_v52, %v4623_v47 }
 0x3ce   :  { %v3387_v3 = vmul.f32 -1.442695, %v866_v46  ;;  %v3389_v56 = vmul.f32 -1.442695, %v906_v1 }
 0x3d0   :  { %3594 = vpow2.f32 %v3387_v3 }
 0x3d1   :  { %v3593_v55 = vpop.eup %3592  ;;  %3596 = vpow2.f32 %v3389_v56 }
 0x3d2   :  { %v972_v35 = vadd.f32 1.0, %v3593_v55 }
 0x3d4   :  { %3598 = vrcp.f32 %v972_v35  ;;  %vm978_vm3 = vweird.f32 %v972_v35 }
 0x3d6   :  { %v3595_v43 = vpop.eup %3594 }
 0x3d7   :  { %v3597_v49 = vpop.eup %3596  ;;  %v870_v50 = vadd.f32 1.0, %v3595_v43 }
 0x3d8   :  { %v910_v44 = vadd.f32 1.0, %v3597_v49 }
 0x3d9   :  { %3600 = vrcp.f32 %v870_v50  ;;  %v882_v59 = vand.u32 2147483648, %v870_v50  ;;  %v880_v52 = vand.u32 2147483647, %v870_v50  ;;  %vm876_vm10 = vweird.f32 %v870_v50 }
 0x3da   :  { %3602 = vrcp.f32 %v910_v44  ;;  %v3599_v2 = vpop.eup %3598  ;;  %v922_v46 = vand.u32 2147483648, %v910_v44  ;;  %v920_v3 = vand.u32 2147483647, %v910_v44  ;;  %vm916_vm12 = vweird.f32 %v910_v44 }
 0x3db   :  { %v974_v42 = vmul.f32 %v3599_v2, %v972_v35  ;;  %3604 = vtanh.f32 %v946_v38  ;;  %v883_v43 = vor.u32 1.1754944e-38, %v882_v59  ;;  %vm881_vm13 = vcmp.eq.f32.partialorder %v880_v52, 8.507059e+37 }
 0x3dc   :  { %v923_v0 = vor.u32 1.1754944e-38, %v922_v46  ;;  %vm921_vm0 = vcmp.eq.f32.partialorder %v920_v3, 8.507059e+37  ;;  %vm979_vm2 = vweird.f32 %v3599_v2  ;;  %v984_v59 = vand.u32 2147483648, %v972_v35 }
 0x3dd   :  { %v975_v56 = vsub.f32 1.0, %v974_v42  ;;  %vm980_vm4 = vmor %vm978_vm3, %vm979_vm2 }
 0x3de   :  { %v985_v52 = vor.u32 1.1754944e-38, %v984_v59 }
 0x3df   :  { %v3601_v4 = vpop.eup %3600 }
 0x3e0   :  { %v3603_v39 = vpop.eup %3602  ;;  %v872_v53 = vmul.f32 %v3601_v4, %v870_v50  ;;  %vm877_vm8 = vweird.f32 %v3601_v4 }
 0x3e1   :  { %v912_v62 = vmul.f32 %v3603_v39, %v910_v44  ;;  %vm917_vm9 = vweird.f32 %v3603_v39  ;;  %vm878_vm11 = vmor %vm876_vm10, %vm877_vm8  ;;  %v3605_v41 = vpop.eup %3604  ;;  %v982_v44 = vand.u32 2147483647, %v972_v35 }
 0x3e2   :  { %v873_v58 = vsub.f32 1.0, %v872_v53  ;;  %vm918_vm15 = vmor %vm916_vm12, %vm917_vm9 }
 0x3e3   :  { %v913_v17 = vsub.f32 1.0, %v912_v62  ;;  %v989_v62 = vrot.slane %v4414_v48, 6  ;;  %vm983_vm5 = vcmp.eq.f32.partialorder %v982_v44, 8.507059e+37 }
 0x3e4   :  { %v874_v40 = vmul.f32 %v3601_v4, %v873_v58  ;;  %v976_v58 = vmul.f32 %v3599_v2, %v975_v56 }
 0x3e5   :  { %v914_v1 = vmul.f32 %v3603_v39, %v913_v17 }
 0x3e6   :  { %v875_v55 = vadd.f32 %v3601_v4, %v874_v40  ;;  %v977_v50 = vadd.f32 %v3599_v2, %v976_v58 }
 0x3e7   :  { %v915_v49 = vadd.f32 %v3603_v39, %v914_v1 }
 0x3e8   :  { %v879_v63 = vsel %vm878_vm11, %v3601_v4, %v875_v55  ;;  %v981_v4 = vsel %vm980_vm4, %v3599_v2, %v977_v50  ;;  %vm1517_vm4 = vcmask 1041408  }
 0x3e9   :  { %v884_v38 = vsel %vm881_vm13, %v883_v43, %v879_v63  ;;  %v919_v53 = vsel %vm918_vm15, %v3603_v39, %v915_v49  ;;  %v986_v46 = vsel %vm983_vm5, %v985_v52, %v981_v4 }
 0x3ea   :  { %v992_v17 = vmul.f32 %v3605_v41, %v884_v38  ;;  %v924_v45 = vsel %vm921_vm0, %v923_v0, %v919_v53 }
 0x3eb   :  { %v991_v42 = vmul.f32 %v989_v62, %v924_v45  ;;  %v3823_v45 = vld [vmem:[%s5724_s6 + $0xc0] sm:$0xff] }
 0x3ed   :  { %v4636_v40 = vadd.f32 %v992_v17, %v991_v42 }
 0x3ef   :  { %3606 = vtanh.f32 %v4636_v40  ;;  %v1154_v62 = vrot.slane %v4636_v40, 6 }
 0x3f5   :  { %v3607_v39 = vpop.eup %3606 }
 0x3f6   :  { %v4639_v48 = vmul.f32 %v3607_v39, %v986_v46 }
 0x3f8   :  { %3393 = vmatmul.msk.f32.vlgmr.msrb.gmra.mxu2 %vm167_vm14, %v4639_v48  ;;  %3395 = vmatmul.msk.f32.vlgmr.msrb.gmra.mxu3 %vm167_vm14, %v4639_v48 }
 0x3f9   :  { %3397 = vmatmul.msk.f32.vlgmr.msra.gmra.mxu0 %vm167_vm14, %v4639_v48  ;;  %3398 = vmatmul.msk.f32.vlgmr.msra.gmra.mxu1 %vm167_vm14, %v4639_v48 }
 0x3fa   :  { %1339 = vmatpush.msrb.mxu2 %v4433_v51  ;;  %1382 = vmatpush.msrb.mxu3 %v4439_v54 }
 0x3fb   :  { %1425 = vmatpush.msra.mxu0 %v4445_v6  ;;  %1450 = vmatpush.msra.mxu1 %v4451_v7 }
 0x3fc   :  { %1340 = vmatpush.msrb.mxu2 %v4457_v8  ;;  %1383 = vmatpush.msrb.mxu3 %v4463_v9 }
 0x3fd   :  { %1426 = vmatpush.msra.mxu0 %v4469_v10  ;;  %1451 = vmatpush.msra.mxu1 %v4475_v11 }
 0x3fe   :  { %1341 = vmatpush.msrb.mxu2 %v4481_v12  ;;  %1384 = vmatpush.msrb.mxu3 %v4487_v13 }
 0x3ff   :  { %1427 = vmatpush.msra.mxu0 %v4493_v14  ;;  %1452 = vmatpush.msra.mxu1 %v4499_v15 }
 0x400   :  { %1342 = vmatpush.msrb.mxu2 %v4505_v18  ;;  %1385 = vmatpush.msrb.mxu3 %v4511_v19 }
 0x401   :  { %1428 = vmatpush.msra.mxu0 %v4517_v20  ;;  %1453 = vmatpush.msra.mxu1 %v4523_v21 }
 0x402   :  { %1343 = vmatpush.msrb.mxu2 %v4529_v22  ;;  %1386 = vmatpush.msrb.mxu3 %v4535_v23 }
 0x403   :  { %1429 = vmatpush.msra.mxu0 %v4541_v24  ;;  %1454 = vmatpush.msra.mxu1 %v4547_v25 }
 0x404   :  { %1344 = vmatpush.msrb.mxu2 %v4553_v26  ;;  %1387 = vmatpush.msrb.mxu3 %v4559_v27 }
 0x405   :  { %1430 = vmatpush.msra.mxu0 %v4565_v28  ;;  %1455 = vmatpush.msra.mxu1 %v4571_v29 }
 0x406   :  { %1345 = vmatpush.msrb.mxu2 %v4577_v30  ;;  %1388 = vmatpush.msrb.mxu3 %v4583_v31 }
 0x407   :  { %1431 = vmatpush.msra.mxu0 %v4589_v32  ;;  %1456 = vmatpush.msra.mxu1 %v4595_v33 }
 0x408   :  { %1346 = vmatpush.msrb.mxu2 %v4601_v34  ;;  %1389 = vmatpush.msrb.mxu3 %v4607_v36 }
 0x409   :  { %1432 = vmatpush.msra.mxu0 %v4613_v37  ;;  %1457 = vmatpush.msra.mxu1 %v3823_v45  ;;  %v1503_v45 = vrot.slane %v4639_v48, 2 }
 0x476   :  { %v1127_v51 = vpop.f32.mrf.mxu1  ;;  %v1102_v23 = vpop.f32.mrf.mxu0 }
 0x477   :  { %v1131_v54 = vrot.slane %v1127_v51, 6  ;;  %v1106_v25 = vrot.slane %v1102_v23, 6 }
 0x479   :  { %v1133_v6 = vadd.f32 %v1131_v54, %v4618_v61  ;;  %v1108_v28 = vadd.f32 %v1106_v25, %v4632_v16 }
 0x47b   :  { %v3399_v7 = vmul.f32 -1.442695, %v1133_v6  ;;  %v1016_v8 = vpop.f32.mrf.mxu2  ;;  %v1059_v9 = vpop.f32.mrf.mxu3  ;;  %v1508_v6 = vrot.slane %v4370_v5, 2 }
 0x47c   :  { %v1020_v10 = vrot.slane %v1016_v8, 6  ;;  %v1063_v11 = vrot.slane %v1059_v9, 6 }
 0x47d   :  { %3608 = vpow2.f32 %v3399_v7  ;;  %v4696_v7 = vsel %vm118_vm1, %v4639_v48, %v4420_v60 }
 0x47e   :  { %v1022_v12 = vadd.f32 %v1020_v10, %v4627_v57  ;;  %v1065_v13 = vadd.f32 %v1063_v11, %v4623_v47  ;;  %v5745_v10 = vld [vmem:[#allocation8_spill] sm:$0xff] }
 0x47f   :  { %v4700_v11 = vsel %vm118_vm1, %v5745_v10, %v1503_v45 }
 0x480   :  { %v3394_v14 = vmul.f32 -1.442695, %v1022_v12  ;;  %v3396_v15 = vmul.f32 -1.442695, %v1065_v13  ;;  %v1539_v48 = vrot.slane %v4700_v11, 6 }
 0x482   :  { %3610 = vpow2.f32 %v3394_v14 }
 0x483   :  { %v3609_v18 = vpop.eup %3608  ;;  %3612 = vpow2.f32 %v3396_v15 }
 0x484   :  { %v1137_v19 = vadd.f32 1.0, %v3609_v18 }
 0x486   :  { %3614 = vrcp.f32 %v1137_v19  ;;  %v1149_v4 = vand.u32 2147483648, %v1137_v19  ;;  %vm1143_vm0 = vweird.f32 %v1137_v19  ;;  %v1147_v52 = vand.u32 2147483647, %v1137_v19 }
 0x488   :  { %v3611_v20 = vpop.eup %3610  ;;  %v1150_v46 = vor.u32 1.1754944e-38, %v1149_v4  ;;  %vm1148_vm3 = vcmp.eq.f32.partialorder %v1147_v52, 8.507059e+37 }
 0x489   :  { %v3613_v21 = vpop.eup %3612  ;;  %v1026_v22 = vadd.f32 1.0, %v3611_v20 }
 0x48a   :  { %v1069_v24 = vadd.f32 1.0, %v3613_v21 }
 0x48b   :  { %3616 = vrcp.f32 %v1026_v22  ;;  %v1038_v34 = vand.u32 2147483648, %v1026_v22  ;;  %v1036_v35 = vand.u32 2147483647, %v1026_v22  ;;  %vm1032_vm8 = vweird.f32 %v1026_v22 }
 0x48c   :  { %3618 = vrcp.f32 %v1069_v24  ;;  %v3615_v26 = vpop.eup %3614  ;;  %v1081_v2 = vand.u32 2147483648, %v1069_v24  ;;  %v1079_v3 = vand.u32 2147483647, %v1069_v24  ;;  %vm1075_vm10 = vweird.f32 %v1069_v24 }
 0x48d   :  { %v1139_v32 = vmul.f32 %v3615_v26, %v1137_v19  ;;  %3620 = vtanh.f32 %v1108_v28  ;;  %v1039_v43 = vor.u32 1.1754944e-38, %v1038_v34  ;;  %vm1037_vm11 = vcmp.eq.f32.partialorder %v1036_v35, 8.507059e+37 }
 0x48e   :  { %v1082_v0 = vor.u32 1.1754944e-38, %v1081_v2  ;;  %vm1080_vm13 = vcmp.eq.f32.partialorder %v1079_v3, 8.507059e+37  ;;  %vm1144_vm15 = vweird.f32 %v3615_v26 }
 0x48f   :  { %v1140_v56 = vsub.f32 1.0, %v1139_v32  ;;  %vm1145_vm2 = vmor %vm1143_vm0, %vm1144_vm15 }
 0x491   :  { %v3617_v27 = vpop.eup %3616  ;;  %v1141_v58 = vmul.f32 %v3615_v26, %v1140_v56 }
 0x492   :  { %v3619_v29 = vpop.eup %3618  ;;  %v1028_v30 = vmul.f32 %v3617_v27, %v1026_v22  ;;  %vm1033_vm6 = vweird.f32 %v3617_v27 }
 0x493   :  { %v1071_v31 = vmul.f32 %v3619_v29, %v1069_v24  ;;  %vm1076_vm7 = vweird.f32 %v3619_v29  ;;  %vm1034_vm9 = vmor %vm1032_vm8, %vm1033_vm6  ;;  %v3621_v41 = vpop.eup %3620  ;;  %v1142_v44 = vadd.f32 %v3615_v26, %v1141_v58 }
 0x494   :  { %v1029_v33 = vsub.f32 1.0, %v1028_v30  ;;  %vm1077_vm12 = vmor %vm1075_vm10, %vm1076_vm7 }
 0x495   :  { %v1072_v36 = vsub.f32 1.0, %v1071_v31  ;;  %v1146_v39 = vsel %vm1145_vm2, %v3615_v26, %v1142_v44 }
 0x496   :  { %v1030_v37 = vmul.f32 %v3617_v27, %v1029_v33  ;;  %v1151_v51 = vsel %vm1148_vm3, %v1150_v46, %v1146_v39  ;;  %vm1519_vm3 = vcmask 1043456  }
 0x497   :  { %v1073_v1 = vmul.f32 %v3619_v29, %v1072_v36 }
 0x498   :  { %v1031_v55 = vadd.f32 %v3617_v27, %v1030_v37 }
 0x499   :  { %v1074_v49 = vadd.f32 %v3619_v29, %v1073_v1 }
 0x49a   :  { %v1035_v63 = vsel %vm1034_vm9, %v3617_v27, %v1031_v55 }
 0x49b   :  { %v1040_v38 = vsel %vm1037_vm11, %v1039_v43, %v1035_v63  ;;  %v1078_v53 = vsel %vm1077_vm12, %v3619_v29, %v1074_v49 }
 0x49c   :  { %v1157_v17 = vmul.f32 %v3621_v41, %v1040_v38  ;;  %v1083_v42 = vsel %vm1080_vm13, %v1082_v0, %v1078_v53 }
 0x49d   :  { %v1156_v50 = vmul.f32 %v1154_v62, %v1083_v42 }
 0x49f   :  { %v4688_v59 = vadd.f32 %v1157_v17, %v1156_v50 }
 0x4a1   :  { %3622 = vtanh.f32 %v4688_v59 }
 0x4a7   :  { %v3623_v40 = vpop.eup %3622 }
 0x4a8   :  { %v1160_v54 = vmul.f32 %v3623_v40, %v1151_v51  ;;  %v1320_v40 = vrot.slane %v4688_v59, 6 }
 0x4aa   :  { %v1162_v8 = vrot.slane %v1160_v54, 2  ;;  %v1500_v9 = vrot.slane %v1160_v54, 6  ;;  %v4703_v12 = vsel %vm118_vm1, %v1160_v54, %v1508_v6 }
 0x4ab   :  { %v4708_v13 = vsel %vm1517_vm4, %v4696_v7, %v4703_v12 }
 0x4ac   :  { %3400 = vmatmul.msk.f32.vlgmr.msra.gmra.mxu2 %vm167_vm14, %v1162_v8  ;;  %3402 = vmatmul.msk.f32.vlgmr.msra.gmra.mxu3 %vm167_vm14, %v1162_v8  ;;  %v4714_v60 = vsel %vm118_vm1, %v4370_v5, %v1500_v9 }
 0x4ad   :  { %3404 = vmatmul.msk.f32.vlgmr.msrb.gmra.mxu0 %vm167_vm14, %v1162_v8  ;;  %3405 = vmatmul.msk.f32.vlgmr.msrb.gmra.mxu1 %vm167_vm14, %v1162_v8  ;;  %v1542_v14 = vrot.slane %v4714_v60, 2 }
 0x4af   :  { %v4721_v15 = vsel %vm1517_vm4, %v1539_v48, %v1542_v14 }
 0x52a   :  { %v1293_v18 = vpop.f32.mrf.mxu1  ;;  %v1268_v34 = vpop.f32.mrf.mxu0 }
 0x52b   :  { %v1297_v19 = vrot.slane %v1293_v18, 4  ;;  %v1272_v37 = vrot.slane %v1268_v34, 4 }
 0x52d   :  { %v1299_v20 = vadd.f32 %v1297_v19, %v4618_v61  ;;  %v1274_v1 = vadd.f32 %v1272_v37, %v4632_v16 }
 0x52f   :  { %v3406_v21 = vmul.f32 -1.442695, %v1299_v20  ;;  %v1182_v22 = vpop.f32.mrf.mxu2  ;;  %v1225_v23 = vpop.f32.mrf.mxu3 }
 0x530   :  { %v1186_v5 = vrot.slane %v1182_v22, 4  ;;  %v1229_v24 = vrot.slane %v1225_v23, 4  ;;  %v5746_v22 = vld [vmem:[#allocation7_spill] sm:$0xff] }
 0x531   :  { %3624 = vpow2.f32 %v3406_v21  ;;  %v1511_v23 = vrot.slane %v5746_v22, 6 }
 0x532   :  { %v1188_v25 = vadd.f32 %v1186_v5, %v4627_v57  ;;  %v1231_v26 = vadd.f32 %v1229_v24, %v4623_v47 }
 0x534   :  { %v3401_v27 = vmul.f32 -1.442695, %v1188_v25  ;;  %v3403_v28 = vmul.f32 -1.442695, %v1231_v26 }
 0x536   :  { %3626 = vpow2.f32 %v3401_v27 }
 0x537   :  { %v3625_v29 = vpop.eup %3624  ;;  %3628 = vpow2.f32 %v3403_v28 }
 0x538   :  { %v1303_v30 = vadd.f32 1.0, %v3625_v29 }
 0x53a   :  { %3630 = vrcp.f32 %v1303_v30  ;;  %v1315_v48 = vand.u32 2147483648, %v1303_v30  ;;  %vm1309_vm15 = vweird.f32 %v1303_v30  ;;  %v1313_v14 = vand.u32 2147483647, %v1303_v30 }
 0x53c   :  { %v3627_v31 = vpop.eup %3626  ;;  %v1316_v19 = vor.u32 1.1754944e-38, %v1315_v48  ;;  %vm1314_vm2 = vcmp.eq.f32.partialorder %v1313_v14, 8.507059e+37 }
 0x53d   :  { %v3629_v32 = vpop.eup %3628  ;;  %v1192_v33 = vadd.f32 1.0, %v3627_v31 }
 0x53e   :  { %v1235_v36 = vadd.f32 1.0, %v3629_v32 }
 0x53f   :  { %3632 = vrcp.f32 %v1192_v33  ;;  %v1204_v63 = vand.u32 2147483648, %v1192_v33  ;;  %v1202_v38 = vand.u32 2147483647, %v1192_v33  ;;  %vm1198_vm7 = vweird.f32 %v1192_v33 }
 0x540   :  { %3634 = vrcp.f32 %v1235_v36  ;;  %v3631_v35 = vpop.eup %3630  ;;  %v1247_v53 = vand.u32 2147483648, %v1235_v36  ;;  %v1245_v58 = vand.u32 2147483647, %v1235_v36  ;;  %vm1241_vm9 = vweird.f32 %v1235_v36 }
 0x541   :  { %v1305_v43 = vmul.f32 %v3631_v35, %v1303_v30  ;;  %3636 = vtanh.f32 %v1274_v1  ;;  %v1205_v50 = vor.u32 1.1754944e-38, %v1204_v63  ;;  %vm1203_vm10 = vcmp.eq.f32.partialorder %v1202_v38, 8.507059e+37  ;;  %v3420_v63 = vld [vmem:[%s5722_s4 + $0x60] sm:$0xff]  ;;  %v3419_v38 = vld [vmem:[%s5722_s4 + $0x58] sm:$0xff] }
 0x542   :  { %v1248_v52 = vor.u32 1.1754944e-38, %v1247_v53  ;;  %vm1246_vm12 = vcmp.eq.f32.partialorder %v1245_v58, 8.507059e+37  ;;  %vm1310_vm13 = vweird.f32 %v3631_v35  ;;  %v3418_v58 = vld [vmem:[%s5722_s4 + $0x50] sm:$0xff] }
 0x543   :  { %v1306_v17 = vsub.f32 1.0, %v1305_v43  ;;  %vm1311_vm0 = vmor %vm1309_vm15, %vm1310_vm13 }
 0x545   :  { %v3633_v2 = vpop.eup %3632  ;;  %v1307_v51 = vmul.f32 %v3631_v35, %v1306_v17 }
 0x546   :  { %v3635_v3 = vpop.eup %3634  ;;  %v1194_v56 = vmul.f32 %v3633_v2, %v1192_v33  ;;  %vm1199_vm5 = vweird.f32 %v3633_v2 }
 0x547   :  { %v1237_v55 = vmul.f32 %v3635_v3, %v1235_v36  ;;  %vm1242_vm6 = vweird.f32 %v3635_v3  ;;  %vm1200_vm8 = vmor %vm1198_vm7, %vm1199_vm5  ;;  %v3637_v39 = vpop.eup %3636  ;;  %v1308_v10 = vadd.f32 %v3631_v35, %v1307_v51 }
 0x548   :  { %v1195_v49 = vsub.f32 1.0, %v1194_v56  ;;  %vm1243_vm11 = vmor %vm1241_vm9, %vm1242_vm6  ;;  %v1562_v56 = vld [vmem:[%s5722_s4 + $0x30] sm:$0xff] }
 0x549   :  { %v1238_v0 = vsub.f32 1.0, %v1237_v55  ;;  %v1312_v18 = vsel %vm1311_vm0, %v3631_v35, %v1308_v10  ;;  %v3421_v55 = vld [vmem:[%s5722_s4 + $0x68] sm:$0xff] }
 0x54a   :  { %v1196_v41 = vmul.f32 %v3633_v2, %v1195_v49  ;;  %v1317_v21 = vsel %vm1314_vm2, %v1316_v19, %v1312_v18  ;;  %v1560_v49 = vld [vmem:[%s5722_s4 + $0x20] sm:$0xff] }
 0x54b   :  { %v1239_v62 = vmul.f32 %v3635_v3, %v1238_v0 }
 0x54c   :  { %v1197_v42 = vadd.f32 %v3633_v2, %v1196_v41  ;;  %v1559_v41 = vld [vmem:[%s5722_s4 + $0x18] sm:$0xff] }
 0x54d   :  { %v1240_v44 = vadd.f32 %v3635_v3, %v1239_v62  ;;  %v1558_v62 = vld [vmem:[%s5722_s4 + $0x10] sm:$0xff] }
 0x54e   :  { %v1201_v4 = vsel %vm1200_vm8, %v3633_v2, %v1197_v42 }
 0x54f   :  { %v1206_v46 = vsel %vm1203_vm10, %v1205_v50, %v1201_v4  ;;  %v1244_v45 = vsel %vm1243_vm11, %v3635_v3, %v1240_v44  ;;  %v1557_v4 = vld [vmem:[%s5722_s4 + $0x8] sm:$0xff] }
 0x550   :  { %v1323_v54 = vmul.f32 %v3637_v39, %v1206_v46  ;;  %v1249_v6 = vsel %vm1246_vm12, %v1248_v52, %v1244_v45  ;;  %v3417_v52 = vld [vmem:[%s5722_s4 + $0x48] sm:$0xff]  ;;  %v1556_v39 = vld [vmem:[%s5722_s4] sm:$0xff] }
 0x551   :  { %v1322_v8 = vmul.f32 %v1320_v40, %v1249_v6  ;;  %v3416_v46 = vld [vmem:[%s5722_s4 + $0x40] sm:$0xff] }
 0x553   :  { %v4728_v9 = vadd.f32 %v1323_v54, %v1322_v8 }
 0x555   :  { %3638 = vtanh.f32 %v4728_v9 }
 0x55b   :  { %v3639_v20 = vpop.eup %3638 }
 0x55c   :  { %v1326_v59 = vmul.f32 %v3639_v20, %v1317_v21  ;;  %v5012_v21 = vld [vmem:[%s5724_s6 + $0x140] sm:$0xff] }
 0x55e   :  { %v1328_v5 = vrot.slane %v1326_v59, 4  ;;  %v1497_v24 = vrot.slane %v1326_v59, 2  ;;  %v4733_v25 = vsel %vm118_vm1, %v1326_v59, %v1511_v23 }
 0x55f   :  { %v4738_v26 = vsel %vm1519_vm3, %v4708_v13, %v4733_v25 }
 0x560   :  { %3407 = vmatmul.msk.f32.vlgmr.msrb.gmra.mxu2 %vm167_vm14, %v1328_v5  ;;  %3409 = vmatmul.msk.f32.vlgmr.msrb.gmra.mxu3 %vm167_vm14, %v1328_v5  ;;  %v4744_v27 = vsel %vm118_vm1, %v5746_v22, %v1497_v24 }
 0x561   :  { %3411 = vmatmul.msk.f32.vlgmr.msra.gmra.mxu0 %vm167_vm14, %v1328_v5  ;;  %3412 = vmatmul.msk.f32.vlgmr.msra.gmra.mxu1 %vm167_vm14, %v1328_v5  ;;  %v1545_v28 = vrot.slane %v4744_v27, 6 }
 0x563   :  { %v4751_v29 = vsel %vm1519_vm3, %v4721_v15, %v1545_v28  ;;  %v1563_v15 = vld [vmem:[%s5722_s4 + $0x38] sm:$0xff] }
 0x564   :  { %1582 = vmatpush.msra.mxu2 %v1563_v15  ;;  %v4869_v15 = vld [vmem:[%s5724_s6 + $0x1b0] sm:$0xff] }
 0x566   :  { %1583 = vmatpush.msra.mxu2 %v1562_v56 }
 0x5de   :  { %v1459_v13 = vpop.f32.mrf.mxu1  ;;  %v1434_v50 = vpop.f32.mrf.mxu0 }
 0x5df   :  { %v1463_v30 = vrot.slane %v1459_v13, 2  ;;  %v1438_v45 = vrot.slane %v1434_v50, 2  ;;  %v4823_v13 = vld [vmem:[%s5724_s6 + $0x138] sm:$0xff] }
 0x5e0   :  { %1705 = vmatpush.msrb.mxu0 %v4823_v13  ;;  %v4926_v50 = vld [vmem:[%s5724_s6 + $0x158] sm:$0xff] }
 0x5e1   :  { %v1465_v31 = vadd.f32 %v1463_v30, %v4618_v61  ;;  %v3423_v61 = vld [vmem:[%s5722_s4 + $0x78] sm:$0xff]  ;;  %v1440_v54 = vadd.f32 %v1438_v45, %v4632_v16  ;;  %v4952_v45 = vld [vmem:[%s5724_s6 + $0x150] sm:$0xff] }
 0x5e2   :  { %1625 = vmatpush.msra.mxu3 %v3423_v61  ;;  %v4828_v30 = vld [vmem:[%s5724_s6 + $0x178] sm:$0xff] }
 0x5e3   :  { %v3413_v32 = vmul.f32 -1.442695, %v1465_v31  ;;  %v1348_v33 = vpop.f32.mrf.mxu2  ;;  %v1391_v34 = vpop.f32.mrf.mxu3  ;;  %v4833_v31 = vld [vmem:[%s5724_s6 + $0x130] sm:$0xff]  ;;  %1754 = vmatpush.msrb.mxu1 %v4828_v30 }
 0x5e4   :  { %v1352_v36 = vrot.slane %v1348_v33, 2  ;;  %v1395_v37 = vrot.slane %v1391_v34, 2  ;;  %v4840_v34 = vld [vmem:[%s5724_s6 + $0x170] sm:$0xff]  ;;  %1706 = vmatpush.msrb.mxu0 %v4833_v31 }
 0x5e5   :  { %3640 = vpow2.f32 %v3413_v32  ;;  %1755 = vmatpush.msrb.mxu1 %v4840_v34 }
 0x5e6   :  { %v1354_v35 = vadd.f32 %v1352_v36, %v4627_v57  ;;  %v1397_v2 = vadd.f32 %v1395_v37, %v4623_v47  ;;  %v3422_v47 = vld [vmem:[%s5722_s4 + $0x70] sm:$0xff]  ;;  %v1561_v57 = vld [vmem:[%s5722_s4 + $0x28] sm:$0xff]  ;;  %v4845_v36 = vld [vmem:[%s5724_s6 + $0x1b8] sm:$0xff] }
 0x5e7   :  { %1626 = vmatpush.msra.mxu3 %v3422_v47  ;;  %1584 = vmatpush.msra.mxu2 %v1561_v57  ;;  %v4850_v37 = vld [vmem:[%s5724_s6 + $0x1f8] sm:$0xff]  ;;  %v1486_v57 = vrot.slane %v4728_v9, 6  ;;  %v4892_v9 = vld [vmem:[%s5724_s6 + $0x160] sm:$0xff] }
 0x5e8   :  { %v3408_v1 = vmul.f32 -1.442695, %v1354_v35  ;;  %v3410_v3 = vmul.f32 -1.442695, %v1397_v2 }
 0x5e9   :  { %1627 = vmatpush.msra.mxu3 %v3421_v55  ;;  %1585 = vmatpush.msra.mxu2 %v1560_v49  ;;  %v4879_v55 = vld [vmem:[%s5724_s6 + $0x1f0] sm:$0xff] }
 0x5ea   :  { %3642 = vpow2.f32 %v3408_v1  ;;  %v4859_v1 = vld [vmem:[%s5724_s6 + $0x128] sm:$0xff] }
 0x5eb   :  { %v3641_v43 = vpop.eup %3640  ;;  %3644 = vpow2.f32 %v3410_v3  ;;  %1628 = vmatpush.msra.mxu3 %v3420_v63  ;;  %1586 = vmatpush.msra.mxu2 %v1559_v41  ;;  %v4864_v3 = vld [vmem:[%s5724_s6 + $0x168] sm:$0xff] }
 0x5ec   :  { %v4780_v0 = vadd.f32 1.0, %v3641_v43  ;;  %v4884_v43 = vld [vmem:[%s5724_s6 + $0x120] sm:$0xff]  ;;  %1707 = vmatpush.msrb.mxu0 %v4859_v1  ;;  %1756 = vmatpush.msrb.mxu1 %v4864_v3 }
 0x5ed   :  { %1629 = vmatpush.msra.mxu3 %v3419_v38  ;;  %1587 = vmatpush.msra.mxu2 %v1558_v62  ;;  %v4897_v38 = vld [vmem:[%s5724_s6 + $0x1a8] sm:$0xff] }
 0x5ee   :  { %3646 = vrcp.f32 %v4780_v0  ;;  %1708 = vmatpush.msrb.mxu0 %v4884_v43  ;;  %1757 = vmatpush.msrb.mxu1 %v4892_v9  ;;  %vm1475_vm15 = vweird.f32 %v4780_v0 }
 0x5ef   :  { %1630 = vmatpush.msra.mxu3 %v3418_v58  ;;  %1588 = vmatpush.msra.mxu2 %v1557_v4  ;;  %v4909_v58 = vld [vmem:[%s5724_s6 + $0x1a0] sm:$0xff]  ;;  %v4933_v4 = vld [vmem:[%s5724_s6 + $0x198] sm:$0xff] }
 0x5f0   :  { %v3643_v53 = vpop.eup %3642  ;;  %1758 = vmatpush.msrb.mxu1 %v4926_v50 }
 0x5f1   :  { %v3645_v17 = vpop.eup %3644  ;;  %v1358_v42 = vadd.f32 1.0, %v3643_v53  ;;  %1631 = vmatpush.msra.mxu3 %v3417_v52  ;;  %1589 = vmatpush.msra.mxu2 %v1556_v39  ;;  %v4902_v53 = vld [vmem:[%s5724_s6 + $0x1e8] sm:$0xff]  ;;  %v4938_v52 = vld [vmem:[%s5724_s6 + $0x1d8] sm:$0xff] }
 0x5f2   :  { %v1401_v44 = vadd.f32 1.0, %v3645_v17  ;;  %v4914_v17 = vld [vmem:[%s5724_s6 + $0x1e0] sm:$0xff]  ;;  %1759 = vmatpush.msrb.mxu1 %v4952_v45 }
 0x5f3   :  { %3648 = vrcp.f32 %v1358_v42  ;;  %1632 = vmatpush.msra.mxu3 %v3416_v46  ;;  %vm1364_vm7 = vweird.f32 %v1358_v42  ;;  %v1370_v18 = vand.u32 2147483648, %v1358_v42  ;;  %v1368_v59 = vand.u32 2147483647, %v1358_v42  ;;  %1803 = vmatpush.msrb.mxu2 %v4845_v36  ;;  %v4947_v46 = vld [vmem:[%s5724_s6 + $0x110] sm:$0xff] }
 0x5f4   :  { %3650 = vrcp.f32 %v1401_v44  ;;  %v4807_v40 = vpop.eup %3646  ;;  %vm1407_vm9 = vweird.f32 %v1401_v44  ;;  %v1413_v16 = vand.u32 2147483648, %v1401_v44  ;;  %v1411_v5 = vand.u32 2147483647, %v1401_v44 }
 0x5f5   :  { %v1471_v48 = vmul.f32 %v4807_v40, %v4780_v0  ;;  %3652 = vtanh.f32 %v1440_v54  ;;  %v1371_v32 = vor.u32 1.1754944e-38, %v1370_v18  ;;  %vm1369_vm11 = vcmp.eq.f32.partialorder %v1368_v59, 8.507059e+37  ;;  %1834 = vmatpush.msrb.mxu3 %v4850_v37  ;;  %1804 = vmatpush.msrb.mxu2 %v4869_v15  ;;  %v4960_v54 = vld [vmem:[%s5724_s6 + $0x190] sm:$0xff]  ;;  %v4997_v18 = vld [vmem:[%s5724_s6 + $0x1c8] sm:$0xff] }
 0x5f6   :  { %v1414_v2 = vor.u32 1.1754944e-38, %v1413_v16  ;;  %vm1412_vm12 = vcmp.eq.f32.partialorder %v1411_v5, 8.507059e+37  ;;  %vm1476_vm13 = vweird.f32 %v4807_v40  ;;  %v5026_v16 = vld [vmem:[%s5724_s6 + $0x1c0] sm:$0xff] }
 0x5f7   :  { %v1472_v24 = vsub.f32 1.0, %v1471_v48  ;;  %1835 = vmatpush.msrb.mxu3 %v4879_v55  ;;  %1805 = vmatpush.msrb.mxu2 %v4897_v38  ;;  %v4979_v48 = vld [vmem:[%s5724_s6 + $0x148] sm:$0xff]  ;;  %vm4983_vm0 = vmor %vm1475_vm15, %vm1476_vm13 }
 0x5f8   :  { %1760 = vmatpush.msrb.mxu1 %v4979_v48 }
 0x5f9   :  { %v3649_v51 = vpop.eup %3648  ;;  %v1473_v49 = vmul.f32 %v4807_v40, %v1472_v24  ;;  %1836 = vmatpush.msrb.mxu3 %v4902_v53  ;;  %1806 = vmatpush.msrb.mxu2 %v4909_v58  ;;  %v5753_v24 = vld [vmem:[#allocation6_spill] sm:$0xff] }
 0x5fa   :  { %v3651_v6 = vpop.eup %3650  ;;  %v1360_v8 = vmul.f32 %v3649_v51, %v1358_v42  ;;  %vm1365_vm5 = vweird.f32 %v3649_v51  ;;  %v4921_v42 = vld [vmem:[%s5724_s6 + $0x118] sm:$0xff]  ;;  %1761 = vmatpush.msrb.mxu1 %v5012_v21 }
 0x5fb   :  { %v1403_v10 = vmul.f32 %v3651_v6, %v1401_v44  ;;  %vm1408_vm6 = vweird.f32 %v3651_v6  ;;  %vm4812_vm8 = vmor %vm1364_vm7, %vm1365_vm5  ;;  %v3653_v61 = vpop.eup %3652  ;;  %v1474_v39 = vadd.f32 %v4807_v40, %v1473_v49  ;;  %1837 = vmatpush.msrb.mxu3 %v4914_v17  ;;  %1709 = vmatpush.msrb.mxu0 %v4921_v42  ;;  %vm1521_vm5 = vcmask 1045504  }
 0x5fc   :  { %v1361_v14 = vsub.f32 1.0, %v1360_v8  ;;  %vm4816_vm10 = vmor %vm1407_vm9, %vm1408_vm6  ;;  %v1479_v8 = vand.u32 2147483647, %v4780_v0  ;;  %1807 = vmatpush.msrb.mxu2 %v4933_v4  ;;  %1925 = vmatpush.msra.mxu1 %v4828_v30 }
 0x5fd   :  { %v1404_v19 = vsub.f32 1.0, %v1403_v10  ;;  %1838 = vmatpush.msrb.mxu3 %v4938_v52  ;;  %v4974_v10 = vld [vmem:[%s5724_s6 + $0x108] sm:$0xff]  ;;  %1710 = vmatpush.msrb.mxu0 %v4947_v46 }
 0x5fe   :  { %v1362_v20 = vmul.f32 %v3649_v51, %v1361_v14  ;;  %1808 = vmatpush.msrb.mxu2 %v4960_v54  ;;  %vm1480_vm2 = vcmp.eq.f32.partialorder %v1479_v8, 8.507059e+37  ;;  %1926 = vmatpush.msra.mxu1 %v4840_v34 }
 0x5ff   :  { %v1405_v22 = vmul.f32 %v3651_v6, %v1404_v19  ;;  %v1478_v19 = vsel %vm4983_vm0, %v4807_v40, %v1474_v39  ;;  %1711 = vmatpush.msrb.mxu0 %v4974_v10  ;;  %v5021_v40 = vld [vmem:[%s5724_s6 + $0x180] sm:$0xff] }
 0x600   :  { %v1363_v28 = vadd.f32 %v3649_v51, %v1362_v20  ;;  %v5007_v20 = vld [vmem:[%s5724_s6 + $0x100] sm:$0xff]  ;;  %1927 = vmatpush.msra.mxu1 %v4864_v3 }
 0x601   :  { %v1406_v33 = vadd.f32 %v3651_v6, %v1405_v22  ;;  %1712 = vmatpush.msrb.mxu0 %v5007_v20 }
 0x602   :  { %v1367_v35 = vsel %vm4812_vm8, %v3649_v51, %v1363_v28  ;;  %v1481_v51 = vand.u32 2147483648, %v4780_v0  ;;  %v4992_v0 = vld [vmem:[%s5724_s6 + $0x188] sm:$0xff]  ;;  %v1514_v28 = vrot.slane %v5753_v24, 2  ;;  %1928 = vmatpush.msra.mxu1 %v4892_v9 }
 0x603   :  { %v1372_v56 = vsel %vm1369_vm11, %v1371_v32, %v1367_v35  ;;  %v1410_v47 = vsel %vm4816_vm10, %v3651_v6, %v1406_v33  ;;  %v4965_v6 = vld [vmem:[%s5724_s6 + $0x1d0] sm:$0xff]  ;;  %1809 = vmatpush.msrb.mxu2 %v4992_v0  ;;  %v5754_v32 = vmov 0.0   ;;  %1882 = vmatpush.msra.mxu0 %v4823_v13 }
 0x604   :  { %v1489_v63 = vmul.f32 %v3653_v61, %v1372_v56  ;;  %v1415_v41 = vsel %vm1412_vm12, %v1414_v2, %v1410_v47  ;;  %1839 = vmatpush.msrb.mxu3 %v4965_v6  ;;  %v1482_v59 = vor.u32 1.1754944e-38, %v1481_v51  ;;  %1713 = vmatmul.f32.vlgmr.msrb.gmra.mxu0 %v5754_v32  ;;  %v1530_v61 = vrot.slane %v4733_v25, 2 }
 0x605   :  { %v1488_v62 = vmul.f32 %v1486_v57, %v1415_v41  ;;  %1762 = vmatmul.f32.vlgmr.msrb.gmra.mxu1 %v5754_v32  ;;  %1810 = vmatpush.msrb.mxu2 %v5021_v40  ;;  %v1533_v57 = vrot.slane %v4703_v12, 6 }
 0x606   :  { %1840 = vmatpush.msrb.mxu3 %v4997_v18  ;;  %v1483_v23 = vsel %vm1480_vm2, %v1482_v59, %v1478_v19  ;;  %1883 = vmatpush.msra.mxu0 %v4833_v31 }
 0x607   :  { %v1490_v44 = vadd.f32 %v1489_v63, %v1488_v62  ;;  %v1536_v63 = vrot.slane %v4696_v7, 2  ;;  %1929 = vmatpush.msra.mxu1 %v4926_v50 }
 0x608   :  { %1841 = vmatpush.msrb.mxu3 %v5026_v16  ;;  %1884 = vmatpush.msra.mxu0 %v4859_v1 }
 0x609   :  { %3654 = vtanh.f32 %v1490_v44  ;;  %1930 = vmatpush.msra.mxu1 %v4952_v45 }
 0x60a   :  { %1885 = vmatpush.msra.mxu0 %v4884_v43 }
 0x60b   :  { %1931 = vmatpush.msra.mxu1 %v4979_v48 }
 0x60c   :  { %1886 = vmatpush.msra.mxu0 %v4921_v42 }
 0x60d   :  { %1932 = vmatpush.msra.mxu1 %v5012_v21 }
 0x60e   :  { %1887 = vmatpush.msra.mxu0 %v4947_v46 }
 0x60f   :  { %v3655_v22 = vpop.eup %3654  ;;  %2091 = vmatpush.msrb.mxu1 %v4828_v30 }
 0x610   :  { %v1492_v5 = vmul.f32 %v3655_v22, %v1483_v23  ;;  %1888 = vmatpush.msra.mxu0 %v4974_v10 }
 0x611   :  { %2092 = vmatpush.msrb.mxu1 %v4840_v34 }
 0x612   :  { %v1494_v33 = vrot.slane %v1492_v5, 6  ;;  %v1516_v35 = vsel %vm118_vm1, %v1492_v5, %v1514_v28  ;;  %1889 = vmatpush.msra.mxu0 %v5007_v20 }
 0x613   :  { %v1527_v2 = vrot.slane %v1516_v35, 6  ;;  %v1525_v56 = vsel %vm1521_vm5, %v4738_v26, %v1516_v35  ;;  %2093 = vmatpush.msrb.mxu1 %v4864_v3 }
 0x614   :  { %v1496_v47 = vsel %vm118_vm1, %v5753_v24, %v1494_v33  ;;  %2048 = vmatpush.msrb.mxu0 %v4823_v13 }
 0x615   :  { %v1518_v49 = vsel %vm1517_vm4, %v1496_v47, %v4744_v27  ;;  %v1550_v41 = vsel %vm1517_vm4, %v1527_v2, %v1530_v61  ;;  %v1548_v25 = vrot.slane %v1496_v47, 2  ;;  %2094 = vmatpush.msrb.mxu1 %v4892_v9 }
 0x616   :  { %v1520_v26 = vsel %vm1519_vm3, %v1518_v49, %v4714_v60  ;;  %v1551_v62 = vsel %vm1519_vm3, %v1550_v41, %v1533_v57  ;;  %2049 = vmatpush.msrb.mxu0 %v4833_v31  ;;  %v3526_v60 = vld [vmem:[%s5723_s5 + $0x1] ss:$0 sm:$0xff] }
 0x617   :  { %v1522_v12 = vsel %vm1521_vm5, %v1520_v26, %v4700_v11  ;;  %v1552_v44 = vsel %vm1521_vm5, %v1551_v62, %v1536_v63  ;;  %v1555_v7 = vsel %vm1521_vm5, %v4751_v29, %v1548_v25  ;;  %2095 = vmatpush.msrb.mxu1 %v4926_v50  ;;  %v3525_v11 = vld [vmem:[%s5723_s5] ss:$0 sm:$0xff]  ;;  %s3887_s5 = smov [#allocation2]  }
 0x618   :  { %3414 = vmatmul.msk.f32.vlgmr.msra.gmra.mxu2 %vm167_vm14, %v1522_v12  ;;  %3425 = vmatmul.msk.f32.vlgmr.msra.gmra.mxu3 %vm167_vm14, %v1552_v44 }
 0x619   :  { %1968 = vmatpush.msra.mxu2 %v4845_v36  ;;  %1993 = vmatpush.msra.mxu3 %v4850_v37 }
 0x61a   :  { %2050 = vmatpush.msrb.mxu0 %v4859_v1  ;;  %2096 = vmatpush.msrb.mxu1 %v4952_v45 }
 0x61b   :  { %1969 = vmatpush.msra.mxu2 %v4869_v15  ;;  %1994 = vmatpush.msra.mxu3 %v4879_v55 }
 0x61c   :  { %2051 = vmatpush.msrb.mxu0 %v4884_v43  ;;  %2097 = vmatpush.msrb.mxu1 %v4979_v48 }
 0x61d   :  { %1970 = vmatpush.msra.mxu2 %v4897_v38  ;;  %1995 = vmatpush.msra.mxu3 %v4902_v53 }
 0x61e   :  { %2052 = vmatpush.msrb.mxu0 %v4921_v42  ;;  %2098 = vmatpush.msrb.mxu1 %v5012_v21 }
 0x61f   :  { %1971 = vmatpush.msra.mxu2 %v4909_v58  ;;  %1996 = vmatpush.msra.mxu3 %v4914_v17 }
 0x620   :  { %3415 = vmatmul.msk.f32.gmra.mxu2 %vm167_vm14, %v1525_v56  ;;  %3426 = vmatmul.msk.f32.gmra.mxu3 %vm167_vm14, %v1555_v7 }
 0x621   :  { %1972 = vmatpush.msra.mxu2 %v4933_v4  ;;  %1997 = vmatpush.msra.mxu3 %v4938_v52 }
 0x622   :  { %2053 = vmatpush.msrb.mxu0 %v4947_v46 }
 0x623   :  { %1973 = vmatpush.msra.mxu2 %v4960_v54  ;;  %1998 = vmatpush.msra.mxu3 %v4965_v6 }
 0x624   :  { %2054 = vmatpush.msrb.mxu0 %v4974_v10 }
 0x625   :  { %1974 = vmatpush.msra.mxu2 %v4992_v0  ;;  %1999 = vmatpush.msra.mxu3 %v4997_v18 }
 0x626   :  { %2055 = vmatpush.msrb.mxu0 %v5007_v20 }
 0x627   :  { %1975 = vmatpush.msra.mxu2 %v5021_v40  ;;  %2000 = vmatpush.msra.mxu3 %v5026_v16 }
 0x628   :  { %1811 = vmatmul.f32.vlgmr.msrb.gmra.mxu2 %v5754_v32  ;;  %1842 = vmatmul.f32.vlgmr.msrb.gmra.mxu3 %v5754_v32 }
 0x629   :  { %2134 = vmatpush.msrb.mxu2 %v4845_v36  ;;  %2159 = vmatpush.msrb.mxu3 %v4850_v37 }
 0x62b   :  { %2135 = vmatpush.msrb.mxu2 %v4869_v15  ;;  %2160 = vmatpush.msrb.mxu3 %v4879_v55 }
 0x62d   :  { %2136 = vmatpush.msrb.mxu2 %v4897_v38  ;;  %2161 = vmatpush.msrb.mxu3 %v4902_v53 }
 0x62f   :  { %2137 = vmatpush.msrb.mxu2 %v4909_v58  ;;  %2162 = vmatpush.msrb.mxu3 %v4914_v17 }
 0x631   :  { %2138 = vmatpush.msrb.mxu2 %v4933_v4  ;;  %2163 = vmatpush.msrb.mxu3 %v4938_v52 }
 0x633   :  { %2139 = vmatpush.msrb.mxu2 %v4960_v54  ;;  %2164 = vmatpush.msrb.mxu3 %v4965_v6 }
 0x635   :  { %2140 = vmatpush.msrb.mxu2 %v4992_v0  ;;  %2165 = vmatpush.msrb.mxu3 %v4997_v18 }
 0x637   :  { %2141 = vmatpush.msrb.mxu2 %v5021_v40  ;;  %2166 = vmatpush.msrb.mxu3 %v5026_v16 }
 0x681   :  { %v1714_v22 = vpop.f32.mrf.mxu0 }
 0x682   :  { %v1763_v5 = vpop.f32.mrf.mxu1 }
 0x69b   :  { %v1591_v27 = vpop.f32.mrf.mxu2  ;;  %v1634_v29 = vpop.f32.mrf.mxu3 }
 0x69c   :  { %v1592_v39 = vadd.f32 %v3525_v11, %v1591_v27  ;;  %v1635_v51 = vadd.f32 %v3526_v60, %v1634_v29 }
 0x69e   :  { %1642 = vrot.lane.b32.xlu0 %v1635_v51, %s3883_s2  ;;  %1674 = vrot.lane.b32.xlu2 %v1592_v39, %s3883_s2 }
 0x69f   :  { %1652 = vrot.lane.b32.xlu1 %v1592_v39, %s3885_s24 }
 0x6a3   :  { %v1594_v8 = vpop.f32.mrf.mxu2  ;;  %v1637_v14 = vpop.f32.mrf.mxu3 }
 0x6a4   :  { %v5136_v19 = vadd.f32 %v3525_v11, %v1594_v8  ;;  %v5138_v59 = vadd.f32 %v3526_v60, %v1637_v14 }
 0x6a6   :  { %1680 = vrot.lane.b32.xlu0 %v1635_v51, %s3884_s23  ;;  %1666 = vrot.lane.b32.xlu2 %v1635_v51, %s3885_s24 }
 0x6a7   :  { %1660 = vrot.lane.b32.xlu1 %v1592_v39, %s3884_s23 }
 0x6ab   :  { %v1843_v47 = vpop.f32.mrf.mxu3  ;;  %v1812_v60 = vpop.f32.mrf.mxu2 }
 0x6ae   :  { %1644 = vrot.lane.b32.xlu0 %v5138_v59, %s3883_s2  ;;  %1676 = vrot.lane.b32.xlu2 %v5136_v19, %s3883_s2  ;;  %s3320_s2 = sshll.u32 %s3887_s5, 4  ;;  %s3321_s2 = int_to_ptr.vmem [resolvable:$true] %s3320_s2 }
 0x6af   :  { %1654 = vrot.lane.b32.xlu1 %v5136_v19, %s3885_s24 }
 0x6b6   :  { %1682 = vrot.lane.b32.xlu0 %v5138_v59, %s3884_s23  ;;  %1668 = vrot.lane.b32.xlu2 %v5138_v59, %s3885_s24 }
 0x6b7   :  { %1662 = vrot.lane.b32.xlu1 %v5136_v19, %s3884_s23 }
 0x6f8   :  { %v1675_v56 = vpop.permute.xlu2 %1674 }
 0x700   :  { %v1667_v7 = vpop.permute.xlu2 %1666 }
 0x710   :  { %v1643_v23 = vpop.permute.xlu0 %1642 }
 0x711   :  { %v5153_v24 = vsel %vm118_vm1, %v1592_v39, %v1643_v23  ;;  %v1653_v28 = vpop.permute.xlu1 %1652 }
 0x712   :  { %v5156_v32 = vsel %vm118_vm1, %v1653_v28, %v1635_v51  ;;  %v1717_v33 = vadd.f32 %v1714_v22, %v5153_v24 }
 0x713   :  { %v1766_v35 = vadd.f32 %v1763_v5, %v5156_v32 }
 0x714   :  { %v3435_v2 = vmul.f32 -1.442695, %v1717_v33 }
 0x715   :  { %v3444_v61 = vmul.f32 -1.442695, %v1766_v35 }
 0x716   :  { %3656 = vpow2.f32 %v3435_v2 }
 0x717   :  { %3658 = vpow2.f32 %v3444_v61 }
 0x718   :  { %v1681_v57 = vpop.permute.xlu0 %1680 }
 0x719   :  { %v5161_v49 = vsel %vm118_vm1, %v1675_v56, %v1681_v57  ;;  %v1661_v44 = vpop.permute.xlu1 %1660 }
 0x71a   :  { %v1846_v63 = vadd.f32 %v1843_v47, %v5161_v49  ;;  %v5165_v11 = vsel %vm118_vm1, %v1661_v44, %v1667_v7 }
 0x71b   :  { %v1815_v39 = vadd.f32 %v1812_v60, %v5165_v11 }
 0x71c   :  { %v3657_v41 = vpop.eup %3656  ;;  %v3461_v25 = vmul.f32 -1.442695, %v1846_v63 }
 0x71d   :  { %v3659_v26 = vpop.eup %3658  ;;  %v1721_v62 = vadd.f32 1.0, %v3657_v41 }
 0x71e   :  { %v1770_v12 = vadd.f32 1.0, %v3659_v26  ;;  %3660 = vpow2.f32 %v3461_v25 }
 0x71f   :  { %3662 = vrcp.f32 %v1721_v62  ;;  %v1733_v28 = vand.u32 2147483648, %v1721_v62  ;;  %v1731_v2 = vand.u32 2147483647, %v1721_v62  ;;  %vm1727_vm8 = vweird.f32 %v1721_v62 }
 0x720   :  { %3664 = vrcp.f32 %v1770_v12  ;;  %v1782_v33 = vand.u32 2147483648, %v1770_v12  ;;  %v1780_v56 = vand.u32 2147483647, %v1770_v12  ;;  %vm1776_vm9 = vweird.f32 %v1770_v12 }
 0x721   :  { %v1734_v63 = vor.u32 1.1754944e-38, %v1733_v28  ;;  %vm1732_vm11 = vcmp.eq.f32.partialorder %v1731_v2, 8.507059e+37 }
 0x722   :  { %v1783_v25 = vor.u32 1.1754944e-38, %v1782_v33  ;;  %vm1781_vm13 = vcmp.eq.f32.partialorder %v1780_v56, 8.507059e+37 }
 0x724   :  { %v3661_v27 = vpop.eup %3660 }
 0x725   :  { %v3663_v29 = vpop.eup %3662  ;;  %v1850_v51 = vadd.f32 1.0, %v3661_v27 }
 0x726   :  { %v3665_v8 = vpop.eup %3664  ;;  %v1723_v14 = vmul.f32 %v3663_v29, %v1721_v62  ;;  %vm1728_vm6 = vweird.f32 %v3663_v29 }
 0x727   :  { %v1772_v22 = vmul.f32 %v3665_v8, %v1770_v12  ;;  %3666 = vrcp.f32 %v1850_v51  ;;  %vm1777_vm7 = vweird.f32 %v3665_v8  ;;  %vm1729_vm10 = vmor %vm1727_vm8, %vm1728_vm6  ;;  %v1862_v28 = vand.u32 2147483648, %v1850_v51 }
 0x728   :  { %v1724_v23 = vsub.f32 1.0, %v1723_v14  ;;  %3668 = vtanh.f32 %v1815_v39  ;;  %vm1778_vm12 = vmor %vm1776_vm9, %vm1777_vm7  ;;  %vm1856_vm0 = vweird.f32 %v1850_v51 }
 0x729   :  { %v1773_v5 = vsub.f32 1.0, %v1772_v22 }
 0x72a   :  { %v1725_v35 = vmul.f32 %v3663_v29, %v1724_v23 }
 0x72b   :  { %v1774_v61 = vmul.f32 %v3665_v8, %v1773_v5 }
 0x72c   :  { %v1726_v47 = vadd.f32 %v3663_v29, %v1725_v35  ;;  %v1863_v35 = vor.u32 1.1754944e-38, %v1862_v28 }
 0x72d   :  { %v3667_v57 = vpop.eup %3666  ;;  %v1775_v41 = vadd.f32 %v3665_v8, %v1774_v61 }
 0x72e   :  { %v1730_v26 = vsel %vm1729_vm10, %v3663_v29, %v1726_v47  ;;  %v1852_v44 = vmul.f32 %v3667_v57, %v1850_v51  ;;  %v3669_v7 = vpop.eup %3668  ;;  %vm1857_vm15 = vweird.f32 %v3667_v57  ;;  %v1860_v29 = vand.u32 2147483647, %v1850_v51 }
 0x72f   :  { %v1735_v60 = vsel %vm1732_vm11, %v1734_v63, %v1730_v26  ;;  %v1779_v27 = vsel %vm1778_vm12, %v3665_v8, %v1775_v41  ;;  %vm1858_vm2 = vmor %vm1856_vm0, %vm1857_vm15 }
 0x730   :  { %v1784_v39 = vsel %vm1781_vm13, %v1783_v25, %v1779_v27  ;;  %v1867_v14 = vmul.f32 %v3669_v7, %v1735_v60  ;;  %v1853_v22 = vsub.f32 1.0, %v1852_v44  ;;  %vm1861_vm6 = vcmp.eq.f32.partialorder %v1860_v29, 8.507059e+37 }
 0x731   :  { %v1866_v23 = vmul.f32 0.0, %v1784_v39 }
 0x732   :  { %v1854_v5 = vmul.f32 %v3667_v57, %v1853_v22 }
 0x733   :  { %v5168_v62 = vadd.f32 %v1867_v14, %v1866_v23 }
 0x734   :  { %v1855_v12 = vadd.f32 %v3667_v57, %v1854_v5 }
 0x735   :  { %3670 = vtanh.f32 %v5168_v62 }
 0x736   :  { %v1859_v33 = vsel %vm1858_vm2, %v3667_v57, %v1855_v12 }
 0x737   :  { %v1864_v2 = vsel %vm1861_vm6, %v1863_v35, %v1859_v33 }
 0x73b   :  { %v3671_v8 = vpop.eup %3670 }
 0x73c   :  { %v5171_v61 = vmul.f32 %v3671_v8, %v1864_v2 }
 0x73e   :  { %5755 = vst [vmem:[#allocation5_spill] sm:$0xff] %v5171_v61  ;;  %3462 = vmatmul.msk.f32.vlgmr.msra.gmra.mxu0 %vm167_vm14, %v5171_v61  ;;  %3464 = vmatmul.msk.f32.vlgmr.msra.gmra.mxu1 %vm167_vm14, %v5171_v61 }
 0x73f   :  { %3466 = vmatmul.msk.f32.vlgmr.msra.gmra.mxu2 %vm167_vm14, %v5171_v61  ;;  %3467 = vmatmul.msk.f32.vlgmr.msra.gmra.mxu3 %vm167_vm14, %v5171_v61 }
 0x740   :  { %2214 = vmatpush.msra.mxu0 %v4823_v13  ;;  %2257 = vmatpush.msra.mxu1 %v4828_v30 }
 0x741   :  { %2300 = vmatpush.msra.mxu2 %v4845_v36  ;;  %2325 = vmatpush.msra.mxu3 %v4850_v37 }
 0x742   :  { %2215 = vmatpush.msra.mxu0 %v4833_v31  ;;  %2258 = vmatpush.msra.mxu1 %v4840_v34 }
 0x743   :  { %2301 = vmatpush.msra.mxu2 %v4869_v15  ;;  %2326 = vmatpush.msra.mxu3 %v4879_v55 }
 0x744   :  { %2216 = vmatpush.msra.mxu0 %v4859_v1  ;;  %2259 = vmatpush.msra.mxu1 %v4864_v3 }
 0x745   :  { %2302 = vmatpush.msra.mxu2 %v4897_v38  ;;  %2327 = vmatpush.msra.mxu3 %v4902_v53 }
 0x746   :  { %2217 = vmatpush.msra.mxu0 %v4884_v43  ;;  %2260 = vmatpush.msra.mxu1 %v4892_v9 }
 0x747   :  { %2303 = vmatpush.msra.mxu2 %v4909_v58  ;;  %2328 = vmatpush.msra.mxu3 %v4914_v17 }
 0x748   :  { %2218 = vmatpush.msra.mxu0 %v4921_v42  ;;  %2261 = vmatpush.msra.mxu1 %v4926_v50 }
 0x749   :  { %2304 = vmatpush.msra.mxu2 %v4933_v4  ;;  %2329 = vmatpush.msra.mxu3 %v4938_v52 }
 0x74a   :  { %2219 = vmatpush.msra.mxu0 %v4947_v46  ;;  %2262 = vmatpush.msra.mxu1 %v4952_v45 }
 0x74b   :  { %2305 = vmatpush.msra.mxu2 %v4960_v54  ;;  %2330 = vmatpush.msra.mxu3 %v4965_v6 }
 0x74c   :  { %2220 = vmatpush.msra.mxu0 %v4974_v10  ;;  %2263 = vmatpush.msra.mxu1 %v4979_v48 }
 0x74d   :  { %2306 = vmatpush.msra.mxu2 %v4992_v0  ;;  %2331 = vmatpush.msra.mxu3 %v4997_v18 }
 0x74e   :  { %2221 = vmatpush.msra.mxu0 %v5007_v20  ;;  %2264 = vmatpush.msra.mxu1 %v5012_v21 }
 0x74f   :  { %2307 = vmatpush.msra.mxu2 %v5021_v40  ;;  %2332 = vmatpush.msra.mxu3 %v5026_v16 }
 0x7bb   :  { %v1891_v51 = vpop.f32.mrf.mxu0  ;;  %v1934_v56 = vpop.f32.mrf.mxu1 }
 0x7bc   :  { %v1895_v47 = vrot.slane %v1891_v51, 6  ;;  %v1938_v57 = vrot.slane %v1934_v56, 6 }
 0x7be   :  { %v1897_v63 = vadd.f32 %v1895_v47, %v5153_v24  ;;  %v1940_v41 = vadd.f32 %v1938_v57, %v5156_v32 }
 0x7c0   :  { %v3463_v25 = vmul.f32 -1.442695, %v1897_v63  ;;  %v3465_v26 = vmul.f32 -1.442695, %v1940_v41 }
 0x7c2   :  { %3672 = vpow2.f32 %v3463_v25  ;;  %v2002_v44 = vpop.f32.mrf.mxu3  ;;  %v1977_v5 = vpop.f32.mrf.mxu2 }
 0x7c3   :  { %3674 = vpow2.f32 %v3465_v26  ;;  %v2006_v7 = vrot.slane %v2002_v44, 6  ;;  %v1981_v12 = vrot.slane %v1977_v5, 6  ;;  %v2029_v5 = vrot.slane %v5168_v62, 6 }
 0x7c5   :  { %v2008_v60 = vadd.f32 %v2006_v7, %v5161_v49  ;;  %v1983_v35 = vadd.f32 %v1981_v12, %v5165_v11 }
 0x7c7   :  { %v3468_v27 = vmul.f32 -1.442695, %v2008_v60 }
 0x7c8   :  { %v3673_v39 = vpop.eup %3672 }
 0x7c9   :  { %v3675_v14 = vpop.eup %3674  ;;  %v1901_v22 = vadd.f32 1.0, %v3673_v39  ;;  %3676 = vpow2.f32 %v3468_v27 }
 0x7ca   :  { %v1944_v23 = vadd.f32 1.0, %v3675_v14 }
 0x7cb   :  { %3678 = vrcp.f32 %v1901_v22  ;;  %v1913_v57 = vand.u32 2147483648, %v1901_v22  ;;  %v1911_v25 = vand.u32 2147483647, %v1901_v22  ;;  %vm1907_vm9 = vweird.f32 %v1901_v22 }
 0x7cc   :  { %3680 = vrcp.f32 %v1944_v23  ;;  %v1956_v63 = vand.u32 2147483648, %v1944_v23  ;;  %v1954_v44 = vand.u32 2147483647, %v1944_v23  ;;  %vm1950_vm10 = vweird.f32 %v1944_v23 }
 0x7cd   :  { %v1914_v27 = vor.u32 1.1754944e-38, %v1913_v57  ;;  %vm1912_vm13 = vcmp.eq.f32.partialorder %v1911_v25, 8.507059e+37 }
 0x7ce   :  { %v1957_v12 = vor.u32 1.1754944e-38, %v1956_v63  ;;  %vm1955_vm15 = vcmp.eq.f32.partialorder %v1954_v44, 8.507059e+37 }
 0x7cf   :  { %v3677_v28 = vpop.eup %3676 }
 0x7d0   :  { %v2012_v29 = vadd.f32 1.0, %v3677_v28 }
 0x7d1   :  { %v3679_v33 = vpop.eup %3678 }
 0x7d2   :  { %v3681_v8 = vpop.eup %3680  ;;  %v1903_v2 = vmul.f32 %v3679_v33, %v1901_v22  ;;  %3682 = vrcp.f32 %v2012_v29  ;;  %vm1908_vm7 = vweird.f32 %v3679_v33  ;;  %v2024_v62 = vand.u32 2147483648, %v2012_v29 }
 0x7d3   :  { %v1946_v51 = vmul.f32 %v3681_v8, %v1944_v23  ;;  %3684 = vtanh.f32 %v1983_v35  ;;  %vm1951_vm8 = vweird.f32 %v3681_v8  ;;  %vm1909_vm11 = vmor %vm1907_vm9, %vm1908_vm7  ;;  %vm2018_vm2 = vweird.f32 %v2012_v29 }
 0x7d4   :  { %v1904_v56 = vsub.f32 1.0, %v1903_v2  ;;  %vm1952_vm12 = vmor %vm1950_vm10, %vm1951_vm8  ;;  %v2022_v63 = vand.u32 2147483647, %v2012_v29  ;;  %v2025_v25 = vor.u32 1.1754944e-38, %v2024_v62 }
 0x7d5   :  { %v1947_v47 = vsub.f32 1.0, %v1946_v51 }
 0x7d6   :  { %v1905_v41 = vmul.f32 %v3679_v33, %v1904_v56  ;;  %vm2023_vm7 = vcmp.eq.f32.partialorder %v2022_v63, 8.507059e+37 }
 0x7d7   :  { %v1948_v26 = vmul.f32 %v3681_v8, %v1947_v47 }
 0x7d8   :  { %v3683_v7 = vpop.eup %3682  ;;  %v1906_v60 = vadd.f32 %v3679_v33, %v1905_v41 }
 0x7d9   :  { %v1949_v39 = vadd.f32 %v3681_v8, %v1948_v26  ;;  %v2014_v14 = vmul.f32 %v3683_v7, %v2012_v29  ;;  %v3685_v35 = vpop.eup %3684  ;;  %vm2019_vm0 = vweird.f32 %v3683_v7 }
 0x7da   :  { %v1910_v28 = vsel %vm1909_vm11, %v3679_v33, %v1906_v60  ;;  %vm2020_vm6 = vmor %vm2018_vm2, %vm2019_vm0 }
 0x7db   :  { %v1915_v2 = vsel %vm1912_vm13, %v1914_v27, %v1910_v28  ;;  %v1953_v51 = vsel %vm1952_vm12, %v3681_v8, %v1949_v39  ;;  %v2015_v56 = vsub.f32 1.0, %v2014_v14 }
 0x7dc   :  { %v1958_v47 = vsel %vm1955_vm15, %v1957_v12, %v1953_v51  ;;  %v2032_v61 = vmul.f32 %v3685_v35, %v1915_v2 }
 0x7dd   :  { %v2031_v41 = vmul.f32 %v2029_v5, %v1958_v47  ;;  %v2016_v22 = vmul.f32 %v3683_v7, %v2015_v56 }
 0x7df   :  { %v5218_v23 = vadd.f32 %v2032_v61, %v2031_v41  ;;  %v2017_v57 = vadd.f32 %v3683_v7, %v2016_v22 }
 0x7e1   :  { %3686 = vtanh.f32 %v5218_v23  ;;  %v2021_v33 = vsel %vm2020_vm6, %v3683_v7, %v2017_v57 }
 0x7e2   :  { %v2026_v26 = vsel %vm2023_vm7, %v2025_v25, %v2021_v33 }
 0x7e7   :  { %v3687_v8 = vpop.eup %3686 }
 0x7e8   :  { %v5221_v44 = vmul.f32 %v3687_v8, %v2026_v26 }
 0x7ea   :  { %v2037_v60 = vrot.slane %v5221_v44, 2 }
 0x7ec   :  { %3469 = vmatmul.msk.f32.vlgmr.msrb.gmra.mxu0 %vm167_vm14, %v2037_v60  ;;  %3471 = vmatmul.msk.f32.vlgmr.msrb.gmra.mxu1 %vm167_vm14, %v2037_v60 }
 0x7ed   :  { %3473 = vmatmul.msk.f32.vlgmr.msrb.gmra.mxu2 %vm167_vm14, %v2037_v60  ;;  %3474 = vmatmul.msk.f32.vlgmr.msrb.gmra.mxu3 %vm167_vm14, %v2037_v60 }
 0x7ee   :  { %2380 = vmatpush.msrb.mxu0 %v4823_v13  ;;  %2420 = vmatpush.msrb.mxu1 %v4828_v30 }
 0x7ef   :  { %2460 = vmatpush.msrb.mxu2 %v4845_v36  ;;  %2482 = vmatpush.msrb.mxu3 %v4850_v37 }
 0x7f0   :  { %2381 = vmatpush.msrb.mxu0 %v4833_v31  ;;  %2421 = vmatpush.msrb.mxu1 %v4840_v34 }
 0x7f1   :  { %2461 = vmatpush.msrb.mxu2 %v4869_v15  ;;  %2483 = vmatpush.msrb.mxu3 %v4879_v55 }
 0x7f2   :  { %2382 = vmatpush.msrb.mxu0 %v4859_v1  ;;  %2422 = vmatpush.msrb.mxu1 %v4864_v3 }
 0x7f3   :  { %2462 = vmatpush.msrb.mxu2 %v4897_v38  ;;  %2484 = vmatpush.msrb.mxu3 %v4902_v53 }
 0x7f4   :  { %2383 = vmatpush.msrb.mxu0 %v4884_v43  ;;  %2423 = vmatpush.msrb.mxu1 %v4892_v9 }
 0x7f5   :  { %2463 = vmatpush.msrb.mxu2 %v4909_v58  ;;  %2485 = vmatpush.msrb.mxu3 %v4914_v17 }
 0x7f6   :  { %2384 = vmatpush.msrb.mxu0 %v4921_v42  ;;  %2424 = vmatpush.msrb.mxu1 %v4926_v50 }
 0x7f7   :  { %2464 = vmatpush.msrb.mxu2 %v4933_v4  ;;  %2486 = vmatpush.msrb.mxu3 %v4938_v52 }
 0x7f8   :  { %2385 = vmatpush.msrb.mxu0 %v4947_v46  ;;  %2425 = vmatpush.msrb.mxu1 %v4952_v45 }
 0x7f9   :  { %2465 = vmatpush.msrb.mxu2 %v4960_v54  ;;  %2487 = vmatpush.msrb.mxu3 %v4965_v6 }
 0x7fa   :  { %2386 = vmatpush.msrb.mxu0 %v4974_v10  ;;  %2426 = vmatpush.msrb.mxu1 %v4979_v48 }
 0x7fb   :  { %2466 = vmatpush.msrb.mxu2 %v4992_v0  ;;  %2488 = vmatpush.msrb.mxu3 %v4997_v18 }
 0x7fc   :  { %2387 = vmatpush.msrb.mxu0 %v5007_v20  ;;  %2427 = vmatpush.msrb.mxu1 %v5012_v21 }
 0x7fd   :  { %2467 = vmatpush.msrb.mxu2 %v5021_v40  ;;  %2489 = vmatpush.msrb.mxu3 %v5026_v16 }
 0x869   :  { %v2057_v13 = vpop.f32.mrf.mxu0  ;;  %v2100_v30 = vpop.f32.mrf.mxu1 }
 0x86a   :  { %v2061_v31 = vrot.slane %v2057_v13, 4  ;;  %v2104_v34 = vrot.slane %v2100_v30, 4 }
 0x86c   :  { %v2063_v36 = vadd.f32 %v2061_v31, %v5153_v24  ;;  %v2106_v37 = vadd.f32 %v2104_v34, %v5156_v32 }
 0x86e   :  { %v3470_v1 = vmul.f32 -1.442695, %v2063_v36  ;;  %v3472_v3 = vmul.f32 -1.442695, %v2106_v37 }
 0x870   :  { %3688 = vpow2.f32 %v3470_v1  ;;  %v2168_v61 = vpop.f32.mrf.mxu3  ;;  %v2143_v28 = vpop.f32.mrf.mxu2  ;;  %v2195_v1 = vrot.slane %v5218_v23, 6 }
 0x871   :  { %3690 = vpow2.f32 %v3472_v3  ;;  %v2172_v29 = vrot.slane %v2168_v61, 4  ;;  %v2147_v35 = vrot.slane %v2143_v28, 4 }
 0x873   :  { %v2174_v7 = vadd.f32 %v2172_v29, %v5161_v49  ;;  %v2149_v47 = vadd.f32 %v2147_v35, %v5165_v11 }
 0x875   :  { %v3475_v27 = vmul.f32 -1.442695, %v2174_v7 }
 0x876   :  { %v3689_v39 = vpop.eup %3688 }
 0x877   :  { %v3691_v14 = vpop.eup %3690  ;;  %v2067_v5 = vadd.f32 1.0, %v3689_v39  ;;  %3692 = vpow2.f32 %v3475_v27 }
 0x878   :  { %v2110_v12 = vadd.f32 1.0, %v3691_v14 }
 0x879   :  { %3694 = vrcp.f32 %v2067_v5  ;;  %v2079_v33 = vand.u32 2147483648, %v2067_v5  ;;  %v2077_v26 = vand.u32 2147483647, %v2067_v5  ;;  %vm2073_vm10 = vweird.f32 %v2067_v5 }
 0x87a   :  { %3696 = vrcp.f32 %v2110_v12  ;;  %v2122_v25 = vand.u32 2147483648, %v2110_v12  ;;  %v2120_v13 = vand.u32 2147483647, %v2110_v12  ;;  %vm2116_vm11 = vweird.f32 %v2110_v12 }
 0x87b   :  { %v2080_v34 = vor.u32 1.1754944e-38, %v2079_v33  ;;  %vm2078_vm15 = vcmp.eq.f32.partialorder %v2077_v26, 8.507059e+37  ;;  %v5284_v33 = vld [vmem:[%s5724_s6 + $0x178] sm:$0xff]  ;;  %v5302_v26 = vld [vmem:[%s5724_s6 + $0x130] sm:$0xff] }
 0x87c   :  { %v2123_v3 = vor.u32 1.1754944e-38, %v2122_v25  ;;  %vm2121_vm0 = vcmp.eq.f32.partialorder %v2120_v13, 8.507059e+37  ;;  %v5290_v25 = vld [vmem:[%s5724_s6 + $0x1b8] sm:$0xff]  ;;  %v5316_v13 = vld [vmem:[%s5724_s6 + $0x128] sm:$0xff] }
 0x87d   :  { %v3693_v2 = vpop.eup %3692 }
 0x87e   :  { %v2178_v51 = vadd.f32 1.0, %v3693_v2 }
 0x87f   :  { %v3695_v56 = vpop.eup %3694 }
 0x880   :  { %v3697_v41 = vpop.eup %3696  ;;  %v2069_v22 = vmul.f32 %v3695_v56, %v2067_v5  ;;  %3698 = vrcp.f32 %v2178_v51  ;;  %vm2074_vm8 = vweird.f32 %v3695_v56  ;;  %v2190_v23 = vand.u32 2147483648, %v2178_v51 }
 0x881   :  { %v2112_v57 = vmul.f32 %v3697_v41, %v2110_v12  ;;  %3700 = vtanh.f32 %v2149_v47  ;;  %vm2117_vm9 = vweird.f32 %v3697_v41  ;;  %vm2075_vm12 = vmor %vm2073_vm10, %vm2074_vm8  ;;  %vm2184_vm6 = vweird.f32 %v2178_v51 }
 0x882   :  { %v2070_v62 = vsub.f32 1.0, %v2069_v22  ;;  %vm2118_vm13 = vmor %vm2116_vm11, %vm2117_vm9  ;;  %v2188_v47 = vand.u32 2147483647, %v2178_v51  ;;  %v2191_v22 = vor.u32 1.1754944e-38, %v2190_v23 }
 0x883   :  { %v2113_v63 = vsub.f32 1.0, %v2112_v57 }
 0x884   :  { %v2071_v8 = vmul.f32 %v3695_v56, %v2070_v62  ;;  %vm2189_vm8 = vcmp.eq.f32.partialorder %v2188_v47, 8.507059e+37 }
 0x885   :  { %v2114_v60 = vmul.f32 %v3697_v41, %v2113_v63 }
 0x886   :  { %v3699_v30 = vpop.eup %3698  ;;  %v2072_v31 = vadd.f32 %v3695_v56, %v2071_v8  ;;  %v5296_v8 = vld [vmem:[%s5724_s6 + $0x1f8] sm:$0xff] }
 0x887   :  { %v2115_v36 = vadd.f32 %v3697_v41, %v2114_v60  ;;  %v2180_v37 = vmul.f32 %v3699_v30, %v2178_v51  ;;  %v3701_v29 = vpop.eup %3700  ;;  %vm2185_vm2 = vweird.f32 %v3699_v30  ;;  %v5278_v51 = vld [vmem:[%s5724_s6 + $0x138] sm:$0xff]  ;;  %v5308_v60 = vld [vmem:[%s5724_s6 + $0x170] sm:$0xff] }
 0x888   :  { %v2076_v61 = vsel %vm2075_vm12, %v3695_v56, %v2072_v31  ;;  %vm2186_vm7 = vmor %vm2184_vm6, %vm2185_vm2 }
 0x889   :  { %v2081_v7 = vsel %vm2078_vm15, %v2080_v34, %v2076_v61  ;;  %v2119_v27 = vsel %vm2118_vm13, %v3697_v41, %v2115_v36  ;;  %v2181_v39 = vsub.f32 1.0, %v2180_v37 }
 0x88a   :  { %v2124_v14 = vsel %vm2121_vm0, %v2123_v3, %v2119_v27  ;;  %v2198_v28 = vmul.f32 %v3701_v29, %v2081_v7 }
 0x88b   :  { %v2197_v35 = vmul.f32 %v2195_v1, %v2124_v14  ;;  %v2182_v5 = vmul.f32 %v3699_v30, %v2181_v39 }
 0x88d   :  { %v5265_v12 = vadd.f32 %v2198_v28, %v2197_v35  ;;  %v2183_v2 = vadd.f32 %v3699_v30, %v2182_v5 }
 0x88f   :  { %3702 = vtanh.f32 %v5265_v12  ;;  %v2187_v56 = vsel %vm2186_vm7, %v3699_v30, %v2183_v2  ;;  %v5322_v30 = vld [vmem:[%s5724_s6 + $0x168] sm:$0xff]  ;;  %v2361_v39 = vrot.slane %v5265_v12, 6 }
 0x890   :  { %v2192_v57 = vsel %vm2189_vm8, %v2191_v22, %v2187_v56 }
 0x895   :  { %v3703_v41 = vpop.eup %3702 }
 0x896   :  { %v5268_v62 = vmul.f32 %v3703_v41, %v2192_v57 }
 0x898   :  { %v2203_v63 = vrot.slane %v5268_v62, 4 }
 0x89a   :  { %3476 = vmatmul.msk.f32.vlgmr.msra.gmra.mxu0 %vm167_vm14, %v2203_v63  ;;  %3478 = vmatmul.msk.f32.vlgmr.msra.gmra.mxu1 %vm167_vm14, %v2203_v63 }
 0x89b   :  { %3480 = vmatmul.msk.f32.vlgmr.msra.gmra.mxu2 %vm167_vm14, %v2203_v63  ;;  %3481 = vmatmul.msk.f32.vlgmr.msra.gmra.mxu3 %vm167_vm14, %v2203_v63 }
 0x89c   :  { %2533 = vmatpush.msra.mxu0 %v5278_v51  ;;  %2576 = vmatpush.msra.mxu1 %v5284_v33 }
 0x89d   :  { %2619 = vmatpush.msra.mxu2 %v5290_v25  ;;  %2644 = vmatpush.msra.mxu3 %v5296_v8 }
 0x89e   :  { %2534 = vmatpush.msra.mxu0 %v5302_v26  ;;  %2577 = vmatpush.msra.mxu1 %v5308_v60 }
 0x89f   :  { %2620 = vmatpush.msra.mxu2 %v4869_v15  ;;  %2645 = vmatpush.msra.mxu3 %v4879_v55 }
 0x8a0   :  { %2535 = vmatpush.msra.mxu0 %v5316_v13  ;;  %2578 = vmatpush.msra.mxu1 %v5322_v30 }
 0x8a1   :  { %2621 = vmatpush.msra.mxu2 %v4897_v38  ;;  %2646 = vmatpush.msra.mxu3 %v4902_v53 }
 0x8a2   :  { %2536 = vmatpush.msra.mxu0 %v4884_v43  ;;  %2579 = vmatpush.msra.mxu1 %v4892_v9 }
 0x8a3   :  { %2622 = vmatpush.msra.mxu2 %v4909_v58  ;;  %2647 = vmatpush.msra.mxu3 %v4914_v17 }
 0x8a4   :  { %2537 = vmatpush.msra.mxu0 %v4921_v42  ;;  %2580 = vmatpush.msra.mxu1 %v4926_v50 }
 0x8a5   :  { %2623 = vmatpush.msra.mxu2 %v4933_v4  ;;  %2648 = vmatpush.msra.mxu3 %v4938_v52 }
 0x8a6   :  { %2538 = vmatpush.msra.mxu0 %v4947_v46  ;;  %2581 = vmatpush.msra.mxu1 %v4952_v45 }
 0x8a7   :  { %2624 = vmatpush.msra.mxu2 %v4960_v54  ;;  %2649 = vmatpush.msra.mxu3 %v4965_v6 }
 0x8a8   :  { %2539 = vmatpush.msra.mxu0 %v4974_v10  ;;  %2582 = vmatpush.msra.mxu1 %v4979_v48 }
 0x8a9   :  { %2625 = vmatpush.msra.mxu2 %v4992_v0  ;;  %2650 = vmatpush.msra.mxu3 %v4997_v18 }
 0x8aa   :  { %2540 = vmatpush.msra.mxu0 %v5007_v20  ;;  %2583 = vmatpush.msra.mxu1 %v5012_v21 }
 0x8ab   :  { %2626 = vmatpush.msra.mxu2 %v5021_v40  ;;  %2651 = vmatpush.msra.mxu3 %v5026_v16 }
 0x917   :  { %v2223_v15 = vpop.f32.mrf.mxu0  ;;  %v2266_v55 = vpop.f32.mrf.mxu1 }
 0x918   :  { %v2227_v43 = vrot.slane %v2223_v15, 2  ;;  %v2270_v9 = vrot.slane %v2266_v55, 2 }
 0x91a   :  { %v2229_v38 = vadd.f32 %v2227_v43, %v5153_v24  ;;  %v2272_v53 = vadd.f32 %v2270_v9, %v5156_v32 }
 0x91c   :  { %v3477_v58 = vmul.f32 -1.442695, %v2229_v38  ;;  %v3479_v17 = vmul.f32 -1.442695, %v2272_v53 }
 0x91e   :  { %3704 = vpow2.f32 %v3477_v58  ;;  %v2334_v42 = vpop.f32.mrf.mxu3  ;;  %v2309_v10 = vpop.f32.mrf.mxu2 }
 0x91f   :  { %3706 = vpow2.f32 %v3479_v17  ;;  %v2338_v50 = vrot.slane %v2334_v42, 2  ;;  %v2313_v48 = vrot.slane %v2309_v10, 2  ;;  %v5377_v17 = vld [vmem:[%s5724_s6 + $0x1b0] sm:$0xff]  ;;  %v5433_v10 = vld [vmem:[%s5724_s6 + $0x158] sm:$0xff] }
 0x920   :  { %v5383_v42 = vld [vmem:[%s5724_s6 + $0x1f0] sm:$0xff] }
 0x921   :  { %v2340_v4 = vadd.f32 %v2338_v50, %v5161_v49  ;;  %v2315_v21 = vadd.f32 %v2313_v48, %v5165_v11  ;;  %v5391_v50 = vld [vmem:[%s5724_s6 + $0x1a8] sm:$0xff]  ;;  %v5439_v48 = vld [vmem:[%s5724_s6 + $0x198] sm:$0xff] }
 0x923   :  { %v3482_v52 = vmul.f32 -1.442695, %v2340_v4  ;;  %v5397_v4 = vld [vmem:[%s5724_s6 + $0x1e8] sm:$0xff] }
 0x924   :  { %v3705_v46 = vpop.eup %3704 }
 0x925   :  { %v3707_v45 = vpop.eup %3706  ;;  %v2233_v54 = vadd.f32 1.0, %v3705_v46  ;;  %3708 = vpow2.f32 %v3482_v52  ;;  %v5403_v52 = vld [vmem:[%s5724_s6 + $0x120] sm:$0xff] }
 0x926   :  { %v2276_v6 = vadd.f32 1.0, %v3707_v45  ;;  %v5409_v46 = vld [vmem:[%s5724_s6 + $0x160] sm:$0xff] }
 0x927   :  { %3710 = vrcp.f32 %v2233_v54  ;;  %v2245_v31 = vand.u32 2147483648, %v2233_v54  ;;  %v2243_v37 = vand.u32 2147483647, %v2233_v54  ;;  %vm2239_vm11 = vweird.f32 %v2233_v54  ;;  %v5415_v45 = vld [vmem:[%s5724_s6 + $0x1a0] sm:$0xff] }
 0x928   :  { %3712 = vrcp.f32 %v2276_v6  ;;  %v2288_v34 = vand.u32 2147483648, %v2276_v6  ;;  %v2286_v3 = vand.u32 2147483647, %v2276_v6  ;;  %vm2282_vm12 = vweird.f32 %v2276_v6 }
 0x929   :  { %v2246_v11 = vor.u32 1.1754944e-38, %v2245_v31  ;;  %vm2244_vm0 = vcmp.eq.f32.partialorder %v2243_v37, 8.507059e+37  ;;  %v5499_v31 = vld [vmem:[%s5724_s6 + $0x100] sm:$0xff] }
 0x92a   :  { %v2289_v14 = vor.u32 1.1754944e-38, %v2288_v34  ;;  %vm2287_vm2 = vcmp.eq.f32.partialorder %v2286_v3, 8.507059e+37  ;;  %v5505_v34 = vld [vmem:[%s5724_s6 + $0x140] sm:$0xff]  ;;  %v1655_v3 = vpop.permute.xlu1 %1654 }
 0x92b   :  { %v3709_v0 = vpop.eup %3708  ;;  %v5517_v37 = vld [vmem:[%s5724_s6 + $0x1c0] sm:$0xff] }
 0x92c   :  { %v2344_v18 = vadd.f32 1.0, %v3709_v0  ;;  %v5445_v0 = vld [vmem:[%s5724_s6 + $0x1d8] sm:$0xff] }
 0x92d   :  { %v3711_v20 = vpop.eup %3710 }
 0x92e   :  { %v3713_v40 = vpop.eup %3712  ;;  %v2235_v16 = vmul.f32 %v3711_v20, %v2233_v54  ;;  %3714 = vrcp.f32 %v2344_v18  ;;  %vm2240_vm9 = vweird.f32 %v3711_v20  ;;  %v2356_v12 = vand.u32 2147483648, %v2344_v18  ;;  %v5421_v54 = vld [vmem:[%s5724_s6 + $0x1e0] sm:$0xff] }
 0x92f   :  { %v2278_v24 = vmul.f32 %v3713_v40, %v2276_v6  ;;  %3716 = vtanh.f32 %v2315_v21  ;;  %vm2283_vm10 = vweird.f32 %v3713_v40  ;;  %vm2241_vm13 = vmor %vm2239_vm11, %vm2240_vm9  ;;  %vm2350_vm7 = vweird.f32 %v2344_v18  ;;  %v5427_v6 = vld [vmem:[%s5724_s6 + $0x118] sm:$0xff]  ;;  %v5463_v21 = vld [vmem:[%s5724_s6 + $0x190] sm:$0xff] }
 0x930   :  { %v2236_v32 = vsub.f32 1.0, %v2235_v16  ;;  %vm2284_vm15 = vmor %vm2282_vm12, %vm2283_vm10  ;;  %v2354_v15 = vand.u32 2147483647, %v2344_v18  ;;  %v2357_v43 = vor.u32 1.1754944e-38, %v2356_v12  ;;  %v5475_v16 = vld [vmem:[%s5724_s6 + $0x108] sm:$0xff] }
 0x931   :  { %v2279_v49 = vsub.f32 1.0, %v2278_v24  ;;  %v5481_v24 = vld [vmem:[%s5724_s6 + $0x148] sm:$0xff] }
 0x932   :  { %v2237_v36 = vmul.f32 %v3711_v20, %v2236_v32  ;;  %vm2355_vm9 = vcmp.eq.f32.partialorder %v2354_v15, 8.507059e+37  ;;  %v5487_v32 = vld [vmem:[%s5724_s6 + $0x188] sm:$0xff] }
 0x933   :  { %v2280_v1 = vmul.f32 %v3713_v40, %v2279_v49  ;;  %v5493_v49 = vld [vmem:[%s5724_s6 + $0x1c8] sm:$0xff] }
 0x934   :  { %v3715_v61 = vpop.eup %3714  ;;  %v2238_v29 = vadd.f32 %v3711_v20, %v2237_v36  ;;  %v5511_v36 = vld [vmem:[%s5724_s6 + $0x180] sm:$0xff] }
 0x935   :  { %v2281_v7 = vadd.f32 %v3713_v40, %v2280_v1  ;;  %v2346_v27 = vmul.f32 %v3715_v61, %v2344_v18  ;;  %v3717_v35 = vpop.eup %3716  ;;  %vm2351_vm6 = vweird.f32 %v3715_v61  ;;  %v5451_v18 = vld [vmem:[%s5724_s6 + $0x110] sm:$0xff]  ;;  %v1645_v1 = vpop.permute.xlu0 %1644 }
 0x936   :  { %v2242_v28 = vsel %vm2241_vm13, %v3711_v20, %v2238_v29  ;;  %vm2352_vm8 = vmor %vm2350_vm7, %vm2351_vm6  ;;  %v5457_v20 = vld [vmem:[%s5724_s6 + $0x150] sm:$0xff]  ;;  %v5526_v29 = vsel %vm118_vm1, %v1655_v3, %v5138_v59 }
 0x937   :  { %v2247_v5 = vsel %vm2244_vm0, %v2246_v11, %v2242_v28  ;;  %v2285_v2 = vsel %vm2284_vm15, %v3713_v40, %v2281_v7  ;;  %v2347_v23 = vsub.f32 1.0, %v2346_v27  ;;  %v5469_v40 = vld [vmem:[%s5724_s6 + $0x1d0] sm:$0xff] }
 0x938   :  { %v2290_v47 = vsel %vm2287_vm2, %v2289_v14, %v2285_v2  ;;  %v2364_v56 = vmul.f32 %v3717_v35, %v2247_v5  ;;  %v1677_v5 = vpop.permute.xlu2 %1676 }
 0x939   :  { %v2363_v22 = vmul.f32 %v2361_v39, %v2290_v47  ;;  %v2348_v41 = vmul.f32 %v3715_v61, %v2347_v23 }
 0x93b   :  { %v5352_v57 = vadd.f32 %v2364_v56, %v2363_v22  ;;  %v2349_v63 = vadd.f32 %v3715_v61, %v2348_v41 }
 0x93d   :  { %3718 = vtanh.f32 %v5352_v57  ;;  %v2353_v55 = vsel %vm2352_vm8, %v3715_v61, %v2349_v63  ;;  %v5522_v61 = vsel %vm118_vm1, %v5136_v19, %v1645_v1  ;;  %v1683_v35 = vpop.permute.xlu0 %1682  ;;  %v1663_v63 = vpop.permute.xlu1 %1662 }
 0x93e   :  { %v2358_v38 = vsel %vm2355_vm9, %v2357_v43, %v2353_v55  ;;  %v5531_v2 = vsel %vm118_vm1, %v1677_v5, %v1683_v35 }
 0x940   :  { %v1669_v55 = vpop.permute.xlu2 %1668 }
 0x941   :  { %v5535_v43 = vsel %vm118_vm1, %v1663_v63, %v1669_v55 }
 0x943   :  { %v3719_v9 = vpop.eup %3718 }
 0x944   :  { %v5355_v53 = vmul.f32 %v3719_v9, %v2358_v38 }
 0x946   :  { %5756 = vst [vmem:[#allocation8_spill] sm:$0xff] %v5355_v53  ;;  %v5358_v58 = vrot.slane %v5355_v53, 6 }
 0x948   :  { %5757 = vst [vmem:[#allocation7_spill] sm:$0xff] %v5358_v58  ;;  %3483 = vmatmul.msk.f32.vlgmr.msrb.gmra.mxu0 %vm167_vm14, %v5358_v58  ;;  %3485 = vmatmul.msk.f32.vlgmr.msrb.gmra.mxu1 %vm167_vm14, %v5358_v58 }
 0x949   :  { %3487 = vmatmul.msk.f32.vlgmr.msrb.gmra.mxu2 %vm167_vm14, %v5358_v58  ;;  %3488 = vmatmul.msk.f32.vlgmr.msrb.gmra.mxu3 %vm167_vm14, %v5358_v58 }
 0x94a   :  { %2699 = vmatpush.msrb.mxu0 %v5278_v51  ;;  %2742 = vmatpush.msrb.mxu1 %v5284_v33 }
 0x94b   :  { %2785 = vmatpush.msrb.mxu2 %v5290_v25  ;;  %2810 = vmatpush.msrb.mxu3 %v5296_v8 }
 0x94c   :  { %2700 = vmatpush.msrb.mxu0 %v5302_v26  ;;  %2743 = vmatpush.msrb.mxu1 %v5308_v60 }
 0x94d   :  { %2786 = vmatpush.msrb.mxu2 %v5377_v17  ;;  %2811 = vmatpush.msrb.mxu3 %v5383_v42 }
 0x94e   :  { %2701 = vmatpush.msrb.mxu0 %v5316_v13  ;;  %2744 = vmatpush.msrb.mxu1 %v5322_v30 }
 0x94f   :  { %2787 = vmatpush.msrb.mxu2 %v5391_v50  ;;  %2812 = vmatpush.msrb.mxu3 %v5397_v4 }
 0x950   :  { %2702 = vmatpush.msrb.mxu0 %v5403_v52  ;;  %2745 = vmatpush.msrb.mxu1 %v5409_v46 }
 0x951   :  { %2788 = vmatpush.msrb.mxu2 %v5415_v45  ;;  %2813 = vmatpush.msrb.mxu3 %v5421_v54 }
 0x952   :  { %2703 = vmatpush.msrb.mxu0 %v5427_v6  ;;  %2746 = vmatpush.msrb.mxu1 %v5433_v10 }
 0x953   :  { %2789 = vmatpush.msrb.mxu2 %v5439_v48  ;;  %2814 = vmatpush.msrb.mxu3 %v5445_v0 }
 0x954   :  { %2704 = vmatpush.msrb.mxu0 %v5451_v18  ;;  %2747 = vmatpush.msrb.mxu1 %v5457_v20 }
 0x955   :  { %2790 = vmatpush.msrb.mxu2 %v5463_v21  ;;  %2815 = vmatpush.msrb.mxu3 %v5469_v40 }
 0x956   :  { %2705 = vmatpush.msrb.mxu0 %v5475_v16  ;;  %2748 = vmatpush.msrb.mxu1 %v5481_v24 }
 0x957   :  { %2791 = vmatpush.msrb.mxu2 %v5487_v32  ;;  %2816 = vmatpush.msrb.mxu3 %v5493_v49 }
 0x958   :  { %2706 = vmatpush.msrb.mxu0 %v5499_v31  ;;  %2749 = vmatpush.msrb.mxu1 %v5505_v34 }
 0x959   :  { %2792 = vmatpush.msrb.mxu2 %v5511_v36  ;;  %2817 = vmatpush.msrb.mxu3 %v5517_v37 }
 0x9c5   :  { %v2389_v11 = vpop.f32.mrf.mxu0  ;;  %v2429_v7 = vpop.f32.mrf.mxu1 }
 0x9c6   :  { %v2392_v27 = vadd.f32 %v2389_v11, %v5522_v61  ;;  %v2432_v39 = vadd.f32 %v2429_v7, %v5526_v29 }
 0x9c8   :  { %v3484_v14 = vmul.f32 -1.442695, %v2392_v27  ;;  %v3486_v28 = vmul.f32 -1.442695, %v2432_v39 }
 0x9ca   :  { %3720 = vpow2.f32 %v3484_v14 }
 0x9cb   :  { %3722 = vpow2.f32 %v3486_v28 }
 0x9cc   :  { %v2491_v19 = vpop.f32.mrf.mxu3  ;;  %v2469_v12 = vpop.f32.mrf.mxu2 }
 0x9cd   :  { %v2494_v23 = vadd.f32 %v2491_v19, %v5531_v2  ;;  %v2472_v1 = vadd.f32 %v2469_v12, %v5535_v43 }
 0x9cf   :  { %v3489_v59 = vmul.f32 -1.442695, %v2494_v23 }
 0x9d0   :  { %v3721_v47 = vpop.eup %3720 }
 0x9d1   :  { %v3723_v56 = vpop.eup %3722  ;;  %v2396_v22 = vadd.f32 1.0, %v3721_v47  ;;  %3724 = vpow2.f32 %v3489_v59 }
 0x9d2   :  { %v2436_v41 = vadd.f32 1.0, %v3723_v56 }
 0x9d3   :  { %3726 = vrcp.f32 %v2396_v22  ;;  %v2408_v14 = vand.u32 2147483648, %v2396_v22  ;;  %v2406_v5 = vand.u32 2147483647, %v2396_v22  ;;  %vm2402_vm12 = vweird.f32 %v2396_v22 }
 0x9d4   :  { %3728 = vrcp.f32 %v2436_v41  ;;  %v2448_v28 = vand.u32 2147483648, %v2436_v41  ;;  %v2446_v23 = vand.u32 2147483647, %v2436_v41  ;;  %vm2442_vm13 = vweird.f32 %v2436_v41 }
 0x9d5   :  { %v2409_v56 = vor.u32 1.1754944e-38, %v2408_v14  ;;  %vm2407_vm2 = vcmp.eq.f32.partialorder %v2406_v5, 8.507059e+37 }
 0x9d6   :  { %vm2447_vm6 = vcmp.eq.f32.partialorder %v2446_v23, 8.507059e+37 }
 0x9d7   :  { %v3725_v15 = vpop.eup %3724 }
 0x9d8   :  { %v2498_v9 = vadd.f32 1.0, %v3725_v15  ;;  %v2449_v15 = vor.u32 1.1754944e-38, %v2448_v28 }
 0x9d9   :  { %v3727_v38 = vpop.eup %3726 }
 0x9da   :  { %v3729_v3 = vpop.eup %3728  ;;  %v2398_v11 = vmul.f32 %v3727_v38, %v2396_v22  ;;  %3730 = vrcp.f32 %v2498_v9  ;;  %vm2403_vm10 = vweird.f32 %v3727_v38  ;;  %v2510_v28 = vand.u32 2147483648, %v2498_v9 }
 0x9db   :  { %v2438_v7 = vmul.f32 %v3729_v3, %v2436_v41  ;;  %3732 = vtanh.f32 %v2472_v1  ;;  %vm2443_vm11 = vweird.f32 %v3729_v3  ;;  %vm2404_vm15 = vmor %vm2402_vm12, %vm2403_vm10  ;;  %v2515_v1 = vrot.slane %v5352_v57, 6 }
 0x9dc   :  { %v2399_v27 = vsub.f32 1.0, %v2398_v11  ;;  %vm2444_vm0 = vmor %vm2442_vm13, %vm2443_vm11  ;;  %vm2504_vm8 = vweird.f32 %v2498_v9  ;;  %v2511_v5 = vor.u32 1.1754944e-38, %v2510_v28 }
 0x9dd   :  { %v2439_v39 = vsub.f32 1.0, %v2438_v7 }
 0x9de   :  { %v2400_v35 = vmul.f32 %v3727_v38, %v2399_v27 }
 0x9df   :  { %v2440_v19 = vmul.f32 %v3729_v3, %v2439_v39 }
 0x9e0   :  { %v3731_v59 = vpop.eup %3730  ;;  %v2401_v47 = vadd.f32 %v3727_v38, %v2400_v35 }
 0x9e1   :  { %v2441_v63 = vadd.f32 %v3729_v3, %v2440_v19  ;;  %v2500_v12 = vmul.f32 %v3731_v59, %v2498_v9  ;;  %v3733_v11 = vpop.eup %3732  ;;  %vm2505_vm7 = vweird.f32 %v3731_v59 }
 0x9e2   :  { %v2405_v55 = vsel %vm2404_vm15, %v3727_v38, %v2401_v47  ;;  %v2508_v38 = vand.u32 2147483647, %v2498_v9  ;;  %vm2506_vm9 = vmor %vm2504_vm8, %vm2505_vm7 }
 0x9e3   :  { %v2410_v7 = vsel %vm2407_vm2, %v2409_v56, %v2405_v55  ;;  %v2445_v27 = vsel %vm2444_vm0, %v3729_v3, %v2441_v63  ;;  %v2501_v39 = vsub.f32 1.0, %v2500_v12 }
 0x9e4   :  { %v2450_v58 = vsel %vm2447_vm6, %v2449_v15, %v2445_v27  ;;  %v2518_v53 = vmul.f32 %v3733_v11, %v2410_v7  ;;  %vm2509_vm10 = vcmp.eq.f32.partialorder %v2508_v38, 8.507059e+37 }
 0x9e5   :  { %v2517_v35 = vmul.f32 %v2515_v1, %v2450_v58  ;;  %v2502_v22 = vmul.f32 %v3731_v59, %v2501_v39 }
 0x9e7   :  { %v5539_v41 = vadd.f32 %v2518_v53, %v2517_v35  ;;  %v2503_v14 = vadd.f32 %v3731_v59, %v2502_v22 }
 0x9e9   :  { %3734 = vtanh.f32 %v5539_v41  ;;  %v2507_v57 = vsel %vm2506_vm9, %v3731_v59, %v2503_v14  ;;  %v2680_v63 = vrot.slane %v5539_v41, 6 }
 0x9ea   :  { %v2512_v19 = vsel %vm2509_vm10, %v2511_v5, %v2507_v57 }
 0x9ef   :  { %v3735_v3 = vpop.eup %3734 }
 0x9f0   :  { %v5542_v23 = vmul.f32 %v3735_v3, %v2512_v19 }
 0x9f2   :  { %3490 = vmatmul.msk.f32.vlgmr.msra.gmra.mxu0 %vm167_vm14, %v5542_v23  ;;  %3492 = vmatmul.msk.f32.vlgmr.msra.gmra.mxu1 %vm167_vm14, %v5542_v23 }
 0x9f3   :  { %3494 = vmatmul.msk.f32.vlgmr.msra.gmra.mxu2 %vm167_vm14, %v5542_v23  ;;  %3495 = vmatmul.msk.f32.vlgmr.msra.gmra.mxu3 %vm167_vm14, %v5542_v23 }
 0x9f4   :  { %2865 = vmatpush.msra.mxu0 %v5278_v51  ;;  %2908 = vmatpush.msra.mxu1 %v5284_v33 }
 0x9f5   :  { %2951 = vmatpush.msra.mxu2 %v5290_v25  ;;  %2976 = vmatpush.msra.mxu3 %v5296_v8 }
 0x9f6   :  { %2866 = vmatpush.msra.mxu0 %v5302_v26  ;;  %2909 = vmatpush.msra.mxu1 %v5308_v60 }
 0x9f7   :  { %2952 = vmatpush.msra.mxu2 %v5377_v17  ;;  %2977 = vmatpush.msra.mxu3 %v5383_v42 }
 0x9f8   :  { %2867 = vmatpush.msra.mxu0 %v5316_v13  ;;  %2910 = vmatpush.msra.mxu1 %v5322_v30 }
 0x9f9   :  { %2953 = vmatpush.msra.mxu2 %v5391_v50  ;;  %2978 = vmatpush.msra.mxu3 %v5397_v4 }
 0x9fa   :  { %2868 = vmatpush.msra.mxu0 %v5403_v52  ;;  %2911 = vmatpush.msra.mxu1 %v5409_v46 }
 0x9fb   :  { %2954 = vmatpush.msra.mxu2 %v5415_v45  ;;  %2979 = vmatpush.msra.mxu3 %v5421_v54 }
 0x9fc   :  { %2869 = vmatpush.msra.mxu0 %v5427_v6  ;;  %2912 = vmatpush.msra.mxu1 %v5433_v10 }
 0x9fd   :  { %2955 = vmatpush.msra.mxu2 %v5439_v48  ;;  %2980 = vmatpush.msra.mxu3 %v5445_v0 }
 0x9fe   :  { %2870 = vmatpush.msra.mxu0 %v5451_v18  ;;  %2913 = vmatpush.msra.mxu1 %v5457_v20 }
 0x9ff   :  { %2956 = vmatpush.msra.mxu2 %v5463_v21  ;;  %2981 = vmatpush.msra.mxu3 %v5469_v40 }
 0xa00   :  { %2871 = vmatpush.msra.mxu0 %v5475_v16  ;;  %2914 = vmatpush.msra.mxu1 %v5481_v24 }
 0xa01   :  { %2957 = vmatpush.msra.mxu2 %v5487_v32  ;;  %2982 = vmatpush.msra.mxu3 %v5493_v49 }
 0xa02   :  { %2872 = vmatpush.msra.mxu0 %v5499_v31  ;;  %2915 = vmatpush.msra.mxu1 %v5505_v34 }
 0xa03   :  { %2958 = vmatpush.msra.mxu2 %v5511_v36  ;;  %2983 = vmatpush.msra.mxu3 %v5517_v37 }
 0xa6f   :  { %v2542_v51 = vpop.f32.mrf.mxu0  ;;  %v2585_v33 = vpop.f32.mrf.mxu1 }
 0xa70   :  { %v2546_v25 = vrot.slane %v2542_v51, 6  ;;  %v2589_v8 = vrot.slane %v2585_v33, 6 }
 0xa72   :  { %v2548_v26 = vadd.f32 %v2546_v25, %v5522_v61  ;;  %v2591_v60 = vadd.f32 %v2589_v8, %v5526_v29 }
 0xa74   :  { %v3491_v13 = vmul.f32 -1.442695, %v2548_v26  ;;  %v3493_v30 = vmul.f32 -1.442695, %v2591_v60 }
 0xa76   :  { %3736 = vpow2.f32 %v3491_v13  ;;  %v2653_v53 = vpop.f32.mrf.mxu3  ;;  %v2628_v45 = vpop.f32.mrf.mxu2 }
 0xa77   :  { %3738 = vpow2.f32 %v3493_v30  ;;  %v2657_v58 = vrot.slane %v2653_v53, 6  ;;  %v2632_v54 = vrot.slane %v2628_v45, 6 }
 0xa79   :  { %v2659_v17 = vadd.f32 %v2657_v58, %v5531_v2  ;;  %v2634_v0 = vadd.f32 %v2632_v54, %v5535_v43 }
 0xa7b   :  { %v3496_v42 = vmul.f32 -1.442695, %v2659_v17 }
 0xa7c   :  { %v3737_v50 = vpop.eup %3736 }
 0xa7d   :  { %v3739_v4 = vpop.eup %3738  ;;  %v2552_v52 = vadd.f32 1.0, %v3737_v50  ;;  %3740 = vpow2.f32 %v3496_v42 }
 0xa7e   :  { %v2595_v46 = vadd.f32 1.0, %v3739_v4 }
 0xa7f   :  { %3742 = vrcp.f32 %v2552_v52  ;;  %v2564_v24 = vand.u32 2147483648, %v2552_v52  ;;  %v2562_v31 = vand.u32 2147483647, %v2552_v52  ;;  %vm2558_vm13 = vweird.f32 %v2552_v52 }
 0xa80   :  { %3744 = vrcp.f32 %v2595_v46  ;;  %v2607_v32 = vand.u32 2147483648, %v2595_v46  ;;  %v2605_v36 = vand.u32 2147483647, %v2595_v46  ;;  %vm2601_vm15 = vweird.f32 %v2595_v46 }
 0xa81   :  { %v2565_v59 = vor.u32 1.1754944e-38, %v2564_v24  ;;  %vm2563_vm6 = vcmp.eq.f32.partialorder %v2562_v31, 8.507059e+37 }
 0xa82   :  { %v2608_v12 = vor.u32 1.1754944e-38, %v2607_v32  ;;  %vm2606_vm7 = vcmp.eq.f32.partialorder %v2605_v36, 8.507059e+37 }
 0xa83   :  { %v3741_v6 = vpop.eup %3740 }
 0xa84   :  { %v2663_v10 = vadd.f32 1.0, %v3741_v6 }
 0xa85   :  { %v3743_v48 = vpop.eup %3742 }
 0xa86   :  { %v3745_v18 = vpop.eup %3744  ;;  %v2554_v20 = vmul.f32 %v3743_v48, %v2552_v52  ;;  %3746 = vrcp.f32 %v2663_v10  ;;  %vm2559_vm11 = vweird.f32 %v3743_v48  ;;  %v2675_v41 = vand.u32 2147483648, %v2663_v10 }
 0xa87   :  { %v2597_v21 = vmul.f32 %v3745_v18, %v2595_v46  ;;  %3748 = vtanh.f32 %v2634_v0  ;;  %vm2602_vm12 = vweird.f32 %v3745_v18  ;;  %vm2560_vm0 = vmor %vm2558_vm13, %vm2559_vm11  ;;  %vm2669_vm9 = vweird.f32 %v2663_v10 }
 0xa88   :  { %v2555_v40 = vsub.f32 1.0, %v2554_v20  ;;  %vm2603_vm2 = vmor %vm2601_vm15, %vm2602_vm12  ;;  %v2673_v38 = vand.u32 2147483647, %v2663_v10  ;;  %v2676_v5 = vor.u32 1.1754944e-38, %v2675_v41 }
 0xa89   :  { %v2598_v16 = vsub.f32 1.0, %v2597_v21 }
 0xa8a   :  { %v2556_v49 = vmul.f32 %v3743_v48, %v2555_v40  ;;  %vm2674_vm11 = vcmp.eq.f32.partialorder %v2673_v38, 8.507059e+37 }
 0xa8b   :  { %v2599_v34 = vmul.f32 %v3745_v18, %v2598_v16 }
 0xa8c   :  { %v3747_v37 = vpop.eup %3746  ;;  %v2557_v9 = vadd.f32 %v3743_v48, %v2556_v49 }
 0xa8d   :  { %v2600_v47 = vadd.f32 %v3745_v18, %v2599_v34  ;;  %v2665_v56 = vmul.f32 %v3747_v37, %v2663_v10  ;;  %v3749_v55 = vpop.eup %3748  ;;  %vm2670_vm8 = vweird.f32 %v3747_v37 }
 0xa8e   :  { %v2561_v15 = vsel %vm2560_vm0, %v3743_v48, %v2557_v9  ;;  %vm2671_vm10 = vmor %vm2669_vm9, %vm2670_vm8 }
 0xa8f   :  { %v2566_v1 = vsel %vm2563_vm6, %v2565_v59, %v2561_v15  ;;  %v2604_v11 = vsel %vm2603_vm2, %v3745_v18, %v2600_v47  ;;  %v2666_v7 = vsub.f32 1.0, %v2665_v56 }
 0xa90   :  { %v2609_v27 = vsel %vm2606_vm7, %v2608_v12, %v2604_v11  ;;  %v2683_v39 = vmul.f32 %v3749_v55, %v2566_v1 }
 0xa91   :  { %v2682_v35 = vmul.f32 %v2680_v63, %v2609_v27  ;;  %v2667_v22 = vmul.f32 %v3747_v37, %v2666_v7 }
 0xa93   :  { %v5589_v14 = vadd.f32 %v2683_v39, %v2682_v35  ;;  %v2668_v28 = vadd.f32 %v3747_v37, %v2667_v22 }
 0xa95   :  { %3750 = vtanh.f32 %v5589_v14  ;;  %v2672_v57 = vsel %vm2671_vm10, %v3747_v37, %v2668_v28  ;;  %v2846_v15 = vrot.slane %v5589_v14, 6 }
 0xa96   :  { %v2677_v19 = vsel %vm2674_vm11, %v2676_v5, %v2672_v57 }
 0xa9b   :  { %v3751_v3 = vpop.eup %3750 }
 0xa9c   :  { %v5592_v51 = vmul.f32 %v3751_v3, %v2677_v19 }
 0xa9e   :  { %v2688_v33 = vrot.slane %v5592_v51, 2 }
 0xaa0   :  { %3497 = vmatmul.msk.f32.vlgmr.msrb.gmra.mxu0 %vm167_vm14, %v2688_v33  ;;  %3499 = vmatmul.msk.f32.vlgmr.msrb.gmra.mxu1 %vm167_vm14, %v2688_v33 }
 0xaa1   :  { %3501 = vmatmul.msk.f32.vlgmr.msrb.gmra.mxu2 %vm167_vm14, %v2688_v33  ;;  %3502 = vmatmul.msk.f32.vlgmr.msrb.gmra.mxu3 %vm167_vm14, %v2688_v33 }
 0xb1d   :  { %v2708_v25 = vpop.f32.mrf.mxu0  ;;  %v2751_v8 = vpop.f32.mrf.mxu1 }
 0xb1e   :  { %v2712_v26 = vrot.slane %v2708_v25, 4  ;;  %v2755_v60 = vrot.slane %v2751_v8, 4 }
 0xb20   :  { %v2714_v13 = vadd.f32 %v2712_v26, %v5522_v61  ;;  %v2757_v30 = vadd.f32 %v2755_v60, %v5526_v29 }
 0xb22   :  { %v3498_v53 = vmul.f32 -1.442695, %v2714_v13  ;;  %v3500_v58 = vmul.f32 -1.442695, %v2757_v30  ;;  %v3026_v30 = vrot.slane %v5592_v51, 6 }
 0xb24   :  { %3752 = vpow2.f32 %v3498_v53  ;;  %v2819_v17 = vpop.f32.mrf.mxu3  ;;  %v2794_v6 = vpop.f32.mrf.mxu2  ;;  %v3028_v53 = vsel %vm118_vm1, %v5268_v62, %v3026_v30 }
 0xb25   :  { %3754 = vpow2.f32 %v3500_v58  ;;  %v2823_v42 = vrot.slane %v2819_v17, 4  ;;  %v2798_v10 = vrot.slane %v2794_v6, 4 }
 0xb27   :  { %v2825_v50 = vadd.f32 %v2823_v42, %v5531_v2  ;;  %v2800_v20 = vadd.f32 %v2798_v10, %v5535_v43  ;;  %v3029_v42 = vrot.slane %v5542_v23, 2 }
 0xb29   :  { %v3503_v4 = vmul.f32 -1.442695, %v2825_v50  ;;  %v5758_v50 = vld [vmem:[#allocation8_spill] sm:$0xff] }
 0xb2a   :  { %v3753_v52 = vpop.eup %3752 }
 0xb2b   :  { %v3755_v46 = vpop.eup %3754  ;;  %v2718_v45 = vadd.f32 1.0, %v3753_v52  ;;  %3756 = vpow2.f32 %v3503_v4  ;;  %v3031_v4 = vsel %vm118_vm1, %v5758_v50, %v3029_v42  ;;  %v3886_v42 = vmov 0  }
 0xb2c   :  { %v2761_v54 = vadd.f32 1.0, %v3755_v46  ;;  %3520 = vset.pattern.permute.xlu2 %v3886_v42  ;;  %3522 = vset.pattern.permute.xlu1 %v3886_v42 }
 0xb2d   :  { %3758 = vrcp.f32 %v2718_v45  ;;  %v2730_v49 = vand.u32 2147483648, %v2718_v45  ;;  %v2728_v36 = vand.u32 2147483647, %v2718_v45  ;;  %vm2724_vm15 = vweird.f32 %v2718_v45  ;;  %3521 = vset.pattern.permute.xlu0 %v3886_v42 }
 0xb2e   :  { %3760 = vrcp.f32 %v2761_v54  ;;  %v2773_v31 = vand.u32 2147483648, %v2761_v54  ;;  %v2771_v9 = vand.u32 2147483647, %v2761_v54  ;;  %vm2767_vm0 = vweird.f32 %v2761_v54 }
 0xb2f   :  { %v2731_v56 = vor.u32 1.1754944e-38, %v2730_v49  ;;  %vm2729_vm7 = vcmp.eq.f32.partialorder %v2728_v36, 8.507059e+37 }
 0xb30   :  { %v2774_v55 = vor.u32 1.1754944e-38, %v2773_v31  ;;  %vm2772_vm8 = vcmp.eq.f32.partialorder %v2771_v9, 8.507059e+37 }
 0xb31   :  { %v3757_v48 = vpop.eup %3756 }
 0xb32   :  { %v2829_v0 = vadd.f32 1.0, %v3757_v48  ;;  %v3037_v48 = vrot.slane %v5221_v44, 6 }
 0xb33   :  { %v3759_v18 = vpop.eup %3758 }
 0xb34   :  { %v3761_v21 = vpop.eup %3760  ;;  %v2720_v40 = vmul.f32 %v3759_v18, %v2718_v45  ;;  %3762 = vrcp.f32 %v2829_v0  ;;  %vm2725_vm12 = vweird.f32 %v3759_v18  ;;  %v2841_v14 = vand.u32 2147483648, %v2829_v0 }
 0xb35   :  { %v2763_v16 = vmul.f32 %v3761_v21, %v2761_v54  ;;  %3764 = vtanh.f32 %v2800_v20  ;;  %vm2768_vm13 = vweird.f32 %v3761_v21  ;;  %vm2726_vm2 = vmor %vm2724_vm15, %vm2725_vm12  ;;  %vm2835_vm10 = vweird.f32 %v2829_v0 }
 0xb36   :  { %v2721_v24 = vsub.f32 1.0, %v2720_v40  ;;  %vm2769_vm6 = vmor %vm2767_vm0, %vm2768_vm13  ;;  %v2839_v5 = vand.u32 2147483647, %v2829_v0  ;;  %v2842_v19 = vor.u32 1.1754944e-38, %v2841_v14  ;;  %v3034_v45 = vrot.slane %v5268_v62, 2 }
 0xb37   :  { %v2764_v32 = vsub.f32 1.0, %v2763_v16 }
 0xb38   :  { %v2722_v34 = vmul.f32 %v3759_v18, %v2721_v24  ;;  %vm2840_vm12 = vcmp.eq.f32.partialorder %v2839_v5, 8.507059e+37  ;;  %v3036_v54 = vsel %vm118_vm1, %v5592_v51, %v3034_v45 }
 0xb39   :  { %v2765_v37 = vmul.f32 %v3761_v21, %v2764_v32 }
 0xb3a   :  { %v3763_v59 = vpop.eup %3762  ;;  %v2723_v47 = vadd.f32 %v3759_v18, %v2722_v34 }
 0xb3b   :  { %v2766_v63 = vadd.f32 %v3761_v21, %v2765_v37  ;;  %v2831_v12 = vmul.f32 %v3763_v59, %v2829_v0  ;;  %v3765_v11 = vpop.eup %3764  ;;  %vm2836_vm9 = vweird.f32 %v3763_v59 }
 0xb3c   :  { %v2727_v1 = vsel %vm2726_vm2, %v3759_v18, %v2723_v47  ;;  %vm2837_vm11 = vmor %vm2835_vm10, %vm2836_vm9 }
 0xb3d   :  { %v2732_v7 = vsel %vm2729_vm7, %v2731_v56, %v2727_v1  ;;  %v2770_v27 = vsel %vm2769_vm6, %v3761_v21, %v2766_v63  ;;  %v2832_v39 = vsub.f32 1.0, %v2831_v12 }
 0xb3e   :  { %v2775_v35 = vsel %vm2772_vm8, %v2774_v55, %v2770_v27  ;;  %v2849_v22 = vmul.f32 %v3765_v11, %v2732_v7 }
 0xb3f   :  { %v2848_v28 = vmul.f32 %v2846_v15, %v2775_v35  ;;  %v2833_v41 = vmul.f32 %v3763_v59, %v2832_v39 }
 0xb41   :  { %v5604_v38 = vadd.f32 %v2849_v22, %v2848_v28  ;;  %v2834_v57 = vadd.f32 %v3763_v59, %v2833_v41 }
 0xb43   :  { %3766 = vtanh.f32 %v5604_v38  ;;  %v2838_v3 = vsel %vm2837_vm11, %v3763_v59, %v2834_v57  ;;  %v3012_v14 = vrot.slane %v5604_v38, 6 }
 0xb44   :  { %v2843_v25 = vsel %vm2840_vm12, %v2842_v19, %v2838_v3 }
 0xb49   :  { %v3767_v33 = vpop.eup %3766 }
 0xb4a   :  { %v2852_v8 = vmul.f32 %v3767_v33, %v2843_v25 }
 0xb4c   :  { %v2854_v26 = vrot.slane %v2852_v8, 4  ;;  %v3023_v60 = vrot.slane %v2852_v8, 2  ;;  %v3039_v0 = vsel %vm118_vm1, %v2852_v8, %v3037_v48 }
 0xb4e   :  { %3504 = vmatmul.msk.f32.vlgmr.msra.gmra.mxu0 %vm167_vm14, %v2854_v26  ;;  %v3025_v13 = vsel %vm118_vm1, %v5221_v44, %v3023_v60  ;;  %3506 = vmatmul.msk.f32.vlgmr.msra.gmra.mxu1 %vm167_vm14, %v2854_v26 }
 0xb4f   :  { %3047 = vst [vmem:[#allocation1] sm:$0xff] %v3025_v13  ;;  %3508 = vmatmul.msk.f32.vlgmr.msra.gmra.mxu2 %vm167_vm14, %v2854_v26  ;;  %3509 = vmatmul.msk.f32.vlgmr.msra.gmra.mxu3 %vm167_vm14, %v2854_v26 }
 0xb56   :  { %v5616_v58 = vld [vmem:[#allocation1 + $0x2] ss:$9 sm:$0xff] }
 0xb57   :  { %v5618_v17 = vld [vmem:[#allocation1 + $0x3] ss:$9 sm:$0xff] }
 0xb58   :  { %3053 = vst [vmem:[#allocation1] sm:$0xff] %v3028_v53 }
 0xb5f   :  { %v5623_v52 = vld [vmem:[#allocation1 + $0x4] ss:$9 sm:$0xff] }
 0xb60   :  { %v5625_v46 = vld [vmem:[#allocation1 + $0x5] ss:$9 sm:$0xff] }
 0xb61   :  { %3059 = vst [vmem:[#allocation1] sm:$0xff] %v3031_v4 }
 0xb68   :  { %v5630_v6 = vld [vmem:[#allocation1 + $0x6] ss:$9 sm:$0xff] }
 0xb69   :  { %v5632_v10 = vld [vmem:[#allocation1 + $0x7] ss:$9 sm:$0xff] }
 0xb6a   :  { %3067 = vst [vmem:[#allocation1] sm:$0xff] %v3036_v54 }
 0xb71   :  { %v5636_v18 = vld [vmem:[#allocation1 + $0x2] ss:$9 sm:$0xff] }
 0xb72   :  { %v5638_v20 = vld [vmem:[#allocation1 + $0x3] ss:$9 sm:$0xff] }
 0xb73   :  { %3073 = vst [vmem:[#allocation1] sm:$0xff] %v3039_v0 }
 0xbcb   :  { %v2874_v21 = vpop.f32.mrf.mxu0  ;;  %v2917_v40 = vpop.f32.mrf.mxu1 }
 0xbcc   :  { %v2878_v62 = vrot.slane %v2874_v21, 2  ;;  %v2921_v16 = vrot.slane %v2917_v40, 2 }
 0xbce   :  { %v2880_v51 = vadd.f32 %v2878_v62, %v5522_v61  ;;  %v2923_v24 = vadd.f32 %v2921_v16, %v5526_v29 }
 0xbd0   :  { %v3505_v32 = vmul.f32 -1.442695, %v2880_v51  ;;  %v3507_v49 = vmul.f32 -1.442695, %v2923_v24  ;;  %v5759_v51 = vld [vmem:[#allocation5_spill] sm:$0xff] }
 0xbd1   :  { %v3040_v24 = vrot.slane %v5759_v51, 2 }
 0xbd2   :  { %3768 = vpow2.f32 %v3505_v32  ;;  %v2985_v31 = vpop.f32.mrf.mxu3  ;;  %v2960_v56 = vpop.f32.mrf.mxu2  ;;  %v5760_v32 = vld [vmem:[#allocation7_spill] sm:$0xff] }
 0xbd3   :  { %3770 = vpow2.f32 %v3507_v49  ;;  %v2989_v44 = vrot.slane %v2985_v31, 2  ;;  %v2964_v61 = vrot.slane %v2960_v56, 2  ;;  %v3033_v49 = vsel %vm118_vm1, %v5542_v23, %v5760_v32 }
 0xbd5   :  { %v2991_v34 = vadd.f32 %v2989_v44, %v5531_v2  ;;  %v2966_v15 = vadd.f32 %v2964_v61, %v5535_v43  ;;  %v3092_v61 = vperm.slane %v5630_v6, 0 }
 0xbd7   :  { %v3510_v36 = vmul.f32 -1.442695, %v2991_v34  ;;  %v3075_v34 = vld [vmem:[#allocation1 + $0x4] ss:$9 sm:$0xff] }
 0xbd8   :  { %v3769_v37 = vpop.eup %3768 }
 0xbd9   :  { %v3771_v9 = vpop.eup %3770  ;;  %v2884_v59 = vadd.f32 1.0, %v3769_v37  ;;  %3772 = vpow2.f32 %v3510_v36  ;;  %v3077_v36 = vld [vmem:[#allocation1 + $0x5] ss:$9 sm:$0xff]  ;;  %v3084_v37 = vperm.slane %v5616_v58, 0  ;;  %v3089_v58 = vperm.slane %v5625_v46, 0 }
 0xbda   :  { %v2927_v47 = vadd.f32 1.0, %v3771_v9 }
 0xbdb   :  { %3774 = vrcp.f32 %v2884_v59  ;;  %v2894_v27 = vand.u32 2147483647, %v2884_v59  ;;  %v2896_v39 = vand.u32 2147483648, %v2884_v59  ;;  %vm2890_vm0 = vweird.f32 %v2884_v59 }
 0xbdc   :  { %3776 = vrcp.f32 %v2927_v47  ;;  %v2939_v35 = vand.u32 2147483648, %v2927_v47  ;;  %v2937_v28 = vand.u32 2147483647, %v2927_v47  ;;  %vm2933_vm2 = vweird.f32 %v2927_v47 }
 0xbdd   :  { %v2897_v43 = vor.u32 1.1754944e-38, %v2896_v39  ;;  %vm2895_vm7 = vcmp.eq.f32.partialorder %v2894_v27, 8.507059e+37  ;;  %v3101_v27 = vperm.slane %v5638_v20, 0 }
 0xbde   :  { %v2940_v33 = vor.u32 1.1754944e-38, %v2939_v35  ;;  %vm2938_vm9 = vcmp.eq.f32.partialorder %v2937_v28, 8.507059e+37  ;;  %v3105_v35 = vperm.slane %v3077_v36, 0 }
 0xbdf   :  { %v3773_v63 = vpop.eup %3772 }
 0xbe0   :  { %v2995_v29 = vadd.f32 1.0, %v3773_v63  ;;  %v3085_v63 = vperm.slane %v5618_v17, 0  ;;  %v3104_v17 = vperm.slane %v3075_v34, 0 }
 0xbe1   :  { %v3775_v12 = vpop.eup %3774 }
 0xbe2   :  { %v3777_v55 = vpop.eup %3776  ;;  %v2886_v1 = vmul.f32 %v3775_v12, %v2884_v59  ;;  %3778 = vrcp.f32 %v2995_v29  ;;  %vm2891_vm13 = vweird.f32 %v3775_v12  ;;  %v3007_v54 = vand.u32 2147483648, %v2995_v29 }
 0xbe3   :  { %v2929_v11 = vmul.f32 %v3777_v55, %v2927_v47  ;;  %3780 = vtanh.f32 %v2966_v15  ;;  %vm2934_vm15 = vweird.f32 %v3777_v55  ;;  %vm2892_vm6 = vmor %vm2890_vm0, %vm2891_vm13  ;;  %vm3001_vm11 = vweird.f32 %v2995_v29 }
 0xbe4   :  { %v2887_v2 = vsub.f32 1.0, %v2886_v1  ;;  %vm2935_vm8 = vmor %vm2933_vm2, %vm2934_vm15  ;;  %v3005_v48 = vand.u32 2147483647, %v2995_v29  ;;  %v3008_v21 = vor.u32 1.1754944e-38, %v3007_v54  ;;  %vm3112_vm15 = vcmask 1040384  }
 0xbe5   :  { %v2930_v7 = vsub.f32 1.0, %v2929_v11  ;;  %v3088_v59 = vperm.slane %v5623_v52, 0  ;;  %vm3117_vm0 = vcmask 1042432   ;;  %v3065_v47 = vrot.slane %v3033_v49, 1 }
 0xbe6   :  { %v2888_v22 = vmul.f32 %v3775_v12, %v2887_v2  ;;  %vm3006_vm13 = vcmp.eq.f32.partialorder %v3005_v48, 8.507059e+37  ;;  %vm3122_vm2 = vcmask 1044480   ;;  %v3100_v15 = vperm.slane %v5636_v18, 0 }
 0xbe7   :  { %v2931_v41 = vmul.f32 %v3777_v55, %v2930_v7  ;;  %v3093_v52 = vperm.slane %v5632_v10, 0  ;;  %v3097_v11 = vperm.slane %v3065_v47, 0 }
 0xbe8   :  { %v3779_v57 = vpop.eup %3778  ;;  %v2889_v5 = vadd.f32 %v3775_v12, %v2888_v22 }
 0xbe9   :  { %v2932_v3 = vadd.f32 %v3777_v55, %v2931_v41  ;;  %v2997_v19 = vmul.f32 %v3779_v57, %v2995_v29  ;;  %v3781_v8 = vpop.eup %3780  ;;  %vm3002_vm10 = vweird.f32 %v3779_v57  ;;  %v3096_v29 = vperm.slane %v3033_v49, 0 }
 0xbea   :  { %v2893_v25 = vsel %vm2892_vm6, %v3775_v12, %v2889_v5  ;;  %vm3003_vm12 = vmor %vm3001_vm11, %vm3002_vm10 }
 0xbeb   :  { %v2898_v26 = vsel %vm2895_vm7, %v2897_v43, %v2893_v25  ;;  %v2936_v60 = vsel %vm2935_vm8, %v3777_v55, %v2932_v3  ;;  %v2998_v13 = vsub.f32 1.0, %v2997_v19 }
 0xbec   :  { %v2941_v30 = vsel %vm2938_vm9, %v2940_v33, %v2936_v60  ;;  %v3015_v53 = vmul.f32 %v3781_v8, %v2898_v26 }
 0xbed   :  { %v3014_v38 = vmul.f32 %v3012_v14, %v2941_v30  ;;  %v2999_v50 = vmul.f32 %v3779_v57, %v2998_v13  ;;  %v3148_v30 = vlaneseq }
 0xbef   :  { %v3016_v4 = vadd.f32 %v3015_v53, %v3014_v38  ;;  %v3000_v45 = vadd.f32 %v3779_v57, %v2999_v50  ;;  %v5674_v53 = vand.u32 127, %v3148_v30 }
 0xbf1   :  { %3782 = vtanh.f32 %v3016_v4  ;;  %v3004_v0 = vsel %vm3003_vm12, %v3779_v57, %v3000_v45 }
 0xbf2   :  { %v3009_v62 = vsel %vm3006_vm13, %v3008_v21, %v3004_v0  ;;  %vm3225_vm13 = vcmask 64512  }
 0xbf7   :  { %v3783_v40 = vpop.eup %3782 }
 0xbf8   :  { %v3018_v16 = vmul.f32 %v3783_v40, %v3009_v62 }
 0xbfa   :  { %v3020_v31 = vrot.slane %v3018_v16, 6  ;;  %v3042_v44 = vsel %vm118_vm1, %v3018_v16, %v3040_v24 }
 0xbfb   :  { %3079 = vst [vmem:[#allocation1] sm:$0xff] %v3042_v44 }
 0xbfc   :  { %v3022_v9 = vsel %vm118_vm1, %v5759_v51, %v3020_v31  ;;  %vm3127_vm1 = vcmask 1046528  }
 0xbfd   :  { %v3044_v56 = vrot.slane %v3022_v9, 1  ;;  %v3113_v23 = vsel %vm3112_vm15, %v3022_v9, %v3084_v37 }
 0xbfe   :  { %v3115_v12 = vsel %vm1517_vm4, %v3113_v23, %v3088_v59 }
 0xbff   :  { %v3118_v55 = vsel %vm3117_vm0, %v3115_v12, %v3092_v61  ;;  %v3114_v1 = vsel %vm3112_vm15, %v3044_v56, %v3085_v63  ;;  %vm3313_vm15 = vcmask 33792  }
 0xc00   :  { %v3120_v6 = vsel %vm1519_vm3, %v3118_v55, %v3096_v29  ;;  %v3116_v2 = vsel %vm1517_vm4, %v3114_v1, %v3089_v58  ;;  %vm3152_vm4 = vcmask 1041409  }
 0xc01   :  { %v3123_v7 = vsel %vm3122_vm2, %v3120_v6, %v3100_v15  ;;  %v3119_v46 = vsel %vm3117_vm0, %v3116_v2, %v3093_v52 }
 0xc02   :  { %v3081_v39 = vld [vmem:[#allocation1 + $0x6] ss:$9 sm:$0xff]  ;;  %v3121_v10 = vsel %vm1519_vm3, %v3119_v46, %v3097_v11  ;;  %v3125_v57 = vsel %vm1521_vm5, %v3123_v7, %v3104_v17  ;;  %vm3155_vm3 = vcmask 58368  }
 0xc03   :  { %v3083_v18 = vld [vmem:[#allocation1 + $0x7] ss:$9 sm:$0xff]  ;;  %v3108_v22 = vperm.slane %v3081_v39, 0  ;;  %v3124_v41 = vsel %vm3122_vm2, %v3121_v10, %v3101_v27 }
 0xc04   :  { %v3109_v28 = vperm.slane %v3083_v18, 0  ;;  %v3126_v14 = vsel %vm1521_vm5, %v3124_v41, %v3105_v35 }
 0xc05   :  { %v3128_v5 = vsel %vm3127_vm1, %v3125_v57, %v3108_v22  ;;  %v3282_v57 = vld [vmem:[%s5725_s7 + $0x38] sm:$0xff] }
 0xc06   :  { %v3129_v43 = vsel %vm3127_vm1, %v3126_v14, %v3109_v28  ;;  %3243 = vmatpush.msrb.mxu1 %v3128_v5  ;;  %v3130_v20 = vperm.slane %v3128_v5, 7  ;;  %v3281_v14 = vld [vmem:[%s5725_s7 + $0x30] sm:$0xff]  ;;  %3301 = vmatpush.msrb.mxu0 %v3282_v57 }
 0xc07   :  { %v3135_v3 = vperm.slane %v3129_v43, 7 }
 0xc08   :  { %3270 = vmatpush.msra.mxu1 %v3129_v43  ;;  %v3131_v19 = vmul.f32 %v3130_v20, %v3128_v5  ;;  %v3280_v5 = vld [vmem:[%s5725_s7 + $0x28] sm:$0xff]  ;;  %3302 = vmatpush.msrb.mxu0 %v3281_v14  ;;  %v3278_v20 = vld [vmem:[%s5725_s7 + $0x18] sm:$0xff] }
 0xc09   :  { %v3136_v33 = vmul.f32 %v3135_v3, %v3129_v43  ;;  %v3279_v43 = vld [vmem:[%s5725_s7 + $0x20] sm:$0xff]  ;;  %v3277_v3 = vld [vmem:[%s5725_s7 + $0x10] sm:$0xff] }
 0xc0a   :  { %v3132_v25 = vsel %vm167_vm14, %v3131_v19, 0.0  ;;  %3303 = vmatpush.msrb.mxu0 %v3280_v5  ;;  %v3276_v19 = vld [vmem:[%s5725_s7 + $0x8] sm:$0xff] }
 0xc0b   :  { %v3137_v8 = vsel %vm167_vm14, %v3136_v33, 0.0  ;;  %3133 = vadd.xlane.f32.xlu0 %v3132_v25  ;;  %v3275_v33 = vld [vmem:[%s5725_s7] sm:$0xff] }
 0xc0c   :  { %3138 = vadd.xlane.f32.xlu1 %v3137_v8  ;;  %3304 = vmatpush.msrb.mxu0 %v3279_v43 }
 0xc0e   :  { %3305 = vmatpush.msrb.mxu0 %v3278_v20 }
 0xc10   :  { %3306 = vmatpush.msrb.mxu0 %v3277_v3 }
 0xc12   :  { %3307 = vmatpush.msrb.mxu0 %v3276_v19 }
 0xc14   :  { %3308 = vmatpush.msrb.mxu0 %v3275_v33 }
 0xc7e   :  { %v3134_v26 = vpop.xlane.xlu0 %3133 }
 0xc7f   :  { %3143 = vperm.xlu2 %3520, %v3134_v26   ;;  %v3139_v60 = vpop.xlane.xlu1 %3138 }
 0xc87   :  { %3146 = vperm.xlu2 %3520, %v3139_v60  }
 0xcd9   :  { %v3144_v13 = vpop.permute.xlu2 %3143 }
 0xcda   :  { %v3150_v38 = vperm.slane %v3144_v13, %v5674_v53  ;;  %v3527_v13 = vld [vmem:[%s5726_s8] ss:$0 sm:$0xff] }
 0xce1   :  { %v3147_v42 = vpop.permute.xlu2 %3146 }
 0xce2   :  { %v3151_v50 = vperm.slane %v3147_v42, %v5674_v53 }
 0xce4   :  { %v3153_v4 = vsel %vm3152_vm4, %v3151_v50, %v3150_v38 }
 0xce5   :  { %v3156_v45 = vsel %vm3155_vm3, %v3153_v4, -inf }
 0xce6   :  { %3157 = vmax.xlane.f32.xlu2 %v3156_v45 }
 0xd59   :  { %v3158_v54 = vpop.xlane.xlu2 %3157 }
 0xd5a   :  { %v3160_v48 = vperm.slane %v3158_v54, 0  ;;  %v3161_v0 = vperm.slane %v3158_v54, 1 }
 0xd5c   :  { %v3164_v21 = vsub.f32 %v3134_v26, %v3160_v48  ;;  %v3165_v40 = vsub.f32 %v3139_v60, %v3161_v0 }
 0xd5e   :  { %v3166_v62 = vmul.f32 1.442695, %v3164_v21  ;;  %v3168_v16 = vmul.f32 1.442695, %v3165_v40 }
 0xd60   :  { %3784 = vpow2.f32 %v3166_v62 }
 0xd61   :  { %3786 = vpow2.f32 %v3168_v16 }
 0xd66   :  { %v3785_v51 = vpop.eup %3784 }
 0xd67   :  { %v3787_v24 = vpop.eup %3786  ;;  %3173 = vperm.xlu0 %3521, %v3785_v51  }
 0xd68   :  { %3176 = vperm.xlu1 %3522, %v3787_v24  }
 0xdd9   :  { %v3174_v32 = vpop.permute.xlu0 %3173 }
 0xdda   :  { %v3177_v49 = vpop.permute.xlu1 %3176  ;;  %v3178_v31 = vperm.slane %v3174_v32, %v5674_v53 }
 0xddb   :  { %v3179_v44 = vperm.slane %v3177_v49, %v5674_v53 }
 0xddd   :  { %v3180_v34 = vsel %vm3152_vm4, %v3179_v44, %v3178_v31 }
 0xdde   :  { %v3182_v36 = vsel %vm3155_vm3, %v3180_v34, 0.0 }
 0xddf   :  { %3183 = vadd.xlane.f32.xlu2 %v3182_v36 }
 0xe52   :  { %v3184_v37 = vpop.xlane.xlu2 %3183 }
 0xe53   :  { %v3186_v9 = vperm.slane %v3184_v37, 0  ;;  %v3187_v59 = vperm.slane %v3184_v37, 1 }
 0xe55   :  { %3788 = vrcp.f32 %v3186_v9  ;;  %v3201_v12 = vand.u32 2147483648, %v3186_v9  ;;  %v3216_v58 = vand.u32 2147483648, %v3187_v59  ;;  %v3199_v55 = vand.u32 2147483647, %v3186_v9 }
 0xe56   :  { %3790 = vrcp.f32 %v3187_v59  ;;  %v3214_v1 = vand.u32 2147483647, %v3187_v59  ;;  %vm3195_vm7 = vweird.f32 %v3186_v9  ;;  %vm3210_vm8 = vweird.f32 %v3187_v59 }
 0xe57   :  { %v3202_v2 = vor.u32 1.1754944e-38, %v3201_v12  ;;  %v3217_v17 = vor.u32 1.1754944e-38, %v3216_v58  ;;  %vm3200_vm11 = vcmp.eq.f32.partialorder %v3199_v55, 8.507059e+37 }
 0xe58   :  { %vm3215_vm12 = vcmp.eq.f32.partialorder %v3214_v1, 8.507059e+37 }
 0xe5b   :  { %v3789_v47 = vpop.eup %3788 }
 0xe5c   :  { %v3791_v56 = vpop.eup %3790  ;;  %v3191_v61 = vmul.f32 %v3789_v47, %v3186_v9  ;;  %vm3196_vm5 = vweird.f32 %v3789_v47 }
 0xe5d   :  { %v3206_v23 = vmul.f32 %v3791_v56, %v3187_v59  ;;  %vm3211_vm6 = vweird.f32 %v3791_v56  ;;  %vm3197_vm9 = vmor %vm3195_vm7, %vm3196_vm5 }
 0xe5e   :  { %v3192_v63 = vsub.f32 1.0, %v3191_v61  ;;  %vm3212_vm10 = vmor %vm3210_vm8, %vm3211_vm6 }
 0xe5f   :  { %v3207_v29 = vsub.f32 1.0, %v3206_v23 }
 0xe60   :  { %v3193_v15 = vmul.f32 %v3789_v47, %v3192_v63 }
 0xe61   :  { %v3208_v52 = vmul.f32 %v3791_v56, %v3207_v29 }
 0xe62   :  { %v3194_v6 = vadd.f32 %v3789_v47, %v3193_v15 }
 0xe63   :  { %v3209_v11 = vadd.f32 %v3791_v56, %v3208_v52 }
 0xe64   :  { %v3198_v7 = vsel %vm3197_vm9, %v3789_v47, %v3194_v6 }
 0xe65   :  { %v3213_v27 = vsel %vm3212_vm10, %v3791_v56, %v3209_v11  ;;  %v3203_v46 = vsel %vm3200_vm11, %v3202_v2, %v3198_v7 }
 0xe66   :  { %v3218_v39 = vsel %vm3215_vm12, %v3217_v17, %v3213_v27  ;;  %v3204_v18 = vmul.f32 %v3785_v51, %v3203_v46 }
 0xe67   :  { %v3219_v35 = vmul.f32 %v3787_v24, %v3218_v39 }
 0xe68   :  { %3222 = vperm.xlu2 %3520, %v3204_v18  }
 0xe69   :  { %3250 = vperm.xlu1 %3522, %v3219_v35  }
 0xec2   :  { %v3223_v10 = vpop.permute.xlu2 %3222 }
 0xec3   :  { %v3224_v22 = vperm.slane %v3223_v10, %v5674_v53 }
 0xec5   :  { %3511 = vmatmul.msk.f32.vlgmr.msrb.gmra.mxu1 %vm3225_vm13, %v3224_v22 }
 0xedb   :  { %v3251_v28 = vpop.permute.xlu1 %3250 }
 0xedc   :  { %v3252_v41 = vperm.slane %v3251_v28, %v5674_v53 }
 0xede   :  { %3512 = vmatmul.msk.f32.vlgmr.msra.gmra.mxu1 %vm3225_vm13, %v3252_v41 }
 0xf42   :  { %v3245_v25 = vpop.f32.mrf.mxu1 }
 0xf5b   :  { %v3272_v8 = vpop.f32.mrf.mxu1 }
 0xf5c   :  { %v3289_v26 = vrot.slane %v3272_v8, 7 }
 0xf5e   :  { %v3290_v60 = vsel %vm3152_vm4, %v3289_v26, %v3245_v25 }
 0xf5f   :  { %3513 = vmatmul.msk.f32.vlgmr.msrb.gmra.mxu0 %vm167_vm14, %v3290_v60 }
 0xfdc   :  { %v3310_v30 = vpop.f32.mrf.mxu0 }
 0xfdd   :  { %v3311_v53 = vadd.f32 %v3527_v13, %v3310_v30 }
 0xfdf   :  { %3314 = vst.msk [vmem:[#allocation2] sm:$0x3] %vm3313_vm15, %v3311_v53 }
 0xfe0   :  { %3325 = dma.vmem_to_hbm [thread:$0]  %s3321_s2, 32, %s3323_s29, [#allocation3]  }
 0xfe1   :  { %3880 = dma.done.wait [#allocation3], 32  }
 0xfe2   :  { %3881 = vsyncadd [#allocation3], 4294967264 }
 0xfe3   :  { %3330 = vsyncpa [#allocation3], 1 }

</bundles_post_ra>
